<compile_context>
chip_gen: v5e
topology: v5e:2x2
jax: 0.10.0
libtpu: 0.0.40
codegen_flags: <defaults>
</compile_context>

<pallas_src>
import jax
import jax.numpy as jnp
from jax.experimental import pallas as pl
from jax.experimental.pallas import tpu as pltpu


# ---------------------------------------------------------------------------
# Helpers used inside the kernel.
# ---------------------------------------------------------------------------
def _halo_cat_w(a):
    """(H, W, C) -> (H, W, 3C): lanes [0:C]=a[:, w-1], [C:2C]=a[:, w],
    [2C:3C]=a[:, w+1], with zeros outside the valid W range (the 1-pixel
    W-halo of a 3x3 'SAME' conv folded into the lane axis)."""
    H, W, C = a.shape
    zc = jnp.zeros((H, 1, C), a.dtype)
    left = jnp.concatenate([zc, a[:, : W - 1, :]], axis=1)     # value at w-1
    right = jnp.concatenate([a[:, 1:, :], zc], axis=1)         # value at w+1
    return jnp.concatenate([left, a, right], axis=-1)


def _fam_gate(mean_row, w1, b1, w2, b2):
    """FAM squeeze-excite gate on a (1, C) global-mean row."""
    h = jnp.maximum(
        jnp.dot(mean_row, w1, preferred_element_type=jnp.float32) + b1, 0.0)
    return jax.nn.sigmoid(
        jnp.dot(h, w2, preferred_element_type=jnp.float32) + b2)


# ---------------------------------------------------------------------------
# Fused kernel factory (static shapes baked in).
# ---------------------------------------------------------------------------
def _make_fused_kernel(B, H, W, Cin, C1, C2):
    inv_hw = 1.0 / float(H * W)

    def kernel(x_ref, w1_ref, b1_ref,
               f1w1_ref, f1b1_ref, f1w2_ref, f1b2_ref,
               w2_ref, b2_ref,
               f2w1_ref, f2b1_ref, f2w2_ref, f2b2_ref,
               o_ref, lcr_ref):
        # x_ref   : (B, H, W, Cin) f32
        # w1_ref  : (3, 3*Cin, C1) f32,   b1_ref: (1, C1)
        # f1*     : FAM1 1x1 weights (C1,C1/4),(1,C1/4),(C1/4,C1),(1,C1)
        # w2_ref  : (3, 3*C1, C2) bf16,   b2_ref: (1, C2)
        # f2*     : FAM2 1x1 weights
        # o_ref   : (B, H, W, C2) f32
        # lcr_ref : VMEM (H+2, W, 3*C1) bf16 scratch; rows 1..H hold the
        #           FAM1-scaled conv1 output with its W-halo folded into
        #           lanes, rows 0 and H+1 are the zero H-halo.

        # Only the two halo rows need clearing (12 KiB, two tiny stores);
        # unconditional per step so it is safe under megacore grid splits.
        lcr_ref[0:1] = jnp.zeros((1, W, 3 * C1), jnp.bfloat16)
        lcr_ref[H + 1:H + 2] = jnp.zeros((1, W, 3 * C1), jnp.bfloat16)

        for i in range(B):                         # images of this grid step
            xi = x_ref[i]                          # (H, W, Cin) f32

            # ---- conv1: 3x3 Cin->C1, W-halo in lanes, 3 dots over kh ----
            l1 = _halo_cat_w(xi)                               # (H, W, 3*Cin)
            zr = jnp.zeros((1, W, 3 * Cin), l1.dtype)
            l1p = jnp.concatenate([zr, l1, zr], axis=0)        # (H+2, W, 3*Cin)
            acc1 = jnp.zeros((H * W, C1), jnp.float32) + b1_ref[...]
            for kh in range(3):
                lhs = l1p[kh:kh + H].reshape(H * W, 3 * Cin)
                acc1 = acc1 + jnp.dot(lhs, w1_ref[kh],
                                      preferred_element_type=jnp.float32)

            # ---- FAM1: gate computed and applied while VMEM/vreg resident ----
            m1 = jnp.sum(acc1, axis=0, keepdims=True) * inv_hw
            s1 = _fam_gate(m1, f1w1_ref[...], f1b1_ref[...],
                           f1w2_ref[...], f1b2_ref[...])
            a1 = (acc1 * s1).reshape(H, W, C1)

            # ---- conv2 LHS: W-halo into lanes (bf16), H-halo = scratch rows ----
            lcr_ref[1:H + 1] = _halo_cat_w(a1).astype(jnp.bfloat16)

            # ---- conv2: 3x3 C1->C2, bf16 MXU dots (K=3*C1), f32 accumulate ----
            out = jnp.zeros((H * W, C2), jnp.float32) + b2_ref[...]
            for kh in range(3):
                lhs = lcr_ref[kh:kh + H].reshape(H * W, 3 * C1)   # bf16
                out = out + jnp.dot(lhs, w2_ref[kh],
                                    preferred_element_type=jnp.float32)

            # ---- FAM2 + single scaled, lane-dense (C2=128) store ----
            m2 = jnp.sum(out, axis=0, keepdims=True) * inv_hw
            s2 = _fam_gate(m2, f2w1_ref[...], f2b1_ref[...],
                           f2w2_ref[...], f2b2_ref[...])
            o_ref[i] = (out * s2).reshape(H, W, C2).astype(o_ref.dtype)

    return kernel


# ---------------------------------------------------------------------------
# Wrapper: one pallas_call for the whole network.
# ---------------------------------------------------------------------------
def _pick_batch_block(N, per_image_block_bytes, budget_bytes=8 << 20):
    """Largest batch-block size that (a) divides N, (b) leaves >= 2 grid steps
    so both TensorCores get work on dual-core chips, (c) keeps the
    double-buffered input+output blocks well inside the scoped VMEM limit."""
    best = 1
    for b in range(1, N + 1):
        if N % b:
            continue
        if N // b < 2:
            continue
        if 2 * b * per_image_block_bytes > budget_bytes:
            continue
        best = b
    return best


def textfusenet_pallas(x_nchw, params):
    x = jnp.transpose(x_nchw, (0, 2, 3, 1)).astype(jnp.float32)   # NCHW->NHWC
    N, H, W, Cin = x.shape
    C1 = params["conv1_b"].shape[-1]          # 32
    C2 = params["conv2_b"].shape[-1]          # 128

    # Weight row order kw*Cin + c matches the [w-1 | w | w+1] lane layout.
    w1 = params["conv1_w"].reshape(3, 3 * Cin, C1).astype(jnp.float32)
    w2 = params["conv2_w"].reshape(3, 3 * C1, C2).astype(jnp.bfloat16)

    per_image = (H * W * Cin + H * W * C2) * 4
    B = _pick_batch_block(N, per_image)
    grid = (N // B,)

    # NOTE: for large H, W (>= ~128) this whole-image tiling should switch to
    # gridding over row strips (and vmem_limit_bytes set explicitly) to stay
    # inside v7x's 64 MiB VMEM; at the small sizes used here one image block
    # plus the (H+2, W, 3*C1) bf16 scratch is only a few hundred KiB.
    kernel = _make_fused_kernel(B, H, W, Cin, C1, C2)

    out = pl.pallas_call(
        kernel,
        out_shape=jax.ShapeDtypeStruct((N, H, W, C2), jnp.float32),
        grid=grid,
        in_specs=[
            pl.BlockSpec((B, H, W, Cin), lambda n: (n, 0, 0, 0)),
            pl.BlockSpec((3, 3 * Cin, C1), lambda n: (0, 0, 0)),
            pl.BlockSpec((1, C1), lambda n: (0, 0)),
            pl.BlockSpec((C1, C1 // 4), lambda n: (0, 0)),
            pl.BlockSpec((1, C1 // 4), lambda n: (0, 0)),
            pl.BlockSpec((C1 // 4, C1), lambda n: (0, 0)),
            pl.BlockSpec((1, C1), lambda n: (0, 0)),
            pl.BlockSpec((3, 3 * C1, C2), lambda n: (0, 0, 0)),
            pl.BlockSpec((1, C2), lambda n: (0, 0)),
            pl.BlockSpec((C2, C2 // 4), lambda n: (0, 0)),
            pl.BlockSpec((1, C2 // 4), lambda n: (0, 0)),
            pl.BlockSpec((C2 // 4, C2), lambda n: (0, 0)),
            pl.BlockSpec((1, C2), lambda n: (0, 0)),
        ],
        out_specs=pl.BlockSpec((B, H, W, C2), lambda n: (n, 0, 0, 0)),
        scratch_shapes=[pltpu.VMEM((H + 2, W, 3 * C1), jnp.bfloat16)],
        compiler_params=pltpu.CompilerParams(
            dimension_semantics=("parallel",),
        ),
    )(x, w1, params["conv1_b"],
      params["fam1_w1"], params["fam1_b1"],
      params["fam1_w2"], params["fam1_b2"],
      w2, params["conv2_b"],
      params["fam2_w1"], params["fam2_b1"],
      params["fam2_w2"], params["fam2_b2"])
    return jnp.transpose(out, (0, 3, 1, 2))                       # NHWC->NCHW


textfusenet_forward = jax.jit(textfusenet_pallas)


# ---------------------------------------------------------------------------
# Parameter construction (deterministic, synthetic).
# ---------------------------------------------------------------------------
def init_params(key, in_channels):
    ks = jax.random.split(key, 12)

    def w_init(k, shape, fan_in):
        return (jax.random.normal(k, shape, jnp.float32)
                * (1.0 / jnp.sqrt(float(fan_in))))

    p = {}
    p["conv1_w"] = w_init(ks[0], (3, 3, in_channels, 32), 9 * in_channels)
    p["conv1_b"] = w_init(ks[1], (1, 32), 9 * in_channels)
    p["fam1_w1"] = w_init(ks[2], (32, 8), 32)
    p["fam1_b1"] = w_init(ks[3], (1, 8), 32)
    p["fam1_w2"] = w_init(ks[4], (8, 32), 8)
    p["fam1_b2"] = w_init(ks[5], (1, 32), 8)
    p["conv2_w"] = w_init(ks[6], (3, 3, 32, 128), 9 * 32)
    p["conv2_b"] = w_init(ks[7], (1, 128), 9 * 32)
    p["fam2_w1"] = w_init(ks[8], (128, 32), 128)
    p["fam2_b1"] = w_init(ks[9], (1, 32), 128)
    p["fam2_w2"] = w_init(ks[10], (32, 128), 32)
    p["fam2_b2"] = w_init(ks[11], (1, 128), 32)
    return p


# ---------------------------------------------------------------------------
# Pure-JAX reference (same math, via lax.conv) used only as a sanity check.
# ---------------------------------------------------------------------------
def reference_forward(x_nchw, params):
    dn = ("NHWC", "HWIO", "NHWC")
    x = jnp.transpose(x_nchw, (0, 2, 3, 1))

    def conv(x, w, b):
        y = jax.lax.conv_general_dilated(x, w, (1, 1), "SAME",
                                         dimension_numbers=dn)
        return y + b.reshape(1, 1, 1, -1)

    def fam_ref(x, w1, b1, w2, b2):
        y = jnp.mean(x, axis=(1, 2))
        y = jnp.maximum(y @ w1 + b1, 0.0)
        y = jax.nn.sigmoid(y @ w2 + b2)
        return x * y[:, None, None, :]

    out = conv(x, params["conv1_w"], params["conv1_b"])
    out = fam_ref(out, params["fam1_w1"], params["fam1_b1"],
                  params["fam1_w2"], params["fam1_b2"])
    out = conv(out, params["conv2_w"], params["conv2_b"])
    out = fam_ref(out, params["fam2_w1"], params["fam2_b1"],
                  params["fam2_w2"], params["fam2_b2"])
    return jnp.transpose(out, (0, 3, 1, 2))


if __name__ == "__main__":
    key = jax.random.PRNGKey(0)
    k_x, k_p = jax.random.split(key)

    N, C, H, W = 2, 4, 16, 16
    x = jax.random.normal(k_x, (N, C, H, W), jnp.float32)   # NCHW like PyTorch
    params = init_params(k_p, C)

    out = jax.block_until_ready(textfusenet_forward(x, params))
    assert out.shape == (N, 128, H, W), out.shape

    ref = jax.block_until_ready(reference_forward(x, params))
    max_err = float(jnp.max(jnp.abs(out - ref)))
    assert max_err < 2e-2, f"mismatch vs reference: {max_err}"

    print("KERNEL_OK")
</pallas_src>

<mosaic_0001>
module attributes {stable_mosaic.version = 11 : i64} {
  func.func @kernel(%arg0: i32, %arg1: memref<1x16x16x4xf32, #tpu.memory_space<vmem>>, %arg2: memref<3x12x32xf32, #tpu.memory_space<vmem>>, %arg3: memref<1x32xf32, #tpu.memory_space<vmem>>, %arg4: memref<32x8xf32, #tpu.memory_space<vmem>>, %arg5: memref<1x8xf32, #tpu.memory_space<vmem>>, %arg6: memref<8x32xf32, #tpu.memory_space<vmem>>, %arg7: memref<1x32xf32, #tpu.memory_space<vmem>>, %arg8: memref<3x96x128xbf16, #tpu.memory_space<vmem>>, %arg9: memref<1x128xf32, #tpu.memory_space<vmem>>, %arg10: memref<128x32xf32, #tpu.memory_space<vmem>>, %arg11: memref<1x32xf32, #tpu.memory_space<vmem>>, %arg12: memref<32x128xf32, #tpu.memory_space<vmem>>, %arg13: memref<1x128xf32, #tpu.memory_space<vmem>>, %arg14: memref<1x16x16x128xf32, #tpu.memory_space<vmem>>, %arg15: memref<18x16x96xbf16, #tpu.memory_space<vmem>>) attributes {dimension_semantics = [#tpu.dimension_semantics<parallel>], iteration_bounds = array<i64: 2>, scalar_prefetch = 0 : i64, scratch_operands = 1 : i64, tpu.core_type = #tpu.core_type<tc>, window_params = [{transform_indices = @transform_0, window_bounds = array<i64: 1, 16, 16, 4>}, {pipeline_mode = #tpu.pipeline_mode<synchronous>, transform_indices = @transform_1, window_bounds = array<i64: 3, 12, 32>}, {pipeline_mode = #tpu.pipeline_mode<synchronous>, transform_indices = @transform_2, window_bounds = array<i64: 1, 32>}, {pipeline_mode = #tpu.pipeline_mode<synchronous>, transform_indices = @transform_3, window_bounds = array<i64: 32, 8>}, {pipeline_mode = #tpu.pipeline_mode<synchronous>, transform_indices = @transform_4, window_bounds = array<i64: 1, 8>}, {pipeline_mode = #tpu.pipeline_mode<synchronous>, transform_indices = @transform_5, window_bounds = array<i64: 8, 32>}, {pipeline_mode = #tpu.pipeline_mode<synchronous>, transform_indices = @transform_6, window_bounds = array<i64: 1, 32>}, {pipeline_mode = #tpu.pipeline_mode<synchronous>, transform_indices = @transform_7, window_bounds = array<i64: 3, 96, 128>}, {pipeline_mode = #tpu.pipeline_mode<synchronous>, transform_indices = @transform_8, window_bounds = array<i64: 1, 128>}, {pipeline_mode = #tpu.pipeline_mode<synchronous>, transform_indices = @transform_9, window_bounds = array<i64: 128, 32>}, {pipeline_mode = #tpu.pipeline_mode<synchronous>, transform_indices = @transform_10, window_bounds = array<i64: 1, 32>}, {pipeline_mode = #tpu.pipeline_mode<synchronous>, transform_indices = @transform_11, window_bounds = array<i64: 32, 128>}, {pipeline_mode = #tpu.pipeline_mode<synchronous>, transform_indices = @transform_12, window_bounds = array<i64: 1, 128>}, {transform_indices = @transform_13, window_bounds = array<i64: 1, 16, 16, 128>}]} {
    %cst = arith.constant 0.000000e+00 : bf16
    %0 = vector.broadcast %cst : bf16 to vector<1x16x96xbf16>
    %c0 = arith.constant 0 : index
    %c0_0 = arith.constant 0 : index
    %c0_1 = arith.constant 0 : index
    %1 = vector.load %arg15[%c0, %c0_0, %c0_1] : memref<18x16x96xbf16, #tpu.memory_space<vmem>>, vector<1x16x96xbf16>
    tpu.vector_store %arg15[%c0, %c0_0, %c0_1], %0 {strides = array<i32>} : memref<18x16x96xbf16, #tpu.memory_space<vmem>>, vector<1x16x96xbf16>,
    %cst_2 = arith.constant 0.000000e+00 : bf16
    %2 = vector.broadcast %cst_2 : bf16 to vector<1x16x96xbf16>
    %c17 = arith.constant 17 : index
    %c0_3 = arith.constant 0 : index
    %c0_4 = arith.constant 0 : index
    %3 = vector.load %arg15[%c17, %c0_3, %c0_4] : memref<18x16x96xbf16, #tpu.memory_space<vmem>>, vector<1x16x96xbf16>
    tpu.vector_store %arg15[%c17, %c0_3, %c0_4], %2 {strides = array<i32>} : memref<18x16x96xbf16, #tpu.memory_space<vmem>>, vector<1x16x96xbf16>,
    %c0_5 = arith.constant 0 : index
    %c0_6 = arith.constant 0 : index
    %c0_7 = arith.constant 0 : index
    %c0_8 = arith.constant 0 : index
    %4 = vector.load %arg1[%c0_5, %c0_6, %c0_7, %c0_8] : memref<1x16x16x4xf32, #tpu.memory_space<vmem>>, vector<1x16x16x4xf32>
    %5 = vector.shape_cast %4 : vector<1x16x16x4xf32> to vector<16x16x4xf32>
    %cst_9 = arith.constant 0.000000e+00 : f32
    %6 = vector.broadcast %cst_9 : f32 to vector<16x1x4xf32>
    %7 = vector.extract_strided_slice %5 {offsets = [0, 0, 0], sizes = [16, 15, 4], strides = [1, 1, 1]} : vector<16x16x4xf32> to vector<16x15x4xf32>
    %8 = tpu.concatenate %6, %7 in 1 : vector<16x1x4xf32>, vector<16x15x4xf32> -> vector<16x16x4xf32>
    %9 = vector.extract_strided_slice %5 {offsets = [0, 1, 0], sizes = [16, 15, 4], strides = [1, 1, 1]} : vector<16x16x4xf32> to vector<16x15x4xf32>
    %10 = tpu.concatenate %9, %6 in 1 : vector<16x15x4xf32>, vector<16x1x4xf32> -> vector<16x16x4xf32>
    %11 = tpu.concatenate %8, %5, %10 in 2 : vector<16x16x4xf32>, vector<16x16x4xf32>, vector<16x16x4xf32> -> vector<16x16x12xf32>
    %cst_10 = arith.constant 0.000000e+00 : f32
    %12 = vector.broadcast %cst_10 : f32 to vector<1x16x12xf32>
    %13 = tpu.concatenate %12, %11, %12 in 0 : vector<1x16x12xf32>, vector<16x16x12xf32>, vector<1x16x12xf32> -> vector<18x16x12xf32>
    %cst_11 = arith.constant 0.000000e+00 : f32
    %14 = vector.broadcast %cst_11 : f32 to vector<256x32xf32>
    %c0_12 = arith.constant 0 : index
    %c0_13 = arith.constant 0 : index
    %15 = vector.load %arg3[%c0_12, %c0_13] : memref<1x32xf32, #tpu.memory_space<vmem>>, vector<1x32xf32>
    %16 = vector.broadcast %15 : vector<1x32xf32> to vector<256x32xf32>
    %17 = arith.addf %14, %16 : vector<256x32xf32>
    %18 = vector.extract_strided_slice %13 {offsets = [0, 0, 0], sizes = [16, 16, 12], strides = [1, 1, 1]} : vector<18x16x12xf32> to vector<16x16x12xf32>
    %19 = vector.shape_cast %18 : vector<16x16x12xf32> to vector<256x12xf32>
    %c0_14 = arith.constant 0 : index
    %c0_15 = arith.constant 0 : index
    %c0_16 = arith.constant 0 : index
    %20 = vector.load %arg2[%c0_14, %c0_15, %c0_16] : memref<3x12x32xf32, #tpu.memory_space<vmem>>, vector<1x12x32xf32>
    %21 = vector.shape_cast %20 : vector<1x12x32xf32> to vector<12x32xf32>
    %cst_17 = arith.constant dense<0.000000e+00> : vector<256x32xf32>
    %22 = tpu.matmul %19, %21, %cst_17 {dimension_numbers = #tpu.dot_dimension_numbers<[1], [0], [0], [1], [0, 0, 1, 1], [], []>} : vector<256x12xf32>, vector<12x32xf32>, vector<256x32xf32> -> vector<256x32xf32>
    %23 = arith.addf %17, %22 : vector<256x32xf32>
    %24 = vector.extract_strided_slice %13 {offsets = [1, 0, 0], sizes = [16, 16, 12], strides = [1, 1, 1]} : vector<18x16x12xf32> to vector<16x16x12xf32>
    %25 = vector.shape_cast %24 : vector<16x16x12xf32> to vector<256x12xf32>
    %c1 = arith.constant 1 : index
    %c0_18 = arith.constant 0 : index
    %c0_19 = arith.constant 0 : index
    %26 = vector.load %arg2[%c1, %c0_18, %c0_19] : memref<3x12x32xf32, #tpu.memory_space<vmem>>, vector<1x12x32xf32>
    %27 = vector.shape_cast %26 : vector<1x12x32xf32> to vector<12x32xf32>
    %cst_20 = arith.constant dense<0.000000e+00> : vector<256x32xf32>
    %28 = tpu.matmul %25, %27, %cst_20 {dimension_numbers = #tpu.dot_dimension_numbers<[1], [0], [0], [1], [0, 0, 1, 1], [], []>} : vector<256x12xf32>, vector<12x32xf32>, vector<256x32xf32> -> vector<256x32xf32>
    %29 = arith.addf %23, %28 : vector<256x32xf32>
    %30 = vector.extract_strided_slice %13 {offsets = [2, 0, 0], sizes = [16, 16, 12], strides = [1, 1, 1]} : vector<18x16x12xf32> to vector<16x16x12xf32>
    %31 = vector.shape_cast %30 : vector<16x16x12xf32> to vector<256x12xf32>
    %c2 = arith.constant 2 : index
    %c0_21 = arith.constant 0 : index
    %c0_22 = arith.constant 0 : index
    %32 = vector.load %arg2[%c2, %c0_21, %c0_22] : memref<3x12x32xf32, #tpu.memory_space<vmem>>, vector<1x12x32xf32>
    %33 = vector.shape_cast %32 : vector<1x12x32xf32> to vector<12x32xf32>
    %cst_23 = arith.constant dense<0.000000e+00> : vector<256x32xf32>
    %34 = tpu.matmul %31, %33, %cst_23 {dimension_numbers = #tpu.dot_dimension_numbers<[1], [0], [0], [1], [0, 0, 1, 1], [], []>} : vector<256x12xf32>, vector<12x32xf32>, vector<256x32xf32> -> vector<256x32xf32>
    %35 = arith.addf %29, %34 : vector<256x32xf32>
    %cst_24 = arith.constant dense<0.000000e+00> : vector<32xf32>
    %36 = vector.multi_reduction <add>, %35, %cst_24 [0] : vector<256x32xf32> to vector<32xf32>
    %37 = vector.shape_cast %36 : vector<32xf32> to vector<1x32xf32>
    %cst_25 = arith.constant 3.906250e-03 : f32
    %38 = vector.broadcast %cst_25 : f32 to vector<1x32xf32>
    %39 = arith.mulf %37, %38 : vector<1x32xf32>
    %c0_26 = arith.constant 0 : index
    %c0_27 = arith.constant 0 : index
    %40 = vector.load %arg4[%c0_26, %c0_27] : memref<32x8xf32, #tpu.memory_space<vmem>>, vector<32x8xf32>
    %c0_28 = arith.constant 0 : index
    %c0_29 = arith.constant 0 : index
    %41 = vector.load %arg5[%c0_28, %c0_29] : memref<1x8xf32, #tpu.memory_space<vmem>>, vector<1x8xf32>
    %c0_30 = arith.constant 0 : index
    %c0_31 = arith.constant 0 : index
    %42 = vector.load %arg6[%c0_30, %c0_31] : memref<8x32xf32, #tpu.memory_space<vmem>>, vector<8x32xf32>
    %c0_32 = arith.constant 0 : index
    %c0_33 = arith.constant 0 : index
    %43 = vector.load %arg7[%c0_32, %c0_33] : memref<1x32xf32, #tpu.memory_space<vmem>>, vector<1x32xf32>
    %cst_34 = arith.constant dense<0.000000e+00> : vector<1x8xf32>
    %44 = tpu.matmul %39, %40, %cst_34 {dimension_numbers = #tpu.dot_dimension_numbers<[1], [0], [0], [1], [0, 0, 1, 1], [], []>} : vector<1x32xf32>, vector<32x8xf32>, vector<1x8xf32> -> vector<1x8xf32>
    %45 = arith.addf %44, %41 : vector<1x8xf32>
    %cst_35 = arith.constant 0.000000e+00 : f32
    %46 = vector.broadcast %cst_35 : f32 to vector<1x8xf32>
    %47 = arith.maximumf %45, %46 : vector<1x8xf32>
    %cst_36 = arith.constant dense<0.000000e+00> : vector<1x32xf32>
    %48 = tpu.matmul %47, %42, %cst_36 {dimension_numbers = #tpu.dot_dimension_numbers<[1], [0], [0], [1], [0, 0, 1, 1], [], []>} : vector<1x8xf32>, vector<8x32xf32>, vector<1x32xf32> -> vector<1x32xf32>
    %49 = arith.addf %48, %43 : vector<1x32xf32>
    %50 = arith.negf %49 : vector<1x32xf32>
    %51 = math.exp %50 : vector<1x32xf32>
    %cst_37 = arith.constant 1.000000e+00 : f32
    %52 = vector.broadcast %cst_37 : f32 to vector<1x32xf32>
    %53 = arith.addf %52, %51 : vector<1x32xf32>
    %54 = arith.divf %52, %53 : vector<1x32xf32>
    %55 = vector.broadcast %54 : vector<1x32xf32> to vector<256x32xf32>
    %56 = arith.mulf %35, %55 : vector<256x32xf32>
    %57 = vector.shape_cast %56 : vector<256x32xf32> to vector<16x16x32xf32>
    %cst_38 = arith.constant 0.000000e+00 : f32
    %58 = vector.broadcast %cst_38 : f32 to vector<16x1x32xf32>
    %59 = vector.extract_strided_slice %57 {offsets = [0, 0, 0], sizes = [16, 15, 32], strides = [1, 1, 1]} : vector<16x16x32xf32> to vector<16x15x32xf32>
    %60 = tpu.concatenate %58, %59 in 1 : vector<16x1x32xf32>, vector<16x15x32xf32> -> vector<16x16x32xf32>
    %61 = vector.extract_strided_slice %57 {offsets = [0, 1, 0], sizes = [16, 15, 32], strides = [1, 1, 1]} : vector<16x16x32xf32> to vector<16x15x32xf32>
    %62 = tpu.concatenate %61, %58 in 1 : vector<16x15x32xf32>, vector<16x1x32xf32> -> vector<16x16x32xf32>
    %63 = tpu.concatenate %60, %57, %62 in 2 : vector<16x16x32xf32>, vector<16x16x32xf32>, vector<16x16x32xf32> -> vector<16x16x96xf32>
    %64 = arith.truncf %63 : vector<16x16x96xf32> to vector<16x16x96xbf16>
    %c1_39 = arith.constant 1 : index
    %c0_40 = arith.constant 0 : index
    %c0_41 = arith.constant 0 : index
    %65 = vector.load %arg15[%c1_39, %c0_40, %c0_41] : memref<18x16x96xbf16, #tpu.memory_space<vmem>>, vector<16x16x96xbf16>
    tpu.vector_store %arg15[%c1_39, %c0_40, %c0_41], %64 {strides = array<i32>} : memref<18x16x96xbf16, #tpu.memory_space<vmem>>, vector<16x16x96xbf16>,
    %cst_42 = arith.constant 0.000000e+00 : f32
    %66 = vector.broadcast %cst_42 : f32 to vector<256x128xf32>
    %c0_43 = arith.constant 0 : index
    %c0_44 = arith.constant 0 : index
    %67 = vector.load %arg9[%c0_43, %c0_44] : memref<1x128xf32, #tpu.memory_space<vmem>>, vector<1x128xf32>
    %68 = vector.broadcast %67 : vector<1x128xf32> to vector<256x128xf32>
    %69 = arith.addf %66, %68 : vector<256x128xf32>
    %c0_45 = arith.constant 0 : index
    %c0_46 = arith.constant 0 : index
    %c0_47 = arith.constant 0 : index
    %70 = vector.load %arg15[%c0_45, %c0_46, %c0_47] : memref<18x16x96xbf16, #tpu.memory_space<vmem>>, vector<16x16x96xbf16>
    %71 = vector.shape_cast %70 : vector<16x16x96xbf16> to vector<256x96xbf16>
    %c0_48 = arith.constant 0 : index
    %c0_49 = arith.constant 0 : index
    %c0_50 = arith.constant 0 : index
    %72 = vector.load %arg8[%c0_48, %c0_49, %c0_50] : memref<3x96x128xbf16, #tpu.memory_space<vmem>>, vector<1x96x128xbf16>
    %73 = vector.shape_cast %72 : vector<1x96x128xbf16> to vector<96x128xbf16>
    %cst_51 = arith.constant dense<0.000000e+00> : vector<256x128xf32>
    %74 = tpu.matmul %71, %73, %cst_51 {dimension_numbers = #tpu.dot_dimension_numbers<[1], [0], [0], [1], [0, 0, 1, 1], [], []>} : vector<256x96xbf16>, vector<96x128xbf16>, vector<256x128xf32> -> vector<256x128xf32>
    %75 = arith.addf %69, %74 : vector<256x128xf32>
    %c1_52 = arith.constant 1 : index
    %c0_53 = arith.constant 0 : index
    %c0_54 = arith.constant 0 : index
    %76 = vector.load %arg15[%c1_52, %c0_53, %c0_54] : memref<18x16x96xbf16, #tpu.memory_space<vmem>>, vector<16x16x96xbf16>
    %77 = vector.shape_cast %76 : vector<16x16x96xbf16> to vector<256x96xbf16>
    %c1_55 = arith.constant 1 : index
    %c0_56 = arith.constant 0 : index
    %c0_57 = arith.constant 0 : index
    %78 = vector.load %arg8[%c1_55, %c0_56, %c0_57] : memref<3x96x128xbf16, #tpu.memory_space<vmem>>, vector<1x96x128xbf16>
    %79 = vector.shape_cast %78 : vector<1x96x128xbf16> to vector<96x128xbf16>
    %cst_58 = arith.constant dense<0.000000e+00> : vector<256x128xf32>
    %80 = tpu.matmul %77, %79, %cst_58 {dimension_numbers = #tpu.dot_dimension_numbers<[1], [0], [0], [1], [0, 0, 1, 1], [], []>} : vector<256x96xbf16>, vector<96x128xbf16>, vector<256x128xf32> -> vector<256x128xf32>
    %81 = arith.addf %75, %80 : vector<256x128xf32>
    %c2_59 = arith.constant 2 : index
    %c0_60 = arith.constant 0 : index
    %c0_61 = arith.constant 0 : index
    %82 = vector.load %arg15[%c2_59, %c0_60, %c0_61] : memref<18x16x96xbf16, #tpu.memory_space<vmem>>, vector<16x16x96xbf16>
    %83 = vector.shape_cast %82 : vector<16x16x96xbf16> to vector<256x96xbf16>
    %c2_62 = arith.constant 2 : index
    %c0_63 = arith.constant 0 : index
    %c0_64 = arith.constant 0 : index
    %84 = vector.load %arg8[%c2_62, %c0_63, %c0_64] : memref<3x96x128xbf16, #tpu.memory_space<vmem>>, vector<1x96x128xbf16>
    %85 = vector.shape_cast %84 : vector<1x96x128xbf16> to vector<96x128xbf16>
    %cst_65 = arith.constant dense<0.000000e+00> : vector<256x128xf32>
    %86 = tpu.matmul %83, %85, %cst_65 {dimension_numbers = #tpu.dot_dimension_numbers<[1], [0], [0], [1], [0, 0, 1, 1], [], []>} : vector<256x96xbf16>, vector<96x128xbf16>, vector<256x128xf32> -> vector<256x128xf32>
    %87 = arith.addf %81, %86 : vector<256x128xf32>
    %cst_66 = arith.constant dense<0.000000e+00> : vector<128xf32>
    %88 = vector.multi_reduction <add>, %87, %cst_66 [0] : vector<256x128xf32> to vector<128xf32>
    %89 = vector.shape_cast %88 : vector<128xf32> to vector<1x128xf32>
    %cst_67 = arith.constant 3.906250e-03 : f32
    %90 = vector.broadcast %cst_67 : f32 to vector<1x128xf32>
    %91 = arith.mulf %89, %90 : vector<1x128xf32>
    %c0_68 = arith.constant 0 : index
    %c0_69 = arith.constant 0 : index
    %92 = vector.load %arg10[%c0_68, %c0_69] : memref<128x32xf32, #tpu.memory_space<vmem>>, vector<128x32xf32>
    %c0_70 = arith.constant 0 : index
    %c0_71 = arith.constant 0 : index
    %93 = vector.load %arg11[%c0_70, %c0_71] : memref<1x32xf32, #tpu.memory_space<vmem>>, vector<1x32xf32>
    %c0_72 = arith.constant 0 : index
    %c0_73 = arith.constant 0 : index
    %94 = vector.load %arg12[%c0_72, %c0_73] : memref<32x128xf32, #tpu.memory_space<vmem>>, vector<32x128xf32>
    %c0_74 = arith.constant 0 : index
    %c0_75 = arith.constant 0 : index
    %95 = vector.load %arg13[%c0_74, %c0_75] : memref<1x128xf32, #tpu.memory_space<vmem>>, vector<1x128xf32>
    %cst_76 = arith.constant dense<0.000000e+00> : vector<1x32xf32>
    %96 = tpu.matmul %91, %92, %cst_76 {dimension_numbers = #tpu.dot_dimension_numbers<[1], [0], [0], [1], [0, 0, 1, 1], [], []>} : vector<1x128xf32>, vector<128x32xf32>, vector<1x32xf32> -> vector<1x32xf32>
    %97 = arith.addf %96, %93 : vector<1x32xf32>
    %cst_77 = arith.constant 0.000000e+00 : f32
    %98 = vector.broadcast %cst_77 : f32 to vector<1x32xf32>
    %99 = arith.maximumf %97, %98 : vector<1x32xf32>
    %cst_78 = arith.constant dense<0.000000e+00> : vector<1x128xf32>
    %100 = tpu.matmul %99, %94, %cst_78 {dimension_numbers = #tpu.dot_dimension_numbers<[1], [0], [0], [1], [0, 0, 1, 1], [], []>} : vector<1x32xf32>, vector<32x128xf32>, vector<1x128xf32> -> vector<1x128xf32>
    %101 = arith.addf %100, %95 : vector<1x128xf32>
    %102 = arith.negf %101 : vector<1x128xf32>
    %103 = math.exp %102 : vector<1x128xf32>
    %cst_79 = arith.constant 1.000000e+00 : f32
    %104 = vector.broadcast %cst_79 : f32 to vector<1x128xf32>
    %105 = arith.addf %104, %103 : vector<1x128xf32>
    %106 = arith.divf %104, %105 : vector<1x128xf32>
    %107 = vector.broadcast %106 : vector<1x128xf32> to vector<256x128xf32>
    %108 = arith.mulf %87, %107 : vector<256x128xf32>
    %109 = vector.shape_cast %108 : vector<256x128xf32> to vector<16x16x128xf32>
    %c0_80 = arith.constant 0 : index
    %c0_81 = arith.constant 0 : index
    %c0_82 = arith.constant 0 : index
    %c0_83 = arith.constant 0 : index
    %110 = vector.load %arg14[%c0_80, %c0_81, %c0_82, %c0_83] : memref<1x16x16x128xf32, #tpu.memory_space<vmem>>, vector<1x16x16x128xf32>
    %111 = vector.shape_cast %110 : vector<1x16x16x128xf32> to vector<16x16x128xf32>
    %112 = vector.shape_cast %109 : vector<16x16x128xf32> to vector<1x16x16x128xf32>
    tpu.vector_store %arg14[%c0_80, %c0_81, %c0_82, %c0_83], %112 {strides = array<i32>} : memref<1x16x16x128xf32, #tpu.memory_space<vmem>>, vector<1x16x16x128xf32>,
    return
  }
  func.func @transform_0(%arg0: i32) -> (i32, i32, i32, i32) {
    %c0_i32 = arith.constant 0 : i32
    %c0_i32_0 = arith.constant 0 : i32
    %c0_i32_1 = arith.constant 0 : i32
    %c0_i32_2 = arith.constant 0 : i32
    return %arg0, %c0_i32, %c0_i32_0, %c0_i32_1 : i32, i32, i32, i32
  }
  func.func @transform_1(%arg0: i32) -> (i32, i32, i32) {
    %c0_i32 = arith.constant 0 : i32
    %c0_i32_0 = arith.constant 0 : i32
    %c0_i32_1 = arith.constant 0 : i32
    %c0_i32_2 = arith.constant 0 : i32
    return %c0_i32, %c0_i32_0, %c0_i32_1 : i32, i32, i32
  }
  func.func @transform_2(%arg0: i32) -> (i32, i32) {
    %c0_i32 = arith.constant 0 : i32
    %c0_i32_0 = arith.constant 0 : i32
    %c0_i32_1 = arith.constant 0 : i32
    return %c0_i32, %c0_i32_0 : i32, i32
  }
  func.func @transform_3(%arg0: i32) -> (i32, i32) {
    %c0_i32 = arith.constant 0 : i32
    %c0_i32_0 = arith.constant 0 : i32
    %c0_i32_1 = arith.constant 0 : i32
    return %c0_i32, %c0_i32_0 : i32, i32
  }
  func.func @transform_4(%arg0: i32) -> (i32, i32) {
    %c0_i32 = arith.constant 0 : i32
    %c0_i32_0 = arith.constant 0 : i32
    %c0_i32_1 = arith.constant 0 : i32
    return %c0_i32, %c0_i32_0 : i32, i32
  }
  func.func @transform_5(%arg0: i32) -> (i32, i32) {
    %c0_i32 = arith.constant 0 : i32
    %c0_i32_0 = arith.constant 0 : i32
    %c0_i32_1 = arith.constant 0 : i32
    return %c0_i32, %c0_i32_0 : i32, i32
  }
  func.func @transform_6(%arg0: i32) -> (i32, i32) {
    %c0_i32 = arith.constant 0 : i32
    %c0_i32_0 = arith.constant 0 : i32
    %c0_i32_1 = arith.constant 0 : i32
    return %c0_i32, %c0_i32_0 : i32, i32
  }
  func.func @transform_7(%arg0: i32) -> (i32, i32, i32) {
    %c0_i32 = arith.constant 0 : i32
    %c0_i32_0 = arith.constant 0 : i32
    %c0_i32_1 = arith.constant 0 : i32
    %c0_i32_2 = arith.constant 0 : i32
    return %c0_i32, %c0_i32_0, %c0_i32_1 : i32, i32, i32
  }
  func.func @transform_8(%arg0: i32) -> (i32, i32) {
    %c0_i32 = arith.constant 0 : i32
    %c0_i32_0 = arith.constant 0 : i32
    %c0_i32_1 = arith.constant 0 : i32
    return %c0_i32, %c0_i32_0 : i32, i32
  }
  func.func @transform_9(%arg0: i32) -> (i32, i32) {
    %c0_i32 = arith.constant 0 : i32
    %c0_i32_0 = arith.constant 0 : i32
    %c0_i32_1 = arith.constant 0 : i32
    return %c0_i32, %c0_i32_0 : i32, i32
  }
  func.func @transform_10(%arg0: i32) -> (i32, i32) {
    %c0_i32 = arith.constant 0 : i32
    %c0_i32_0 = arith.constant 0 : i32
    %c0_i32_1 = arith.constant 0 : i32
    return %c0_i32, %c0_i32_0 : i32, i32
  }
  func.func @transform_11(%arg0: i32) -> (i32, i32) {
    %c0_i32 = arith.constant 0 : i32
    %c0_i32_0 = arith.constant 0 : i32
    %c0_i32_1 = arith.constant 0 : i32
    return %c0_i32, %c0_i32_0 : i32, i32
  }
  func.func @transform_12(%arg0: i32) -> (i32, i32) {
    %c0_i32 = arith.constant 0 : i32
    %c0_i32_0 = arith.constant 0 : i32
    %c0_i32_1 = arith.constant 0 : i32
    return %c0_i32, %c0_i32_0 : i32, i32
  }
  func.func @transform_13(%arg0: i32) -> (i32, i32, i32, i32) {
    %c0_i32 = arith.constant 0 : i32
    %c0_i32_0 = arith.constant 0 : i32
    %c0_i32_1 = arith.constant 0 : i32
    %c0_i32_2 = arith.constant 0 : i32
    return %arg0, %c0_i32, %c0_i32_0, %c0_i32_1 : i32, i32, i32, i32
  }
}

</mosaic_0001>

<bundles_post_ra>
// kernel: textfusenet_pallas.1
= control target key start
LH: loop header
LB: loop body
LE: loop exit
PB: predicated region body
PF: predicated region fallthrough
CT: control target
= control target key end

     0   :  { %s6454_s0 = inlined_call_operand.vmem [shape: f32[2,16,16,4], index: 0, kind: input, shape index: {}]   ;;  %s6455_s1 = inlined_call_operand.vmem [shape: f32[3,12,32], index: 1, kind: input, shape index: {}]   ;;  %s6456_s2 = inlined_call_operand.vmem [shape: f32[1,32], index: 2, kind: input, shape index: {}]   ;;  %s6457_s3 = inlined_call_operand.vmem [shape: f32[32,8], index: 3, kind: input, shape index: {}]   ;;  %s6458_s4 = inlined_call_operand.vmem [shape: f32[1,8], index: 4, kind: input, shape index: {}]   ;;  %s6459_s5 = inlined_call_operand.vmem [shape: f32[8,32], index: 5, kind: input, shape index: {}]   ;;  %s6460_s6 = inlined_call_operand.vmem [shape: f32[1,32], index: 6, kind: input, shape index: {}]   ;;  %s6461_s7 = inlined_call_operand.vmem [shape: bf16[3,96,128], index: 7, kind: input, shape index: {}]   ;;  %s6462_s8 = inlined_call_operand.vmem [shape: f32[1,128], index: 8, kind: input, shape index: {}]   ;;  %s6463_s9 = inlined_call_operand.vmem [shape: f32[128,32], index: 9, kind: input, shape index: {}]   ;;  %s6464_s10 = inlined_call_operand.vmem [shape: f32[1,32], index: 10, kind: input, shape index: {}]   ;;  %s6465_s11 = inlined_call_operand.vmem [shape: f32[32,128], index: 11, kind: input, shape index: {}]   ;;  %s6466_s12 = inlined_call_operand.vmem [shape: f32[1,128], index: 12, kind: input, shape index: {}]   ;;  %s6467_s13 = inlined_call_operand.hbm [shape: f32[2,16,16,128], index: 13, kind: output, shape index: {}]  }
   0x1   :  { %6481 = sst [smem:[#allocation17_spill]] %s6454_s0 }
   0x2   :  { %6482 = sst [smem:[#allocation18_spill]] %s6455_s1 }
   0x3   :  { %6483 = sst [smem:[#allocation19_spill]] %s6456_s2 }
   0x4   :  { %6484 = sst [smem:[#allocation20_spill]] %s6457_s3 }
   0x5   :  { %18 = vsyncpa [#allocation4], 0 }
   0x6   :  { %20 = vsyncpa [#allocation4 + $0x1], 0  ;;  %s4386_s25 = smov 0   ;;  %s4388_s26 = smov 0  }
   0x7   :  { %s4390_s27 = smov 0   ;;  %s4392_s28 = smov 0  }
   0x8 LB: > { %s4407_s29 = sadd.s32 4294967295, %s4307_s28   ;;  %s3505_s30 = sadd.s32 4294967294, %s4307_s28   ;;  %s4307_s28 = sphi %s4392_s28, %s6529_s28   ;;  %s4303_s27 = sphi %s4390_s27, %s6528_s27   ;;  %s4299_s26 = sphi %s4388_s26, %s6527_s26   ;;  %s4295_s25 = sphi %s4386_s25, %s6526_s25  }
   0x9   : > { %s4411_s14 = sadd.s32 1, %s4307_s28   ;;  %s311_s15 = sadd.s32 1, %s4303_s27 }
   0xa   : > { %s308_s16 = ssub.s32 %s4307_s28, %s4411_s14  ;;  %p321_p0 = scmp.ne.s32.totalorder %s4303_s27, %s4299_s26 }
   0xb   : > { %p309_p1 = scmp.eq.s32.totalorder %s308_s16, 0  ;;  %p322_p2 = scmp.eq.s32.totalorder %s4407_s29, 1 }
   0xc   : > { %p327_p3 = scmp.ne.s32.totalorder %s4299_s26, %s4295_s25  ;;  %p328_p4 = scmp.eq.s32.totalorder %s3505_s30, 1 }
   0xd   : > { %s4422_s17 = scalar_select %p309_p1, %s4303_s27, %s311_s15  }
   0xe   : > { %p4424_p5 = por %p322_p2, %p321_p0  ;;  %p4428_p6 = por %p328_p4, %p327_p3 }
   0xf   : > { %p3508_p7 = scmp.ge.s32.totalorder %s4307_s28, 1  ;;  %p390_p8 = scmp.lt.s32.totalorder %s4307_s28, 3 }
  0x11   : > { %p391_p9 = pnand %p3508_p7, %p390_p8 }
  0x13   : > { %394 = sbr.rel (%p391_p9) target bundleno = 1839 (0x72f), region = 72 }
  0x18   : > { %p434_p10 = scmp.lt.s32.totalorder %s4407_s29, 1  ;;  %s6487_s0 = sld [smem:[#allocation17_spill]]  ;;  %vm607_vm0 = vcmask 1046528   ;;  %vm510_vm1 = vcmask 1040384   ;;  %vm1063_vm2 = vcmask 1043456   ;;  %vm896_vm3 = vcmask 31744  }
  0x19   : > { %s6468_s30 = smov 4   ;;  %s6470_s15 = smov 8   ;;  %vm929_vm4 = vcmask 64512   ;;  %vm969_vm5 = vcmask 97280   ;;  %vm1520_vm6 = vcmask 261120   ;;  %vm440_vm11 = vcmask 781312  }
  0x1a   : > { %s435_s20 = scalar_select %p434_p10, %s4407_s29, 1  ;;  %vm2408_vm12 = vcmask 785408   ;;  %vm2145_vm13 = vcmask 523264  }
  0x1b   : > { %s6488_s1 = sld [smem:[#allocation18_spill]]  ;;  %s4313_s22 = smov 64  }
  0x1c   : > { %s3957_s21 = sshll.u32 %s435_s20, 8  ;;  %s6491_s2 = sld [smem:[#allocation19_spill]] }
  0x1d   : > { %s6501_s3 = sld [smem:[#allocation20_spill]]  ;;  %s431_s20 = sand.u32 1, %s4299_s26  }
  0x1e   : > { %s4439_s24 = scalar_lea.vmem %s6487_s0, %s3957_s21  ;;  %s6490_s21 = smov 8  }
  0x1f   : > { %v4442_v0 = vld [vmem:[%s4439_s24 + $0x88] sm:$0xff]  ;;  %v4445_v1 = vld [vmem:[%s4439_s24 + $0x80] sm:$0xff]  ;;  %v4454_v4 = vld [vmem:[%s4439_s24 + $0x90] sm:$0xff] }
  0x20   : > { %722 = vrot.lane.b32.xlu1 %v4442_v0, %s6468_s30  ;;  %720 = vrot.lane.b32.xlu0 %v4445_v1, %s6468_s30  ;;  %v632_v2 = vrot.slane %v4445_v1, 1  ;;  %v633_v3 = vrot.slane %v4442_v0, 1  ;;  %v4457_v5 = vld [vmem:[%s4439_s24 + $0x98] sm:$0xff]  ;;  %v635_v6 = vrot.slane %v4454_v4, 1  ;;  %v4471_v12 = vld [vmem:[%s4439_s24 + $0xa8] sm:$0xff]  ;;  %v536_v48 = vrot.slane %v4442_v0, 7 }
  0x21   : > { %724 = vrot.lane.b32.xlu2 %v4454_v4, %s6468_s30  ;;  %v636_v9 = vrot.slane %v4457_v5, 1  ;;  %v4474_v13 = vld [vmem:[%s4439_s24 + $0xa0] sm:$0xff]  ;;  %v639_v14 = vrot.slane %v4471_v12, 1  ;;  %v4485_v17 = vld [vmem:[%s4439_s24 + $0xb0] sm:$0xff]  ;;  %v4488_v18 = vld [vmem:[%s4439_s24 + $0xb8] sm:$0xff]  ;;  %v535_v51 = vrot.slane %v4445_v1, 7 }
  0x22   : > { %v680_v7 = vsel %vm607_vm0, %v633_v3, 0.0  ;;  %v634_v8 = vsel %vm607_vm0, %v632_v2, %v633_v3  ;;  %v638_v15 = vrot.slane %v4474_v13, 1  ;;  %v641_v20 = vrot.slane %v4485_v17, 1  ;;  %v4502_v23 = vld [vmem:[%s4439_s24 + $0xc0] sm:$0xff]  ;;  %v4505_v24 = vld [vmem:[%s4439_s24 + $0xc8] sm:$0xff]  ;;  %v4519_v30 = vld [vmem:[%s4439_s24 + $0xd8] sm:$0xff] }
  0x23   : > { %v637_v10 = vsel %vm607_vm0, %v635_v6, %v636_v9  ;;  %v681_v11 = vsel %vm607_vm0, %v636_v9, 0.0  ;;  %v682_v19 = vsel %vm607_vm0, %v639_v14, 0.0  ;;  %v642_v21 = vrot.slane %v4488_v18, 1  ;;  %v4522_v31 = vld [vmem:[%s4439_s24 + $0xd0] sm:$0xff]  ;;  %v4533_v35 = vld [vmem:[%s4439_s24 + $0xe0] sm:$0xff]  ;;  %v4536_v36 = vld [vmem:[%s4439_s24 + $0xe8] sm:$0xff] }
  0x24   : > { %v640_v16 = vsel %vm607_vm0, %v638_v15, %v639_v14  ;;  %v644_v25 = vrot.slane %v4502_v23, 1  ;;  %v645_v27 = vrot.slane %v4505_v24, 1  ;;  %v648_v32 = vrot.slane %v4519_v30, 1  ;;  %v4550_v41 = vld [vmem:[%s4439_s24 + $0x10] sm:$0xff]  ;;  %v4553_v42 = vld [vmem:[%s4439_s24 + $0x18] sm:$0xff]  ;;  %v4568_v49 = vld [vmem:[%s4439_s24 + $0x20] sm:$0xff] }
  0x25   : > { %v643_v22 = vsel %vm607_vm0, %v641_v20, %v642_v21  ;;  %v683_v26 = vsel %vm607_vm0, %v642_v21, 0.0  ;;  %v647_v33 = vrot.slane %v4522_v31, 1  ;;  %v650_v38 = vrot.slane %v4533_v35, 1  ;;  %v4571_v50 = vld [vmem:[%s4439_s24 + $0x28] sm:$0xff]  ;;  %v4588_v56 = vld [vmem:[%s4439_s24 + $0x30] sm:$0xff]  ;;  %v4591_v57 = vld [vmem:[%s4439_s24 + $0x38] sm:$0xff] }
  0x26   : > { %v646_v28 = vsel %vm607_vm0, %v644_v25, %v645_v27  ;;  %v684_v29 = vsel %vm607_vm0, %v645_v27, 0.0  ;;  %v685_v37 = vsel %vm607_vm0, %v648_v32, 0.0  ;;  %v651_v39 = vrot.slane %v4536_v36, 1  ;;  %v968_v59 = vld [vmem:[%s6488_s1 + $0x8] sm:$0xf]  ;;  %v967_v62 = vld [vmem:[%s6488_s1] sm:$0xff] }
  0x27   : > { %v649_v34 = vsel %vm607_vm0, %v647_v33, %v648_v32  ;;  %v611_v43 = vrot.slane %v4550_v41, 1  ;;  %v612_v45 = vrot.slane %v4553_v42, 1  ;;  %v614_v52 = vrot.slane %v4568_v49, 1  ;;  %4025 = vmatpush.msk.msra.mxu2 %vm1063_vm2, %v968_v59  ;;  %3512 = vmatpush.msk.msra.mxu0 %vm1063_vm2, %v968_v59  ;;  %v3544_v63 = vld [vmem:[%s6488_s1 + $0x18] sm:$0xf]  ;;  %v3543_v6 = vld [vmem:[%s6488_s1 + $0x10] sm:$0xff] }
  0x28   : > { %834 = vrot.lane.b32.xlu1 %v680_v7, %s6470_s15  ;;  %832 = vrot.lane.b32.xlu0 %v634_v8, %s6470_s15  ;;  %v652_v40 = vsel %vm607_vm0, %v650_v38, %v651_v39  ;;  %v686_v44 = vsel %vm607_vm0, %v651_v39, 0.0  ;;  %v615_v53 = vrot.slane %v4571_v50, 1  ;;  %v4584_v54 = vsel %vm510_vm1, %v535_v51, %v536_v48  ;;  %v3579_v3 = vld [vmem:[%s6488_s1 + $0x28] sm:$0xf]  ;;  %v4628_v9 = vld [vmem:[%s4439_s24 + $0x40] sm:$0xff] }
  0x29   : > { %836 = vrot.lane.b32.xlu2 %v637_v10, %s6470_s15  ;;  %v613_v46 = vsel %vm607_vm0, %v611_v43, %v612_v45  ;;  %v673_v47 = vsel %vm607_vm0, %v612_v45, 0.0  ;;  %v617_v60 = vrot.slane %v4588_v56, 1  ;;  %v618_v61 = vrot.slane %v4591_v57, 1  ;;  %4026 = vmatpush.msra.mxu2 %v967_v62  ;;  %v4631_v10 = vld [vmem:[%s4439_s24 + $0x48] sm:$0xff]  ;;  %v4655_v27 = vld [vmem:[%s4439_s24 + $0x58] sm:$0xff]  ;;  %v4668_v38 = vld [vmem:[%s4439_s24 + $0x60] sm:$0xff] }
  0x2a   : > { %v616_v55 = vsel %vm607_vm0, %v614_v52, %v615_v53  ;;  %v674_v58 = vsel %vm607_vm0, %v615_v53, 0.0  ;;  %v538_v0 = vrot.slane %v4454_v4, 7  ;;  %4027 = vmatpush.msk.msra.mxu3 %vm1063_vm2, %v3544_v63  ;;  %1082 = vmatpush.msra.mxu0 %v967_v62  ;;  %v539_v4 = vrot.slane %v4457_v5, 7  ;;  %v4671_v39 = vld [vmem:[%s4439_s24 + $0x68] sm:$0xff] }
  0x2b   : > { %3545 = vmatpush.msk.msra.mxu1 %vm1063_vm2, %v3544_v63  ;;  %v619_v7 = vsel %vm607_vm0, %v617_v60, %v618_v61  ;;  %3580 = vmatpush.msk.msrb.mxu2 %vm1063_vm2, %v3579_v3  ;;  %v620_v14 = vrot.slane %v4628_v9, 1  ;;  %v627_v45 = vrot.slane %v4671_v39, 1  ;;  %v548_v53 = vrot.slane %v4505_v24, 7 }
  0x2c   : > { %4028 = vmatpush.msra.mxu3 %v3543_v6  ;;  %v600_v8 = vsel %vm510_vm1, 0.0, %v538_v0  ;;  %v547_v59 = vrot.slane %v4502_v23, 7 }
  0x2d   : > { %1239 = vmatpush.msra.mxu1 %v3543_v6 }
  0x30   : > { %838 = vrot.lane.b32.xlu1 %v681_v11, %s6470_s15  ;;  %726 = vrot.lane.b32.xlu0 %v4457_v5, %s6468_s30  ;;  %v540_v5 = vsel %vm510_vm1, %v538_v0, %v539_v4 }
  0x31   : > { %728 = vrot.lane.b32.xlu2 %v4474_v13, %s6468_s30 }
  0x38   : > { %730 = vrot.lane.b32.xlu1 %v4471_v12, %s6468_s30  ;;  %840 = vrot.lane.b32.xlu0 %v640_v16, %s6470_s15  ;;  %v675_v16 = vsel %vm607_vm0, %v618_v61, 0.0  ;;  %v541_v61 = vrot.slane %v4474_v13, 7 }
  0x39   : > { %842 = vrot.lane.b32.xlu2 %v682_v19, %s6470_s15  ;;  %v621_v19 = vrot.slane %v4631_v10, 1 }
  0x3b   : > { %v622_v21 = vsel %vm607_vm0, %v620_v14, %v621_v19  ;;  %v676_v25 = vsel %vm607_vm0, %v621_v19, 0.0 }
  0x40   : > { %844 = vrot.lane.b32.xlu1 %v643_v22, %s6470_s15  ;;  %732 = vrot.lane.b32.xlu0 %v4485_v17, %s6468_s30 }
  0x41   : > { %734 = vrot.lane.b32.xlu2 %v4488_v18, %s6468_s30 }
  0x48   : > { %736 = vrot.lane.b32.xlu1 %v4502_v23, %s6468_s30  ;;  %846 = vrot.lane.b32.xlu0 %v683_v26, %s6470_s15  ;;  %v4652_v26 = vld [vmem:[%s4439_s24 + $0x50] sm:$0xff] }
  0x49   : > { %848 = vrot.lane.b32.xlu2 %v646_v28, %s6470_s15  ;;  %v623_v28 = vrot.slane %v4652_v26, 1 }
  0x50   : > { %850 = vrot.lane.b32.xlu1 %v684_v29, %s6470_s15  ;;  %738 = vrot.lane.b32.xlu0 %v4505_v24, %s6468_s30  ;;  %v624_v29 = vrot.slane %v4655_v27, 1 }
  0x51   : > { %740 = vrot.lane.b32.xlu2 %v4522_v31, %s6468_s30 }
  0x52   : > { %v677_v43 = vsel %vm607_vm0, %v624_v29, 0.0 }
  0x58   : > { %742 = vrot.lane.b32.xlu1 %v4519_v30, %s6468_s30  ;;  %852 = vrot.lane.b32.xlu0 %v649_v34, %s6470_s15 }
  0x59   : > { %854 = vrot.lane.b32.xlu2 %v685_v37, %s6470_s15  ;;  %v625_v37 = vsel %vm607_vm0, %v623_v28, %v624_v29  ;;  %v544_v29 = vrot.slane %v4485_v17, 7  ;;  %v3578_v17 = vld [vmem:[%s6488_s1 + $0x20] sm:$0xff]  ;;  %s4265_s1 = scalar_lea.hbm %s6467_s13, 512 }
  0x5a   : > { %1390 = vmatpush.msrb.mxu2 %v3578_v17  ;;  %v524_v17 = vrot.slane %v4631_v10, 7 }
  0x60   : > { %856 = vrot.lane.b32.xlu1 %v652_v40, %s6470_s15  ;;  %744 = vrot.lane.b32.xlu0 %v4533_v35, %s6468_s30  ;;  %v599_v40 = vsel %vm510_vm1, 0.0, %v535_v51 }
  0x61   : > { %746 = vrot.lane.b32.xlu2 %v4536_v36, %s6468_s30 }
  0x68   : > { %858 = vrot.lane.b32.xlu0 %v686_v44, %s6470_s15  ;;  %692 = vrot.lane.b32.xlu1 %v4550_v41, %s6468_s30  ;;  %v626_v44 = vrot.slane %v4668_v38, 1 }
  0x69   : > { %804 = vrot.lane.b32.xlu2 %v613_v46, %s6470_s15 }
  0x6a   : > { %v628_v52 = vsel %vm607_vm0, %v626_v44, %v627_v45  ;;  %v602_v44 = vsel %vm510_vm1, 0.0, %v544_v29 }
  0x70   : > { %694 = vrot.lane.b32.xlu0 %v4553_v42, %s6468_s30  ;;  %806 = vrot.lane.b32.xlu1 %v673_v47, %s6470_s15 }
  0x71   : > { %696 = vrot.lane.b32.xlu2 %v4568_v49, %s6468_s30 }
  0x78   : > { %808 = vrot.lane.b32.xlu0 %v616_v55, %s6470_s15  ;;  %698 = vrot.lane.b32.xlu1 %v4571_v50, %s6468_s30  ;;  %s6489_s30 = smov 4   ;;  %v4694_v55 = vld [vmem:[%s4439_s24] sm:$0xff] }
  0x79   : > { %810 = vrot.lane.b32.xlu2 %v674_v58, %s6470_s15  ;;  %v4697_v58 = vld [vmem:[%s4439_s24 + $0x8] sm:$0xff]  ;;  %v608_v62 = vrot.slane %v4694_v55, 1 }
  0x7a   : > { %v609_v24 = vrot.slane %v4697_v58, 1 }
  0x7b   : > { %v725_v2 = vpop.permute.xlu2 %724 }
  0x7c   : > { %v915_v11 = vsel %vm896_vm3, %v600_v8, %v725_v2  ;;  %v610_v4 = vsel %vm607_vm0, %v608_v62, %v609_v24  ;;  %v678_v8 = vsel %vm607_vm0, %v627_v45, 0.0  ;;  %v672_v28 = vsel %vm607_vm0, %v609_v24, 0.0 }
  0x80   : > { %700 = vrot.lane.b32.xlu0 %v4588_v56, %s6489_s30  ;;  %812 = vrot.lane.b32.xlu1 %v619_v7, %s6490_s21  ;;  %v601_v7 = vsel %vm510_vm1, 0.0, %v541_v61 }
  0x81   : > { %702 = vrot.lane.b32.xlu2 %v4591_v57, %s6489_s30 }
  0x83   : > { %v837_v15 = vpop.permute.xlu2 %836 }
  0x84   : > { %v4641_v20 = vsel %vm929_vm4, %v915_v11, %v837_v15  ;;  %v542_v11 = vrot.slane %v4471_v12, 7 }
  0x85   : > { %3564 = vmatmul.msk.f32.vlgmr.msra.gmra.mxu3 %vm969_vm5, %v4641_v20 }
  0x86   : > { %v543_v19 = vsel %vm510_vm1, %v541_v61, %v542_v11 }
  0x88   : > { %814 = vrot.lane.b32.xlu0 %v675_v16, %s6490_s21  ;;  %704 = vrot.lane.b32.xlu1 %v4628_v9, %s6489_s30 }
  0x89   : > { %816 = vrot.lane.b32.xlu2 %v622_v21, %s6490_s21  ;;  %v4748_v21 = vld [vmem:[%s4439_s24 + $0x70] sm:$0xff] }
  0x8b   : > { %v729_v22 = vpop.permute.xlu2 %728 }
  0x90   : > { %706 = vrot.lane.b32.xlu0 %v4631_v10, %s6489_s30  ;;  %818 = vrot.lane.b32.xlu1 %v676_v25, %s6490_s21 }
  0x91   : > { %708 = vrot.lane.b32.xlu2 %v4652_v26, %s6489_s30 }
  0x92   : > { %v723_v32 = vpop.permute.xlu1 %722  ;;  %v721_v33 = vpop.permute.xlu0 %720 }
  0x93   : > { %v4664_v34 = vpop.permute.xlu2 %842  ;;  %v913_v46 = vsel %vm896_vm3, %v599_v40, %v721_v33  ;;  %v914_v60 = vsel %vm896_vm3, %v4584_v54, %v723_v32  ;;  %v4713_v54 = vsel %vm510_vm1, %v547_v59, %v548_v53  ;;  %v629_v32 = vrot.slane %v4748_v21, 1 }
  0x94   : > { %v545_v53 = vrot.slane %v4488_v18, 7 }
  0x98   : > { %820 = vrot.lane.b32.xlu0 %v625_v37, %s6490_s21  ;;  %710 = vrot.lane.b32.xlu1 %v4655_v27, %s6489_s30 }
  0x99   : > { %822 = vrot.lane.b32.xlu2 %v677_v43, %s6490_s21 }
  0x9a   : > { %v835_v47 = vpop.permute.xlu1 %834  ;;  %v833_v48 = vpop.permute.xlu0 %832 }
  0x9b   : > { %v4685_v1 = vsel %vm929_vm4, %v913_v46, %v833_v48  ;;  %v4689_v51 = vpop.permute.xlu2 %734  ;;  %v4717_v3 = vsel %vm929_vm4, %v914_v60, %v835_v47  ;;  %v4782_v47 = vld [vmem:[%s4439_s24 + $0xf8] sm:$0xff] }
  0x9c   : > { %3529 = vmatmul.msk.f32.vlgmr.msra.gmra.mxu2 %vm969_vm5, %v4685_v1  ;;  %v654_v61 = vrot.slane %v4782_v47, 1 }
  0xa0   : > { %712 = vrot.lane.b32.xlu0 %v4668_v38, %s6489_s30  ;;  %824 = vrot.lane.b32.xlu1 %v628_v52, %s6490_s21 }
  0xa1   : > { %688 = vrot.lane.b32.xlu2 %v4694_v55, %s6489_s30 }
  0xa2   : > { %v839_v63 = vpop.permute.xlu1 %838  ;;  %v727_v0 = vpop.permute.xlu0 %726 }
  0xa3   : > { %v916_v2 = vsel %vm896_vm3, %v540_v5, %v727_v0  ;;  %v4724_v6 = vpop.permute.xlu2 %848  ;;  %v917_v5 = vsel %vm896_vm3, %v601_v7, %v729_v22  ;;  %v4751_v22 = vld [vmem:[%s4439_s24 + $0x78] sm:$0xff]  ;;  %v546_v0 = vsel %vm510_vm1, %v544_v29, %v545_v53  ;;  %v515_v7 = vrot.slane %v4553_v42, 7 }
  0xa4   : > { %3530 = vmatmul.msk.f32.gmra.mxu2 %vm969_vm5, %v4717_v3  ;;  %v4722_v13 = vsel %vm929_vm4, %v916_v2, %v839_v63  ;;  %v630_v33 = vrot.slane %v4751_v22, 1 }
  0xa5   : > { %3565 = vmatmul.msk.f32.gmra.mxu3 %vm969_vm5, %v4722_v13 }
  0xa6   : > { %v631_v46 = vsel %vm607_vm0, %v629_v32, %v630_v33  ;;  %v679_v52 = vsel %vm607_vm0, %v630_v33, 0.0  ;;  %v550_v32 = vrot.slane %v4522_v31, 7  ;;  %v551_v31 = vrot.slane %v4519_v30, 7 }
  0xa8   : > { %714 = vrot.lane.b32.xlu0 %v4671_v39, %s6489_s30  ;;  %800 = vrot.lane.b32.xlu1 %v610_v4, %s6490_s21  ;;  %v920_v4 = vsel %vm896_vm3, %v546_v0, %v4689_v51  ;;  %v603_v51 = vsel %vm510_vm1, 0.0, %v547_v59 }
  0xa9   : > { %826 = vrot.lane.b32.xlu2 %v678_v8, %s6490_s21  ;;  %v514_v8 = vrot.slane %v4550_v41, 7 }
  0xaa   : > { %v731_v14 = vpop.permute.xlu1 %730  ;;  %v841_v15 = vpop.permute.xlu0 %840 }
  0xab   : > { %v4738_v16 = vsel %vm929_vm4, %v917_v5, %v841_v15  ;;  %v4743_v12 = vpop.permute.xlu2 %740  ;;  %v918_v25 = vsel %vm896_vm3, %v543_v19, %v731_v14  ;;  %v4819_v42 = vsel %vm510_vm1, %v514_v8, %v515_v7  ;;  %v687_v15 = vsel %vm607_vm0, %v654_v61, 0.0 }
  0xac   : > { %3531 = vmatmul.msk.f32.gmra.mxu2 %vm969_vm5, %v4641_v20  ;;  %v4764_v43 = vsel %vm929_vm4, %v918_v25, %v4664_v34  ;;  %v4779_v34 = vld [vmem:[%s4439_s24 + $0xf0] sm:$0xff]  ;;  %s4312_s24 = smov 32  }
  0xad   : > { %3566 = vmatmul.msk.f32.gmra.mxu3 %vm969_vm5, %v4738_v16  ;;  %v653_v60 = vrot.slane %v4779_v34, 1 }
  0xaf   : > { %v655_v18 = vsel %vm607_vm0, %v653_v60, %v654_v61  ;;  %v552_v61 = vsel %vm510_vm1, %v550_v32, %v551_v31 }
  0xb0   : > { %690 = vrot.lane.b32.xlu0 %v4697_v58, %s6489_s30  ;;  %716 = vrot.lane.b32.xlu1 %v4748_v21, %s6489_s30 }
  0xb1   : > { %802 = vrot.lane.b32.xlu2 %v672_v28, %s6490_s21 }
  0xb2   : > { %v845_v37 = vpop.permute.xlu1 %844  ;;  %v733_v40 = vpop.permute.xlu0 %732 }
  0xb3   : > { %v4770_v45 = vpop.permute.xlu2 %854  ;;  %v919_v48 = vsel %vm896_vm3, %v602_v44, %v733_v40 }
  0xb4   : > { %3532 = vmatmul.msk.f32.gmra.mxu2 %vm969_vm5, %v4722_v13  ;;  %v4793_v63 = vsel %vm929_vm4, %v919_v48, %v845_v37 }
  0xb5   : > { %3567 = vmatmul.msk.f32.gmra.mxu3 %vm969_vm5, %v4764_v43 }
  0xb8   : > { %828 = vrot.lane.b32.xlu0 %v631_v46, %s6490_s21  ;;  %718 = vrot.lane.b32.xlu1 %v4751_v22, %s6489_s30  ;;  %v523_v46 = vrot.slane %v4628_v9, 7 }
  0xb9   : > { %830 = vrot.lane.b32.xlu2 %v679_v52, %s6490_s21 }
  0xba   : > { %v737_v62 = vpop.permute.xlu1 %736  ;;  %v847_v24 = vpop.permute.xlu0 %846  ;;  %v4870_v30 = vsel %vm510_vm1, %v523_v46, %v524_v17 }
  0xbb   : > { %v4802_v2 = vpop.permute.xlu2 %746  ;;  %v4812_v14 = vsel %vm929_vm4, %v920_v4, %v847_v24  ;;  %v921_v19 = vsel %vm896_vm3, %v603_v51, %v737_v62 }
  0xbc   : > { %3533 = vmatmul.msk.f32.gmra.mxu2 %vm969_vm5, %v4738_v16  ;;  %v4835_v23 = vsel %vm929_vm4, %v921_v19, %v4724_v6  ;;  %v604_v6 = vsel %vm510_vm1, 0.0, %v550_v32 }
  0xbd   : > { %3568 = vmatmul.msk.f32.gmra.mxu3 %vm969_vm5, %v4793_v63 }
  0xc0   : > { %748 = vrot.lane.b32.xlu0 %v4779_v34, %s6489_s30  ;;  %860 = vrot.lane.b32.xlu1 %v655_v18, %s6490_s21 }
  0xc1   : > { %750 = vrot.lane.b32.xlu2 %v4782_v47, %s6489_s30  ;;  %s3509_s30 = sshll.u32 %s431_s20, 8 }
  0xc2   : > { %v851_v11 = vpop.permute.xlu1 %850  ;;  %v739_v5 = vpop.permute.xlu0 %738 }
  0xc3   : > { %v4830_v25 = vpop.permute.xlu2 %804  ;;  %v922_v59 = vsel %vm896_vm3, %v4713_v54, %v739_v5  ;;  %v923_v54 = vsel %vm896_vm3, %v604_v6, %v4743_v12  ;;  %v553_v12 = vrot.slane %v4533_v35, 7  ;;  %v554_v35 = vrot.slane %v4536_v36, 7 }
  0xc4   : > { %3534 = vmatmul.msk.f32.gmra.mxu2 %vm969_vm5, %v4764_v43  ;;  %v4847_v44 = vsel %vm929_vm4, %v922_v59, %v851_v11 }
  0xc5   : > { %3569 = vmatmul.msk.f32.gmra.mxu3 %vm969_vm5, %v4812_v14  ;;  %v605_v18 = vsel %vm510_vm1, 0.0, %v553_v12  ;;  %v555_v51 = vsel %vm510_vm1, %v553_v12, %v554_v35  ;;  %v529_v12 = vrot.slane %v4668_v38, 7 }
  0xc6   : > { %v926_v36 = vsel %vm896_vm3, %v555_v51, %v4802_v2 }
  0xc8   : > { %862 = vrot.lane.b32.xlu0 %v687_v15, %s6490_s21  ;;  %v6472_v15 = vmov 0.0  }
  0xc9   : > { %1083 = vmatmul.f32.vlgmr.msra.gmra.mxu0 %v6472_v15 }
  0xca   : > { %v743_v28 = vpop.permute.xlu1 %742  ;;  %v853_v29 = vpop.permute.xlu0 %852 }
  0xcb   : > { %v4844_v33 = vpop.permute.xlu2 %696  ;;  %v4860_v53 = vsel %vm929_vm4, %v923_v54, %v853_v29  ;;  %v924_v10 = vsel %vm896_vm3, %v552_v61, %v743_v28  ;;  %v592_v54 = vsel %vm510_vm1, 0.0, %v514_v8 }
  0xcc   : > { %3535 = vmatmul.msk.f32.gmra.mxu2 %vm969_vm5, %v4793_v63  ;;  %v4878_v0 = vsel %vm929_vm4, %v924_v10, %v4770_v45 }
  0xcd   : > { %3570 = vmatmul.msk.f32.gmra.mxu3 %vm969_vm5, %v4835_v23 }
  0xd1   : > { %1086 = vmatmul.f32.gmra.mxu0 %v6472_v15 }
  0xd2   : > { %v857_v37 = vpop.permute.xlu1 %856  ;;  %v745_v40 = vpop.permute.xlu0 %744 }
  0xd3   : > { %v4862_v60 = vpop.permute.xlu2 %810  ;;  %v925_v4 = vsel %vm896_vm3, %v605_v18, %v745_v40  ;;  %v517_v18 = vrot.slane %v4568_v49, 7  ;;  %v530_v49 = vrot.slane %v4671_v39, 7 }
  0xd4   : > { %3536 = vmatmul.msk.f32.gmra.mxu2 %vm969_vm5, %v4812_v14  ;;  %v4892_v45 = vsel %vm929_vm4, %v925_v4, %v857_v37 }
  0xd5   : > { %3571 = vmatmul.msk.f32.gmra.mxu3 %vm969_vm5, %v4847_v44  ;;  %v593_v38 = vsel %vm510_vm1, 0.0, %v517_v18 }
  0xda   : > { %v859_v48 = vpop.permute.xlu0 %858  ;;  %v693_v52 = vpop.permute.xlu1 %692 }
  0xdb   : > { %v4885_v7 = vpop.permute.xlu2 %702  ;;  %v4909_v59 = vsel %vm929_vm4, %v926_v36, %v859_v48  ;;  %v899_v17 = vsel %vm896_vm3, %v592_v54, %v693_v52  ;;  %v597_v52 = vsel %vm510_vm1, 0.0, %v529_v12 }
  0xdc   : > { %3537 = vmatmul.msk.f32.gmra.mxu2 %vm969_vm5, %v4835_v23  ;;  %v4934_v48 = vsel %vm929_vm4, %v899_v17, %v4830_v25  ;;  %v511_v25 = vrot.slane %v4694_v55, 7  ;;  %v901_v55 = vsel %vm896_vm3, %v593_v38, %v4844_v33  ;;  %v532_v33 = vrot.slane %v4748_v21, 7 }
  0xdd   : > { %3572 = vmatmul.msk.f32.gmra.mxu3 %vm969_vm5, %v4860_v53 }
  0xe2   : > { %v695_v62 = vpop.permute.xlu0 %694  ;;  %v807_v24 = vpop.permute.xlu1 %806 }
  0xe3   : > { %v4902_v19 = vpop.permute.xlu2 %816  ;;  %v900_v8 = vsel %vm896_vm3, %v4819_v42, %v695_v62  ;;  %v591_v42 = vsel %vm510_vm1, 0.0, %v511_v25  ;;  %v518_v62 = vrot.slane %v4571_v50, 7 }
  0xe4   : > { %3538 = vmatmul.msk.f32.gmra.mxu2 %vm969_vm5, %v4847_v44  ;;  %v4949_v4 = vsel %vm929_vm4, %v900_v8, %v807_v24  ;;  %v531_v8 = vsel %vm510_vm1, %v529_v12, %v530_v49  ;;  %v512_v12 = vrot.slane %v4697_v58, 7  ;;  %v598_v58 = vsel %vm510_vm1, 0.0, %v532_v33 }
  0xe5   : > { %3573 = vmatmul.msk.f32.gmra.mxu3 %vm969_vm5, %v4878_v0 }
  0xea   : > { %v809_v11 = vpop.permute.xlu0 %808  ;;  %v4889_v5 = vpop.permute.xlu1 %698 }
  0xeb   : > { %v4916_v32 = vpop.permute.xlu2 %708 }
  0xec   : > { %3539 = vmatmul.msk.f32.gmra.mxu2 %vm969_vm5, %v4860_v53 }
  0xed   : > { %3574 = vmatmul.msk.f32.gmra.mxu3 %vm969_vm5, %v4892_v45 }
  0xf2   : > { %v4904_v28 = vpop.permute.xlu0 %700  ;;  %v4906_v29 = vpop.permute.xlu1 %812 }
  0xf3   : > { %v4927_v31 = vpop.permute.xlu2 %822 }
  0xf4   : > { %3540 = vmatmul.msk.f32.gmra.mxu2 %vm969_vm5, %v4878_v0 }
  0xf5   : > { %3575 = vmatmul.msk.f32.gmra.mxu3 %vm969_vm5, %v4909_v59 }
  0xfa   : > { %v4918_v2 = vpop.permute.xlu0 %814  ;;  %v4920_v37 = vpop.permute.xlu1 %704 }
  0xfb   : > { %v689_v41 = vpop.permute.xlu2 %688 }
  0xfc   : > { %3541 = vmatmul.msk.f32.gmra.mxu2 %vm969_vm5, %v4892_v45  ;;  %v897_v17 = vsel %vm896_vm3, %v591_v42, %v689_v41  ;;  %v526_v42 = vrot.slane %v4652_v26, 7 }
 0x102   : > { %v707_v40 = vpop.permute.xlu0 %706  ;;  %v819_v6 = vpop.permute.xlu1 %818 }
 0x103   : > { %v827_v24 = vpop.permute.xlu2 %826  ;;  %v906_v38 = vsel %vm896_vm3, %v4870_v30, %v707_v40 }
 0x104   : > { %3542 = vmatmul.msk.f32.gmra.mxu2 %vm969_vm5, %v4909_v59  ;;  %v5001_v30 = vsel %vm929_vm4, %v906_v38, %v819_v6 }
 0x108   : > { %v1295_v41 = vpop.f32.mrf.mxu3 }
 0x10a   : > { %v4936_v61 = vpop.permute.xlu0 %820  ;;  %v4938_v10 = vpop.permute.xlu1 %710 }
 0x10c   : > { %3581 = vmatmul.msk.f32.vlgmr.msrb.gmra.mxu2 %vm969_vm5, %v4934_v48 }
 0x112   : > { %v713_v35 = vpop.permute.xlu0 %712  ;;  %v825_v51 = vpop.permute.xlu1 %824 }
 0x113   : > { %v909_v36 = vsel %vm896_vm3, %v597_v52, %v713_v35  ;;  %v4966_v52 = vsel %vm929_vm4, %v901_v55, %v809_v11  ;;  %v4981_v11 = vld [vmem:[%s6491_s2] ss:$0 sm:$0xff] }
 0x114   : > { %v4954_v54 = vsel %vm929_vm4, %v909_v36, %v825_v51  ;;  %3582 = vmatmul.msk.f32.gmra.mxu2 %vm969_vm5, %v4949_v4  ;;  %v519_v36 = vsel %vm510_vm1, %v517_v18, %v518_v62  ;;  %v520_v18 = vrot.slane %v4588_v56, 7  ;;  %v513_v62 = vsel %vm510_vm1, %v511_v25, %v512_v12 }
 0x115   : > { %v902_v21 = vsel %vm896_vm3, %v519_v36, %v4889_v5  ;;  %v527_v12 = vrot.slane %v4655_v27, 7 }
 0x116   : > { %v594_v26 = vsel %vm510_vm1, 0.0, %v520_v18 }
 0x117   : > { %v903_v6 = vsel %vm896_vm3, %v594_v26, %v4904_v28 }
 0x11a   : > { %v715_v35 = vpop.permute.xlu0 %714  ;;  %v801_v51 = vpop.permute.xlu1 %800 }
 0x11b   : > { %v910_v39 = vsel %vm896_vm3, %v531_v8, %v715_v35  ;;  %v930_v15 = vsel %vm929_vm4, %v897_v17, %v801_v51  ;;  %v596_v8 = vsel %vm510_vm1, 0.0, %v526_v42  ;;  %v533_v35 = vrot.slane %v4751_v22, 7 }
 0x11c   : > { %v4973_v50 = vsel %vm929_vm4, %v910_v39, %v827_v24  ;;  %3546 = vmatmul.msk.f32.vlgmr.msra.gmra.mxu1 %vm969_vm5, %v930_v15  ;;  %3583 = vmatmul.msk.f32.gmra.mxu2 %vm969_vm5, %v4966_v52  ;;  %v803_v24 = vpop.permute.xlu2 %802  ;;  %v521_v51 = vrot.slane %v4591_v57, 7  ;;  %v907_v36 = vsel %vm896_vm3, %v596_v8, %v4916_v32 }
 0x11d   : > { %3513 = vmatmul.msk.f32.gmra.mxu0 %vm969_vm5, %v930_v15  ;;  %v4996_v15 = vsel %vm929_vm4, %v902_v21, %v4862_v60  ;;  %v534_v22 = vsel %vm510_vm1, %v532_v33, %v533_v35  ;;  %v5032_v57 = vsel %vm929_vm4, %v907_v36, %v4936_v61  ;;  %v528_v33 = vsel %vm510_vm1, %v526_v42, %v527_v12 }
 0x11e   : > { %v522_v28 = vsel %vm510_vm1, %v520_v18, %v521_v51  ;;  %v908_v61 = vsel %vm896_vm3, %v528_v33, %v4938_v10  ;;  %v595_v10 = vsel %vm510_vm1, 0.0, %v523_v46 }
 0x11f   : > { %v1138_v49 = vpop.f32.mrf.mxu2  ;;  %v905_v9 = vsel %vm896_vm3, %v595_v10, %v4920_v37 }
 0x120   : > { %v1198_v55 = vadd.f32 %v4981_v11, %v1138_v49  ;;  %v938_v8 = vsel %vm929_vm4, %v905_v9, %v4902_v19 }
 0x122   : > { %v4998_v5 = vadd.f32 %v1295_v41, %v1198_v55  ;;  %v691_v56 = vpop.permute.xlu0 %690  ;;  %v717_v17 = vpop.permute.xlu1 %716  ;;  %v936_v41 = vsel %vm929_vm4, %v903_v6, %v4906_v29  ;;  %v556_v55 = vrot.slane %v4779_v34, 7  ;;  %v904_v29 = vsel %vm896_vm3, %v522_v28, %v4885_v7 }
 0x123   : > { %v898_v40 = vsel %vm896_vm3, %v513_v62, %v691_v56  ;;  %v5006_v25 = vsel %vm896_vm3, %v598_v58, %v717_v17  ;;  %v937_v58 = vsel %vm929_vm4, %v904_v29, %v4918_v2  ;;  %v941_v7 = vsel %vm929_vm4, %v908_v61, %v4927_v31 }
 0x124   : > { %3584 = vmatmul.msk.f32.gmra.mxu2 %vm969_vm5, %v4996_v15  ;;  %v931_v60 = vsel %vm929_vm4, %v898_v40, %v803_v24  ;;  %v5038_v27 = vpop.permute.xlu2 %830  ;;  %v606_v42 = vsel %vm510_vm1, 0.0, %v556_v55  ;;  %v557_v24 = vrot.slane %v4782_v47, 7 }
 0x125   : > { %3514 = vmatmul.msk.f32.gmra.mxu0 %vm969_vm5, %v931_v60  ;;  %3547 = vmatmul.msk.f32.gmra.mxu1 %vm969_vm5, %v931_v60 }
 0x126   : > { %v558_v47 = vsel %vm510_vm1, %v556_v55, %v557_v24 }
 0x127   : > { %v5020_v39 = vpop.f32.mrf.mxu2 }
 0x128   : > { %v5023_v21 = vpop.f32.mrf.mxu3 }
 0x12a   : > { %v5028_v38 = vpop.permute.xlu0 %828  ;;  %v719_v49 = vpop.permute.xlu1 %718 }
 0x12b   : > { %v5036_v32 = vsel %vm896_vm3, %v534_v22, %v719_v49  ;;  %v944_v51 = vsel %vm929_vm4, %v5006_v25, %v5028_v38 }
 0x12c   : > { %3585 = vmatmul.msk.f32.gmra.mxu2 %vm969_vm5, %v936_v41  ;;  %v751_v2 = vpop.permute.xlu2 %750 }
 0x12d   : > { %3515 = vmatmul.msk.f32.gmra.mxu0 %vm969_vm5, %v4934_v48  ;;  %3548 = vmatmul.msk.f32.gmra.mxu1 %vm969_vm5, %v4934_v48  ;;  %v928_v31 = vsel %vm896_vm3, %v558_v47, %v751_v2 }
 0x12f   : > { %v1144_v18 = vpop.f32.mrf.mxu2 }
 0x130   : > { %v1200_v62 = vadd.f32 %v4981_v11, %v1144_v18  ;;  %v1301_v34 = vpop.f32.mrf.mxu3 }
 0x132   : > { %v5056_v56 = vadd.f32 %v1301_v34, %v1200_v62  ;;  %v749_v48 = vpop.permute.xlu0 %748  ;;  %v861_v17 = vpop.permute.xlu1 %860 }
 0x133   : > { %v927_v26 = vsel %vm896_vm3, %v606_v42, %v749_v48 }
 0x134   : > { %3586 = vmatmul.msk.f32.gmra.mxu2 %vm969_vm5, %v937_v58  ;;  %v5066_v40 = vsel %vm929_vm4, %v927_v26, %v861_v17 }
 0x135   : > { %3516 = vmatmul.msk.f32.gmra.mxu0 %vm969_vm5, %v4949_v4  ;;  %3549 = vmatmul.msk.f32.gmra.mxu1 %vm969_vm5, %v4949_v4 }
 0x136   : > { %3576 = vmatmul.msk.f32.gmra.mxu3 %vm969_vm5, %v5066_v40 }
 0x137   : > { %v5077_v46 = vpop.f32.mrf.mxu2 }
 0x13a   : > { %v863_v60 = vpop.permute.xlu0 %862 }
 0x13b   : > { %v5083_v35 = vsel %vm929_vm4, %v928_v31, %v863_v60 }
 0x13c   : > { %3587 = vmatmul.msk.f32.gmra.mxu2 %vm969_vm5, %v938_v8 }
 0x13d   : > { %3517 = vmatmul.msk.f32.gmra.mxu0 %vm969_vm5, %v4966_v52  ;;  %3550 = vmatmul.msk.f32.gmra.mxu1 %vm969_vm5, %v4966_v52 }
 0x13e   : > { %3577 = vmatmul.msk.f32.gmra.mxu3 %vm969_vm5, %v5083_v35 }
 0x13f   : > { %v5092_v37 = vpop.f32.mrf.mxu2 }
 0x144   : > { %3588 = vmatmul.msk.f32.gmra.mxu2 %vm969_vm5, %v5001_v30 }
 0x145   : > { %3518 = vmatmul.msk.f32.gmra.mxu0 %vm969_vm5, %v4996_v15  ;;  %3551 = vmatmul.msk.f32.gmra.mxu1 %vm969_vm5, %v4996_v15 }
 0x147   : > { %v5100_v19 = vpop.f32.mrf.mxu2 }
 0x14c   : > { %3589 = vmatmul.msk.f32.gmra.mxu2 %vm969_vm5, %v5032_v57 }
 0x14d   : > { %3519 = vmatmul.msk.f32.gmra.mxu0 %vm969_vm5, %v936_v41  ;;  %3552 = vmatmul.msk.f32.gmra.mxu1 %vm969_vm5, %v936_v41  ;;  %v1084_v41 = vpop.f32.mrf.mxu0 }
 0x14f   : > { %v5106_v4 = vpop.f32.mrf.mxu2 }
 0x154   : > { %3590 = vmatmul.msk.f32.gmra.mxu2 %vm969_vm5, %v941_v7 }
 0x155   : > { %3520 = vmatmul.msk.f32.gmra.mxu0 %vm969_vm5, %v937_v58  ;;  %3553 = vmatmul.msk.f32.gmra.mxu1 %vm969_vm5, %v937_v58  ;;  %v5165_v38 = vpop.f32.mrf.mxu0 }
 0x157   : > { %v5111_v52 = vpop.f32.mrf.mxu2 }
 0x15c   : > { %3591 = vmatmul.msk.f32.gmra.mxu2 %vm969_vm5, %v4954_v54 }
 0x15d   : > { %3521 = vmatmul.msk.f32.gmra.mxu0 %vm969_vm5, %v938_v8  ;;  %3554 = vmatmul.msk.f32.gmra.mxu1 %vm969_vm5, %v938_v8 }
 0x15f   : > { %v5117_v15 = vpop.f32.mrf.mxu2 }
 0x160   : > { %6492 = vst [vmem:[#allocation6_spill] sm:$0xff] %v5117_v15 }
 0x164   : > { %3592 = vmatmul.msk.f32.gmra.mxu2 %vm969_vm5, %v4973_v50 }
 0x165   : > { %3522 = vmatmul.msk.f32.gmra.mxu0 %vm969_vm5, %v5001_v30  ;;  %3555 = vmatmul.msk.f32.gmra.mxu1 %vm969_vm5, %v5001_v30  ;;  %v945_v30 = vsel %vm929_vm4, %v5036_v32, %v5038_v27 }
 0x167   : > { %v5125_v6 = vpop.f32.mrf.mxu2 }
 0x168   : > { %6493 = vst [vmem:[#allocation7_spill] sm:$0xff] %v5125_v6 }
 0x16c   : > { %3593 = vmatmul.msk.f32.gmra.mxu2 %vm969_vm5, %v944_v51 }
 0x16d   : > { %3523 = vmatmul.msk.f32.gmra.mxu0 %vm969_vm5, %v5032_v57  ;;  %3556 = vmatmul.msk.f32.gmra.mxu1 %vm969_vm5, %v5032_v57 }
 0x16f   : > { %v5135_v36 = vpop.f32.mrf.mxu2 }
 0x170   : > { %6494 = vst [vmem:[#allocation8_spill] sm:$0xff] %v5135_v36 }
 0x174   : > { %3594 = vmatmul.msk.f32.gmra.mxu2 %vm969_vm5, %v945_v30 }
 0x175   : > { %3524 = vmatmul.msk.f32.gmra.mxu0 %vm969_vm5, %v941_v7  ;;  %3557 = vmatmul.msk.f32.gmra.mxu1 %vm969_vm5, %v941_v7 }
 0x177   : > { %v5143_v25 = vpop.f32.mrf.mxu2 }
 0x178   : > { %6495 = vst [vmem:[#allocation9_spill] sm:$0xff] %v5143_v25 }
 0x17c   : > { %3595 = vmatmul.msk.f32.gmra.mxu2 %vm969_vm5, %v4685_v1 }
 0x17d   : > { %3525 = vmatmul.msk.f32.gmra.mxu0 %vm969_vm5, %v4954_v54  ;;  %3558 = vmatmul.msk.f32.gmra.mxu1 %vm969_vm5, %v4954_v54 }
 0x17f   : > { %v5151_v12 = vpop.f32.mrf.mxu2 }
 0x180   : > { %6496 = vst [vmem:[#allocation10_spill] sm:$0xff] %v5151_v12 }
 0x184   : > { %3596 = vmatmul.msk.f32.gmra.mxu2 %vm969_vm5, %v4717_v3 }
 0x185   : > { %3526 = vmatmul.msk.f32.gmra.mxu0 %vm969_vm5, %v4973_v50  ;;  %3559 = vmatmul.msk.f32.gmra.mxu1 %vm969_vm5, %v4973_v50  ;;  %v1180_v50 = vadd.f32 %v4981_v11, %v1084_v41 }
 0x187   : > { %v5159_v22 = vpop.f32.mrf.mxu2 }
 0x188   : > { %6497 = vst [vmem:[#allocation11_spill] sm:$0xff] %v5159_v22  ;;  %v1592_v22 = vld [vmem:[%s6501_s3 + $0x8] sm:$0xff] }
 0x18c   : > { %3597 = vmatmul.msk.f32.gmra.mxu2 %vm969_vm5, %v4641_v20 }
 0x18d   : > { %3527 = vmatmul.msk.f32.gmra.mxu0 %vm969_vm5, %v944_v51  ;;  %3560 = vmatmul.msk.f32.gmra.mxu1 %vm969_vm5, %v944_v51 }
 0x18f   : > { %v1392_v54 = vpop.f32.mrf.mxu2 }
 0x194   : > { %3598 = vmatmul.msk.f32.gmra.mxu2 %vm969_vm5, %v4722_v13 }
 0x195   : > { %3528 = vmatmul.msk.f32.gmra.mxu0 %vm969_vm5, %v945_v30  ;;  %3561 = vmatmul.msk.f32.gmra.mxu1 %vm969_vm5, %v945_v30 }
 0x197   : > { %v5172_v49 = vpop.f32.mrf.mxu2 }
 0x199   : > { %v1241_v57 = vpop.f32.mrf.mxu1 }
 0x19a   : > { %v1337_v20 = vadd.f32 %v1241_v57, %v1180_v50  ;;  %v1090_v32 = vpop.f32.mrf.mxu0 }
 0x19b   : > { %v1182_v55 = vadd.f32 %v4981_v11, %v1090_v32 }
 0x19c   : > { %v5174_v28 = vadd.f32 %v1392_v54, %v1337_v20  ;;  %3599 = vmatmul.msk.f32.gmra.mxu2 %vm969_vm5, %v4738_v16  ;;  %v1594_v54 = vld [vmem:[%s6501_s3 + $0x18] sm:$0xff] }
 0x19d   : > { %3562 = vmatmul.msk.f32.gmra.mxu1 %vm969_vm5, %v4685_v1  ;;  %1613 = vmatpush.msrb.mxu3 %v1594_v54 }
 0x19e   : > { %6498 = vst [vmem:[#allocation12_spill] sm:$0xff] %v5174_v28 }
 0x19f   : > { %v1398_v13 = vpop.f32.mrf.mxu2 }
 0x1a2   : > { %v5180_v27 = vpop.f32.mrf.mxu1  ;;  %v5189_v29 = vpop.f32.mrf.mxu0 }
 0x1a4   : > { %3600 = vmatmul.msk.f32.gmra.mxu2 %vm969_vm5, %v4764_v43 }
 0x1a5   : > { %3563 = vmatmul.msk.f32.gmra.mxu1 %vm969_vm5, %v4717_v3 }
 0x1a7   : > { %v5187_v33 = vpop.f32.mrf.mxu2 }
 0x1aa   : > { %v1247_v16 = vpop.f32.mrf.mxu1  ;;  %v1096_v62 = vpop.f32.mrf.mxu0 }
 0x1ab   : > { %v1339_v61 = vadd.f32 %v1247_v16, %v1182_v55  ;;  %v1184_v43 = vadd.f32 %v4981_v11, %v1096_v62  ;;  %v5258_v16 = vpop.f32.mrf.mxu3  ;;  %v1199_v62 = vadd.f32 %v4981_v11, %v5020_v39 }
 0x1ac   : > { %3601 = vmatmul.msk.f32.gmra.mxu2 %vm969_vm5, %v4793_v63 }
 0x1ad   : > { %v5193_v1 = vadd.f32 %v1398_v13, %v1339_v61 }
 0x1af   : > { %6499 = vst [vmem:[#allocation13_spill] sm:$0xff] %v5193_v1  ;;  %v1404_v18 = vpop.f32.mrf.mxu2 }
 0x1b2   : > { %v5195_v34 = vpop.f32.mrf.mxu1  ;;  %v5202_v24 = vpop.f32.mrf.mxu0 }
 0x1b3   : > { %v1185_v25 = vadd.f32 %v4981_v11, %v5202_v24 }
 0x1b4   : > { %3602 = vmatmul.msk.f32.gmra.mxu2 %vm969_vm5, %v4812_v14 }
 0x1b7   : > { %v5199_v3 = vpop.f32.mrf.mxu2 }
 0x1ba   : > { %v1253_v42 = vpop.f32.mrf.mxu1  ;;  %v1102_v14 = vpop.f32.mrf.mxu0 }
 0x1bb   : > { %v1341_v58 = vadd.f32 %v1253_v42, %v1184_v43  ;;  %v1186_v10 = vadd.f32 %v4981_v11, %v1102_v14  ;;  %v1356_v43 = vadd.f32 %v5023_v21, %v1199_v62  ;;  %v5270_v14 = vpop.f32.mrf.mxu3 }
 0x1bc   : > { %3603 = vmatmul.msk.f32.gmra.mxu2 %vm969_vm5, %v4835_v23 }
 0x1bd   : > { %v5206_v63 = vadd.f32 %v1404_v18, %v1341_v58 }
 0x1bf   : > { %v1410_v48 = vpop.f32.mrf.mxu2 }
 0x1c2   : > { %v5208_v17 = vpop.f32.mrf.mxu1 }
 0x1c4   : > { %3604 = vmatmul.msk.f32.gmra.mxu2 %vm969_vm5, %v4847_v44 }
 0x1c7   : > { %v5212_v7 = vpop.f32.mrf.mxu2 }
 0x1ca   : > { %v1259_v26 = vpop.f32.mrf.mxu1 }
 0x1cb   : > { %v1343_v47 = vadd.f32 %v1259_v26, %v1186_v10 }
 0x1cc   : > { %3605 = vmatmul.msk.f32.gmra.mxu2 %vm969_vm5, %v4860_v53 }
 0x1cd   : > { %v5217_v2 = vadd.f32 %v1410_v48, %v1343_v47 }
 0x1cf   : > { %v5219_v23 = vpop.f32.mrf.mxu2 }
 0x1d2   : > { %v1262_v60 = vpop.f32.mrf.mxu1 }
 0x1d4   : > { %3606 = vmatmul.msk.f32.gmra.mxu2 %vm969_vm5, %v4878_v0  ;;  %v1105_v0 = vpop.f32.mrf.mxu0 }
 0x1d5   : > { %v1187_v24 = vadd.f32 %v4981_v11, %v1105_v0 }
 0x1d7   : > { %v5223_v9 = vpop.f32.mrf.mxu2 }
 0x1dc   : > { %3607 = vmatmul.msk.f32.gmra.mxu2 %vm969_vm5, %v4892_v45  ;;  %v6500_v45 = vmov 0.0   ;;  %v1108_v30 = vpop.f32.mrf.mxu0 }
 0x1df   : > { %v5227_v44 = vpop.f32.mrf.mxu2 }
 0x1e4   : > { %3608 = vmatmul.msk.f32.gmra.mxu2 %vm969_vm5, %v4909_v59  ;;  %v1265_v59 = vpop.f32.mrf.mxu1 }
 0x1e7   : > { %v5231_v31 = vpop.f32.mrf.mxu2 }
 0x1ec   : > { %3609 = vmatmul.msk.f32.gmra.mxu2 %vm969_vm5, %v5066_v40  ;;  %v1111_v40 = vpop.f32.mrf.mxu0 }
 0x1ef   : > { %v5235_v53 = vpop.f32.mrf.mxu2 }
 0x1f4   : > { %3610 = vmatmul.msk.f32.gmra.mxu2 %vm969_vm5, %v5083_v35  ;;  %v5250_v35 = vpop.f32.mrf.mxu1  ;;  %v1114_v57 = vpop.f32.mrf.mxu0 }
 0x1f7   : > { %v5239_v8 = vpop.f32.mrf.mxu2 }
 0x1fc   : > { %1481 = vmatmul.f32.gmra.mxu2 %v6500_v45  ;;  %v5254_v20 = vpop.f32.mrf.mxu1  ;;  %v1117_v13 = vpop.f32.mrf.mxu0 }
 0x1ff   : > { %v5242_v51 = vpop.f32.mrf.mxu2 }
 0x204   : > { %1484 = vmatmul.f32.gmra.mxu2 %v6500_v45  ;;  %v5263_v18 = vpop.f32.mrf.mxu1  ;;  %v1120_v48 = vpop.f32.mrf.mxu0 }
 0x205   : > { %v5280_v45 = vpop.f32.mrf.mxu3 }
 0x207   : > { %v5245_v41 = vpop.f32.mrf.mxu2 }
 0x20c   : > { %v5272_v10 = vpop.f32.mrf.mxu1  ;;  %v1123_v39 = vpop.f32.mrf.mxu0 }
 0x20f   : > { %v5252_v50 = vpop.f32.mrf.mxu2 }
 0x214   : > { %v5282_v21 = vpop.f32.mrf.mxu1  ;;  %v1126_v62 = vpop.f32.mrf.mxu0 }
 0x217   : > { %v5256_v32 = vpop.f32.mrf.mxu2 }
 0x21c   : > { %v1129_v36 = vpop.f32.mrf.mxu0 }
 0x21f   : > { %v1446_v55 = vpop.f32.mrf.mxu2 }
 0x220   : > { %v5261_v61 = vadd.f32 %v1446_v55, %v4998_v5  ;;  %v1593_v5 = vld [vmem:[%s6501_s3 + $0x10] sm:$0xff]  ;;  %v1181_v55 = vadd.f32 %v4981_v11, %v5165_v38 }
 0x221   : > { %1614 = vmatpush.msrb.mxu3 %v1593_v5 }
 0x223   : > { %1615 = vmatpush.msrb.mxu3 %v1592_v22  ;;  %v1521_v22 = vsel %vm1520_vm6, %v5174_v28, 0.0  ;;  %v1189_v28 = vadd.f32 %v4981_v11, %v1111_v40 }
 0x227   : > { %v1449_v42 = vpop.f32.mrf.mxu2 }
 0x228   : > { %v5268_v58 = vadd.f32 %v1449_v42, %v1356_v43  ;;  %v5288_v43 = vpop.f32.mrf.mxu3  ;;  %v5290_v42 = vpop.f32.mrf.mxu1 }
 0x22f   : > { %v1452_v26 = vpop.f32.mrf.mxu2 }
 0x230   : > { %v5278_v47 = vadd.f32 %v1452_v26, %v5056_v56  ;;  %v1183_v56 = vadd.f32 %v4981_v11, %v5189_v29  ;;  %v1338_v26 = vadd.f32 %v5180_v27, %v1181_v55  ;;  %v1342_v55 = vadd.f32 %v5208_v17, %v1185_v25 }
 0x231   : > { %v1188_v25 = vadd.f32 %v4981_v11, %v1108_v30  ;;  %v1344_v17 = vadd.f32 %v1262_v60, %v1187_v24  ;;  %v1346_v60 = vadd.f32 %v5250_v35, %v1189_v28 }
 0x232   : > { %v5301_v12 = vadd.f32 %v5172_v49, %v1338_v26  ;;  %v1340_v38 = vadd.f32 %v5195_v34, %v1183_v56  ;;  %v5314_v49 = vpop.f32.mrf.mxu3  ;;  %v1286_v26 = vpop.f32.mrf.mxu1  ;;  %v1524_v34 = vsel %vm1520_vm6, %v5193_v1, 0.0 }
 0x233   : > { %6504 = vst [vmem:[#allocation16_spill] sm:$0xff] %v5314_v49  ;;  %v1528_v49 = vsel %vm1520_vm6, %v5206_v63, 0.0  ;;  %v5351_v28 = vadd.f32 %v5223_v9, %v1346_v60 }
 0x234   : > { %6502 = vst [vmem:[#allocation14_spill] sm:$0xff] %v5301_v12  ;;  %v1522_v27 = vsel %vm1520_vm6, %v5301_v12, 0.0  ;;  %v5311_v29 = vadd.f32 %v5187_v33, %v1340_v38  ;;  %v5324_v33 = vadd.f32 %v5199_v3, %v1342_v55  ;;  %v1190_v3 = vadd.f32 %v4981_v11, %v1114_v57  ;;  %v1132_v55 = vpop.f32.mrf.mxu0 }
 0x235   : > { %v1523_v56 = vadd.f32 %v1522_v27, %v1521_v22  ;;  %v5335_v27 = vadd.f32 %v5212_v7, %v1344_v17  ;;  %v1532_v22 = vsel %vm1520_vm6, %v5217_v2, 0.0  ;;  %v1538_v9 = vsel %vm1520_vm6, %v5351_v28, 0.0 }
 0x236   : > { %v1526_v12 = vsel %vm1520_vm6, %v5311_v29, 0.0  ;;  %v1530_v0 = vsel %vm1520_vm6, %v5324_v33, 0.0  ;;  %v1347_v40 = vadd.f32 %v5254_v20, %v1190_v3 }
 0x237   : > { %v5284_v54 = vpop.f32.mrf.mxu2  ;;  %v1525_v38 = vadd.f32 %v1524_v34, %v1523_v56  ;;  %v1534_v57 = vsel %vm1520_vm6, %v5335_v27, 0.0 }
 0x238   : > { %v5358_v20 = vadd.f32 %v5227_v44, %v1347_v40 }
 0x239   : > { %v1527_v1 = vadd.f32 %v1526_v12, %v1525_v38  ;;  %v1191_v12 = vadd.f32 %v4981_v11, %v1117_v13  ;;  %v1193_v13 = vadd.f32 %v4981_v11, %v1123_v39 }
 0x23a   : > { %v5346_v34 = vpop.f32.mrf.mxu3  ;;  %v1289_v24 = vpop.f32.mrf.mxu1  ;;  %v1540_v44 = vsel %vm1520_vm6, %v5358_v20, 0.0 }
 0x23b   : > { %v1529_v30 = vadd.f32 %v1528_v49, %v1527_v1  ;;  %v1192_v1 = vadd.f32 %v4981_v11, %v1120_v48  ;;  %v1348_v35 = vadd.f32 %v5263_v18, %v1191_v12  ;;  %v1194_v18 = vadd.f32 %v4981_v11, %v1126_v62 }
 0x23c   : > { %v1350_v17 = vadd.f32 %v5282_v21, %v1193_v13  ;;  %v1135_v60 = vpop.f32.mrf.mxu0  ;;  %v1196_v21 = vadd.f32 %v4981_v11, %v1132_v55 }
 0x23d   : > { %v1531_v7 = vadd.f32 %v1530_v0, %v1529_v30  ;;  %v1349_v49 = vadd.f32 %v5272_v10, %v1192_v1  ;;  %v5367_v48 = vadd.f32 %v5231_v31, %v1348_v35  ;;  %v1195_v10 = vadd.f32 %v4981_v11, %v1129_v36 }
 0x23e   : > { %v1351_v0 = vadd.f32 %v5290_v42, %v1194_v18  ;;  %v5381_v62 = vadd.f32 %v5239_v8, %v1350_v17  ;;  %v1197_v42 = vadd.f32 %v4981_v11, %v1135_v60  ;;  %v1556_v60 = vsel %vm1520_vm6, %v5261_v61, 0.0 }
 0x23f   : > { %v5292_v5 = vpop.f32.mrf.mxu2  ;;  %v5374_v39 = vadd.f32 %v5235_v53, %v1349_v49  ;;  %v1542_v31 = vsel %vm1520_vm6, %v5367_v48, 0.0  ;;  %v1352_v30 = vadd.f32 %v1286_v26, %v1195_v10 }
 0x240   : > { %v5387_v36 = vadd.f32 %v5242_v51, %v1351_v0  ;;  %v1546_v8 = vsel %vm1520_vm6, %v5381_v62, 0.0 }
 0x241   : > { %v1544_v53 = vsel %vm1520_vm6, %v5374_v39, 0.0  ;;  %v5393_v55 = vadd.f32 %v5245_v41, %v1352_v30 }
 0x242   : > { %v1292_v40 = vpop.f32.mrf.mxu1 }
 0x243   : > { %v1354_v26 = vadd.f32 %v1292_v40, %v1197_v42  ;;  %v1550_v13 = vsel %vm1520_vm6, %v5393_v55, 0.0 }
 0x245   : > { %v5406_v49 = vadd.f32 %v5256_v32, %v1354_v26  ;;  %v1202_v32 = vadd.f32 %v4981_v11, %v5092_v37 }
 0x247   : > { %v5306_v6 = vpop.f32.mrf.mxu2  ;;  %v1554_v17 = vsel %vm1520_vm6, %v5406_v49, 0.0  ;;  %v1359_v30 = vadd.f32 %v5270_v14, %v1202_v32 }
 0x248   : > { %6503 = vst [vmem:[#allocation15_spill] sm:$0xff] %v5306_v6  ;;  %v1345_v6 = vadd.f32 %v1265_v59, %v1188_v25 }
 0x249   : > { %v5435_v14 = vadd.f32 %v5292_v5, %v1359_v30 }
 0x24a   : > { %v5342_v59 = vadd.f32 %v5219_v23, %v1345_v6  ;;  %v1533_v6 = vadd.f32 %v1532_v22, %v1531_v7  ;;  %v1322_v22 = vpop.f32.mrf.mxu3  ;;  %v1353_v7 = vadd.f32 %v1289_v24, %v1196_v21  ;;  %v1591_v24 = vld [vmem:[%s6501_s3] sm:$0xff] }
 0x24b   : > { %1616 = vmatpush.msrb.mxu3 %v1591_v24  ;;  %v1564_v5 = vsel %vm1520_vm6, %v5435_v14, 0.0 }
 0x24c   : > { %v1536_v23 = vsel %vm1520_vm6, %v5342_v59, 0.0  ;;  %v1535_v56 = vadd.f32 %v1534_v57, %v1533_v6  ;;  %v1548_v6 = vsel %vm1520_vm6, %v5387_v36, 0.0 }
 0x24e   : > { %v1537_v38 = vadd.f32 %v1536_v23, %v1535_v56  ;;  %v5398_v23 = vadd.f32 %v5252_v50, %v1353_v7  ;;  %v6505_v7 = vld [vmem:[#allocation6_spill] sm:$0xff] }
 0x24f   : > { %v5330_v15 = vpop.f32.mrf.mxu2 }
 0x250   : > { %v1539_v3 = vadd.f32 %v1538_v9, %v1537_v38  ;;  %v1552_v56 = vsel %vm1520_vm6, %v5398_v23, 0.0 }
 0x252   : > { %v1541_v12 = vadd.f32 %v1540_v44, %v1539_v3  ;;  %v1325_v9 = vpop.f32.mrf.mxu3  ;;  %v1201_v44 = vadd.f32 %v4981_v11, %v5077_v46  ;;  %v1203_v3 = vadd.f32 %v4981_v11, %v5100_v19  ;;  %v1558_v46 = vsel %vm1520_vm6, %v5268_v58, 0.0 }
 0x253   : > { %v1205_v19 = vadd.f32 %v4981_v11, %v5111_v52  ;;  %v6507_v52 = vld [vmem:[#allocation16_spill] sm:$0xff] }
 0x254   : > { %v1543_v57 = vadd.f32 %v1542_v31, %v1541_v12  ;;  %v1358_v0 = vadd.f32 %v5258_v16, %v1201_v44  ;;  %v1204_v12 = vadd.f32 %v4981_v11, %v5106_v4  ;;  %v1360_v40 = vadd.f32 %v5280_v45, %v1203_v3 }
 0x256   : > { %v1545_v35 = vadd.f32 %v1544_v53, %v1543_v57  ;;  %v5427_v37 = vadd.f32 %v5284_v54, %v1358_v0  ;;  %v1560_v53 = vsel %vm1520_vm6, %v5278_v47, 0.0  ;;  %v1361_v4 = vadd.f32 %v5288_v43, %v1204_v12  ;;  %v6510_v0 = vld [vmem:[#allocation9_spill] sm:$0xff] }
 0x257   : > { %v5362_v25 = vpop.f32.mrf.mxu2  ;;  %v1206_v57 = vadd.f32 %v4981_v11, %v6505_v7 }
 0x258   : > { %v1547_v51 = vadd.f32 %v1546_v8, %v1545_v35  ;;  %v1562_v54 = vsel %vm1520_vm6, %v5427_v37, 0.0  ;;  %v6506_v8 = vld [vmem:[#allocation15_spill] sm:$0xff]  ;;  %v1362_v35 = vadd.f32 %v6507_v52, %v1205_v19  ;;  %v5451_v43 = vadd.f32 %v5330_v15, %v1361_v4 }
 0x259   : > { %v5443_v45 = vadd.f32 %v6506_v8, %v1360_v40  ;;  %v1209_v15 = vadd.f32 %v4981_v11, %v6510_v0  ;;  %v6511_v40 = vld [vmem:[#allocation10_spill] sm:$0xff]  ;;  %v6512_v52 = vld [vmem:[#allocation11_spill] sm:$0xff] }
 0x25a   : > { %v1549_v41 = vadd.f32 %v1548_v6, %v1547_v51  ;;  %v1328_v16 = vpop.f32.mrf.mxu3  ;;  %v6508_v6 = vld [vmem:[#allocation7_spill] sm:$0xff]  ;;  %v1568_v3 = vsel %vm1520_vm6, %v5451_v43, 0.0  ;;  %v1210_v19 = vadd.f32 %v4981_v11, %v6511_v40 }
 0x25b   : > { %v1207_v51 = vadd.f32 %v4981_v11, %v6508_v6 }
 0x25c   : > { %v1551_v18 = vadd.f32 %v1550_v13, %v1549_v41  ;;  %v1363_v41 = vadd.f32 %v5346_v34, %v1206_v57 }
 0x25d   : > { %v1364_v32 = vadd.f32 %v1322_v22, %v1207_v51 }
 0x25e   : > { %v1553_v38 = vadd.f32 %v1552_v56, %v1551_v18  ;;  %v6509_v56 = vld [vmem:[#allocation8_spill] sm:$0xff] }
 0x25f   : > { %v1470_v1 = vpop.f32.mrf.mxu2  ;;  %v1208_v18 = vadd.f32 %v4981_v11, %v6509_v56 }
 0x260   : > { %v1555_v10 = vadd.f32 %v1554_v17, %v1553_v38  ;;  %v1566_v17 = vsel %vm1520_vm6, %v5443_v45, 0.0  ;;  %v5459_v38 = vadd.f32 %v5362_v25, %v1362_v35 }
 0x261   : > { %v1365_v30 = vadd.f32 %v1325_v9, %v1208_v18 }
 0x262   : > { %v1557_v31 = vadd.f32 %v1556_v60, %v1555_v10  ;;  %v1331_v44 = vpop.f32.mrf.mxu3  ;;  %v5465_v60 = vadd.f32 %v1470_v1, %v1363_v41  ;;  %v1570_v25 = vsel %vm1520_vm6, %v5459_v38, 0.0 }
 0x263   : > { %v1367_v7 = vadd.f32 %v1331_v44, %v1210_v19 }
 0x264   : > { %v1559_v42 = vadd.f32 %v1558_v46, %v1557_v31  ;;  %v1596_v31 = vld [vmem:[%s6459_s5] sm:$0xff]  ;;  %v1366_v46 = vadd.f32 %v1328_v16, %v1209_v15  ;;  %v1572_v1 = vsel %vm1520_vm6, %v5465_v60, 0.0 }
 0x265   : > { %1640 = vmatpush.msra.mxu3 %v1596_v31 }
 0x266   : > { %v1561_v26 = vadd.f32 %v1560_v53, %v1559_v42 }
 0x267   : > { %v1473_v50 = vpop.f32.mrf.mxu2 }
 0x268   : > { %v1563_v24 = vadd.f32 %v1562_v54, %v1561_v26  ;;  %v5472_v12 = vadd.f32 %v1473_v50, %v1364_v32 }
 0x26a   : > { %v1565_v10 = vadd.f32 %v1564_v5, %v1563_v24  ;;  %v1574_v9 = vsel %vm1520_vm6, %v5472_v12, 0.0  ;;  %v1334_v8 = vpop.f32.mrf.mxu3 }
 0x26c   : > { %v1567_v34 = vadd.f32 %v1566_v17, %v1565_v10 }
 0x26e   : > { %v1569_v22 = vadd.f32 %v1568_v3, %v1567_v34  ;;  %v1595_v34 = vld [vmem:[%s6458_s4] sm:$0x1] }
 0x26f   : > { %v1476_v21 = vpop.f32.mrf.mxu2 }
 0x270   : > { %v5478_v53 = vadd.f32 %v1476_v21, %v1365_v30  ;;  %v1571_v42 = vadd.f32 %v1570_v25, %v1569_v22  ;;  %v1211_v21 = vadd.f32 %v4981_v11, %v6512_v52  ;;  %v1597_v22 = vld [vmem:[%s6460_s6] sm:$0x1] }
 0x272   : > { %v1573_v50 = vadd.f32 %v1572_v1, %v1571_v42  ;;  %v1576_v16 = vsel %vm1520_vm6, %v5478_v53, 0.0  ;;  %v1368_v51 = vadd.f32 %v1334_v8, %v1211_v21  ;;  %v4001_v1 = vld [vmem:[%s6461_s7 + $0x58] sm:$0xff]  ;;  %v4000_v21 = vld [vmem:[%s6461_s7 + $0x50] sm:$0xff] }
 0x273   : > { %2789 = vmatpush.bf16.msrb.mxu0 %v4001_v1 }
 0x274   : > { %v1575_v26 = vadd.f32 %v1574_v9, %v1573_v50  ;;  %v4023_v9 = vld [vmem:[%s6461_s7 + $0x88] sm:$0xff] }
 0x275   : > { %3120 = vmatpush.bf16.msrb.mxu1 %v4023_v9 }
 0x276   : > { %v1577_v6 = vadd.f32 %v1576_v16, %v1575_v26 }
 0x277   : > { %v1479_v13 = vpop.f32.mrf.mxu2  ;;  %2790 = vmatpush.bf16.msrb.mxu0 %v4000_v21 }
 0x278   : > { %v5482_v57 = vadd.f32 %v1479_v13, %v1366_v46 }
 0x27a   : > { %v1578_v35 = vsel %vm1520_vm6, %v5482_v57, 0.0 }
 0x27b   : > { %v1579_v24 = vadd.f32 %v1578_v35, %v1577_v6 }
 0x27f   : > { %v1482_v4 = vpop.f32.mrf.mxu2 }
 0x280   : > { %v5486_v54 = vadd.f32 %v1482_v4, %v1367_v7 }
 0x282   : > { %v1580_v5 = vsel %vm1520_vm6, %v5486_v54, 0.0 }
 0x283   : > { %v1581_v56 = vadd.f32 %v1580_v5, %v1579_v24  ;;  %v4022_v5 = vld [vmem:[%s6461_s7 + $0x80] sm:$0xff] }
 0x284   : > { %3121 = vmatpush.bf16.msrb.mxu1 %v4022_v5 }
 0x287   : > { %v1485_v13 = vpop.f32.mrf.mxu2 }
 0x288   : > { %v5494_v41 = vadd.f32 %v1485_v13, %v1368_v51 }
 0x28a   : > { %v1582_v18 = vsel %vm1520_vm6, %v5494_v41, 0.0 }
 0x28b   : > { %v1583_v17 = vadd.f32 %v1582_v18, %v1581_v56  ;;  %v6513_v56 = vld [vmem:[#allocation12_spill] sm:$0xff] }
 0x28d   : > { %v1584_v44 = vrot.slane %v1583_v17, 4 }
 0x28f   : > { %v1585_v10 = vadd.f32 %v1584_v44, %v1583_v17  ;;  %v6514_v17 = vld [vmem:[#allocation14_spill] sm:$0xff] }
 0x291   : > { %v1586_v11 = vrot.slane %v1585_v10, 2 }
 0x293   : > { %v1587_v32 = vadd.f32 %v1586_v11, %v1585_v10  ;;  %v6515_v10 = vld [vmem:[#allocation13_spill] sm:$0xff] }
 0x295   : > { %v1588_v0 = vrot.slane %v1587_v32, 1 }
 0x297   : > { %v1589_v15 = vadd.f32 %v1588_v0, %v1587_v32 }
 0x299   : > { %v1590_v3 = vmul.f32 0.00390625, %v1589_v15 }
 0x29b   : > { %3611 = vmatmul.msk.f32.vlgmr.msrb.gmra.mxu3 %vm1520_vm6, %v1590_v3 }
 0x31e   : > { %v1618_v31 = vpop.f32.mrf.mxu3 }
 0x31f   : > { %v1619_v30 = vadd.f32 %v1618_v31, %v1595_v34 }
 0x321   : > { %v1621_v25 = vmax.f32 %v1619_v30, 0.0 }
 0x323   : > { %3612 = vmatmul.msk.f32.vlgmr.msra.gmra.mxu3 %vm929_vm4, %v1621_v25 }
 0x3a6   : > { %v1642_v46 = vpop.f32.mrf.mxu3 }
 0x3a7   : > { %v1643_v40 = vadd.f32 %v1642_v46, %v1597_v22 }
 0x3a9   : > { %v3613_v19 = vmul.f32 -1.442695, %v1643_v40 }
 0x3ab   : > { %4237 = vpow2.f32 %v3613_v19 }
 0x3b1   : > { %v4238_v42 = vpop.eup %4237 }
 0x3b2   : > { %v1648_v4 = vadd.f32 1.0, %v4238_v42 }
 0x3b4   : > { %4239 = vrcp.f32 %v1648_v4  ;;  %v1660_v52 = vand.u32 2147483648, %v1648_v4  ;;  %vm1654_vm8 = vweird.f32 %v1648_v4  ;;  %v1658_v35 = vand.u32 2147483647, %v1648_v4 }
 0x3b6   : > { %v1661_v51 = vor.u32 1.1754944e-38, %v1660_v52  ;;  %vm1659_vm10 = vcmp.eq.f32.partialorder %v1658_v35, 8.507059e+37 }
 0x3ba   : > { %v4240_v7 = vpop.eup %4239 }
 0x3bb   : > { %v1650_v50 = vmul.f32 %v4240_v7, %v1648_v4  ;;  %vm1655_vm7 = vweird.f32 %v4240_v7 }
 0x3bc   : > { %vm1656_vm9 = vmor %vm1654_vm8, %vm1655_vm7 }
 0x3bd   : > { %v1651_v16 = vsub.f32 1.0, %v1650_v50 }
 0x3bf   : > { %v1652_v8 = vmul.f32 %v4240_v7, %v1651_v16 }
 0x3c1   : > { %v1653_v26 = vadd.f32 %v4240_v7, %v1652_v8 }
 0x3c3   : > { %v1657_v6 = vsel %vm1656_vm9, %v4240_v7, %v1653_v26 }
 0x3c4   : > { %v1662_v24 = vsel %vm1659_vm10, %v1661_v51, %v1657_v6 }
 0x3c5   : > { %v1664_v13 = vperm.slane %v1662_v24, 0 }
 0x3c7   : > { %v5519_v18 = vmul.f32 %v1664_v13, %v6513_v56  ;;  %v5522_v44 = vmul.f32 %v1664_v13, %v6514_v17  ;;  %v5525_v11 = vmul.f32 %v1664_v13, %v6515_v10  ;;  %v5528_v32 = vmul.f32 %v1664_v13, %v5311_v29 }
 0x3c8   : > { %v5531_v0 = vmul.f32 %v1664_v13, %v5206_v63  ;;  %v5534_v15 = vmul.f32 %v1664_v13, %v5324_v33  ;;  %v5538_v34 = vmul.f32 %v1664_v13, %v5217_v2  ;;  %v5541_v31 = vmul.f32 %v1664_v13, %v5335_v27 }
 0x3c9   : > { %v1825_v3 = vrot.slane %v5519_v18, 1  ;;  %v5544_v30 = vmul.f32 %v1664_v13, %v5342_v59  ;;  %v4085_v29 = vpack.i.bf16 %v5528_v32, %v5525_v11  ;;  %v4075_v63 = vpack.i.bf16 %v5522_v44, %v5519_v18 }
 0x3ca   : > { %v1826_v33 = vrot.slane %v5522_v44, 1  ;;  %v1828_v25 = vrot.slane %v5525_v11, 1  ;;  %v1831_v22 = vrot.slane %v5531_v0, 1  ;;  %v1832_v2 = vrot.slane %v5534_v15, 1 }
 0x3cb   : > { %v1829_v27 = vrot.slane %v5528_v32, 1  ;;  %v5556_v46 = vmul.f32 %v1664_v13, %v5351_v28  ;;  %v5559_v59 = vmul.f32 %v1664_v13, %v5358_v20  ;;  %4086 = vrot.lane.b32.xlu0 %v4085_v29, %s4312_s24  ;;  %4076 = vrot.lane.b32.xlu1 %v4075_v63, %s4312_s24  ;;  %v5566_v1 = vmul.f32 %v1664_v13, %v5367_v48 }
 0x3cc   : > { %v1827_v40 = vsel %vm607_vm0, %v1825_v3, %v1826_v33  ;;  %v1889_v19 = vsel %vm607_vm0, %v1826_v33, 0.0  ;;  %v5569_v42 = vmul.f32 %v1664_v13, %v5374_v39  ;;  %v5572_v28 = vmul.f32 %v1664_v13, %v5381_v62 }
 0x3cd   : > { %v4080_v20 = vpack.i.bf16 %v1889_v19, %v1827_v40  ;;  %v5575_v4 = vmul.f32 %v1664_v13, %v5387_v36  ;;  %v5578_v7 = vmul.f32 %v1664_v13, %v5393_v55  ;;  %v5581_v9 = vmul.f32 %v1664_v13, %v5398_v23  ;;  %v3999_v55 = vld [vmem:[%s6461_s7 + $0x48] sm:$0xff] }
 0x3ce   : > { %v5584_v50 = vmul.f32 %v1664_v13, %v5406_v49  ;;  %v1833_v48 = vsel %vm607_vm0, %v1831_v22, %v1832_v2  ;;  %v1891_v39 = vsel %vm607_vm0, %v1832_v2, 0.0  ;;  %v1830_v62 = vsel %vm607_vm0, %v1828_v25, %v1829_v27  ;;  %2791 = vmatpush.bf16.msrb.mxu0 %v3999_v55 }
 0x3cf   : > { %4081 = vrot.lane.b32.xlu2 %v4080_v20, %s4313_s22  ;;  %v1890_v36 = vsel %vm607_vm0, %v1829_v27, 0.0  ;;  %v5595_v23 = vmul.f32 %v1664_v13, %v5261_v61  ;;  %v5598_v49 = vmul.f32 %v1664_v13, %v5268_v58  ;;  %v5601_v16 = vmul.f32 %v1664_v13, %v5278_v47 }
 0x3d0   : > { %v5604_v8 = vmul.f32 %v1664_v13, %v5427_v37  ;;  %v5607_v26 = vmul.f32 %v1664_v13, %v5435_v14  ;;  %v5610_v52 = vmul.f32 %v1664_v13, %v5443_v45  ;;  %v5613_v21 = vmul.f32 %v1664_v13, %v5451_v43 }
 0x3d1   : > { %v5616_v61 = vmul.f32 %v1664_v13, %v5459_v38  ;;  %v5619_v58 = vmul.f32 %v1664_v13, %v5465_v60  ;;  %v5622_v47 = vmul.f32 %v1664_v13, %v5472_v12  ;;  %v4100_v37 = vpack.i.bf16 %v1891_v39, %v1833_v48 }
 0x3d2   : > { %v4090_v35 = vpack.i.bf16 %v1890_v36, %v1830_v62  ;;  %v5625_v14 = vmul.f32 %v1664_v13, %v5478_v53  ;;  %v5628_v45 = vmul.f32 %v1664_v13, %v5482_v57  ;;  %v5631_v43 = vmul.f32 %v1664_v13, %v5486_v54  ;;  %v4021_v53 = vld [vmem:[%s6461_s7 + $0x78] sm:$0xff] }
 0x3d3   : > { %v5634_v38 = vmul.f32 %v1664_v13, %v5494_v41  ;;  %v1729_v60 = vrot.slane %v5519_v18, 7  ;;  %v1730_v6 = vrot.slane %v5522_v44, 7  ;;  %v1732_v12 = vrot.slane %v5525_v11, 7  ;;  %4101 = vrot.lane.b32.xlu0 %v4100_v37, %s4313_s22  ;;  %3122 = vmatpush.bf16.msrb.mxu1 %v4021_v53 }
 0x3d4   : > { %v1733_v51 = vrot.slane %v5528_v32, 7  ;;  %4091 = vrot.lane.b32.xlu1 %v4090_v35, %s4313_s22  ;;  %v1735_v57 = vrot.slane %v5531_v0, 7  ;;  %v1736_v54 = vrot.slane %v5534_v15, 7  ;;  %v1738_v41 = vrot.slane %v5538_v34, 7 }
 0x3d5   : > { %v4095_v5 = vpack.i.bf16 %v5534_v15, %v5531_v0  ;;  %v1739_v24 = vrot.slane %v5541_v31, 7  ;;  %v6477_v13 = vrot.slane %v5544_v30, 7  ;;  %v1834_v56 = vrot.slane %v5538_v34, 1 }
 0x3d6   : > { %v1835_v17 = vrot.slane %v5541_v31, 1  ;;  %v1742_v44 = vrot.slane %v5556_v46, 7  ;;  %v6478_v10 = vrot.slane %v5559_v59, 7  ;;  %v1745_v32 = vrot.slane %v5566_v1, 7 }
 0x3d7   : > { %v1747_v3 = vrot.slane %v5569_v42, 7  ;;  %4096 = vrot.lane.b32.xlu2 %v4095_v5, %s4312_s24  ;;  %v1748_v15 = vrot.slane %v5572_v28, 7  ;;  %v1750_v29 = vrot.slane %v5575_v4, 7  ;;  %v1751_v63 = vrot.slane %v5578_v7, 7 }
 0x3d8   : > { %v6479_v33 = vrot.slane %v5581_v9, 7  ;;  %v1754_v25 = vrot.slane %v5584_v50, 7  ;;  %v1840_v2 = vrot.slane %v5559_v59, 1  ;;  %v4115_v27 = vpack.i.bf16 %v5556_v46, %v5544_v30 }
 0x3d9   : > { %v4105_v40 = vpack.i.bf16 %v5541_v31, %v5538_v34  ;;  %v1836_v19 = vsel %vm607_vm0, %v1834_v56, %v1835_v17  ;;  %v1892_v20 = vsel %vm607_vm0, %v1835_v17, 0.0  ;;  %v1841_v48 = vrot.slane %v5566_v1, 1 }
 0x3da   : > { %v1757_v39 = vrot.slane %v5598_v49, 7  ;;  %v1837_v36 = vrot.slane %v5544_v30, 1  ;;  %v1838_v55 = vrot.slane %v5556_v46, 1  ;;  %v1760_v37 = vrot.slane %v5604_v8, 7 }
 0x3db   : > { %v1762_v35 = vrot.slane %v5607_v26, 7  ;;  %v1763_v31 = vrot.slane %v5610_v52, 7  ;;  %4116 = vrot.lane.b32.xlu0 %v4115_v27, %s4312_s24  ;;  %v1766_v5 = vrot.slane %v5616_v61, 7  ;;  %v1768_v56 = vrot.slane %v5619_v58, 7 }
 0x3dc   : > { %4106 = vrot.lane.b32.xlu1 %v4105_v40, %s4312_s24  ;;  %v4110_v17 = vpack.i.bf16 %v1892_v20, %v1836_v19  ;;  %v5688_v46 = vsel %vm510_vm1, %v1735_v57, %v1736_v54  ;;  %v1769_v22 = vrot.slane %v5622_v47, 7  ;;  %v1842_v62 = vsel %vm607_vm0, %v1840_v2, %v1841_v48 }
 0x3dd   : > { %v1894_v53 = vsel %vm607_vm0, %v1841_v48, 0.0  ;;  %v5696_v27 = vsel %vm510_vm1, %v1732_v12, %v1733_v51  ;;  %v1839_v40 = vsel %vm607_vm0, %v1837_v36, %v1838_v55  ;;  %v1893_v19 = vsel %vm607_vm0, %v1838_v55, 0.0 }
 0x3de   : > { %v5704_v54 = vsel %vm510_vm1, %v1729_v60, %v1730_v6  ;;  %v5709_v2 = vsel %vm510_vm1, %v6478_v10, %v1745_v32  ;;  %v1771_v20 = vrot.slane %v5625_v14, 7  ;;  %v1772_v51 = vrot.slane %v5628_v45, 7 }
 0x3df   : > { %4111 = vrot.lane.b32.xlu2 %v4110_v17, %s4313_s22  ;;  %v5716_v48 = vsel %vm510_vm1, %v6477_v13, %v1742_v44  ;;  %v5721_v36 = vsel %vm510_vm1, %v1738_v41, %v1739_v24  ;;  %v6480_v6 = vrot.slane %v5631_v43, 7  ;;  %v1775_v55 = vrot.slane %v5634_v38, 7 }
 0x3e0   : > { %v5728_v32 = vsel %vm510_vm1, %v6479_v33, %v1754_v25  ;;  %v5733_v17 = vsel %vm510_vm1, %v1750_v29, %v1751_v63  ;;  %v4130_v44 = vpack.i.bf16 %v1894_v53, %v1842_v62  ;;  %v4120_v13 = vpack.i.bf16 %v1893_v19, %v1839_v40 }
 0x3e1   : > { %v5738_v24 = vsel %vm510_vm1, %v1747_v3, %v1748_v15  ;;  %v5743_v10 = vsel %vm510_vm1, %v1762_v35, %v1763_v31  ;;  %v6516_v25 = vrot.slane %v5601_v16, 7  ;;  %v6517_v63 = vrot.slane %v5595_v23, 7 }
 0x3e2   : > { %v5760_v15 = vsel %vm510_vm1, %v1771_v20, %v1772_v51  ;;  %v5765_v31 = vsel %vm510_vm1, %v1768_v56, %v1769_v22  ;;  %v1843_v40 = vrot.slane %v5569_v42, 1  ;;  %v1844_v19 = vrot.slane %v5572_v28, 1 }
 0x3e3   : > { %v5748_v33 = vsel %vm510_vm1, %v6516_v25, %v1760_v37  ;;  %v5753_v62 = vsel %vm510_vm1, %v6517_v63, %v1757_v39  ;;  %4131 = vrot.lane.b32.xlu0 %v4130_v44, %s4313_s22  ;;  %v4125_v37 = vpack.i.bf16 %v5566_v1, %v5559_v59  ;;  %v6518_v39 = vrot.slane %v5613_v21, 7  ;;  %v3998_v1 = vld [vmem:[%s6461_s7 + $0x40] sm:$0xff] }
 0x3e4   : > { %4121 = vrot.lane.b32.xlu1 %v4120_v13, %s4313_s22  ;;  %v5777_v13 = vsel %vm510_vm1, %v6480_v6, %v1775_v55  ;;  %2792 = vmatpush.bf16.msrb.mxu0 %v3998_v1  ;;  %v4145_v22 = vpack.i.bf16 %v5578_v7, %v5575_v4  ;;  %v1845_v51 = vsel %vm607_vm0, %v1843_v40, %v1844_v19  ;;  %v1895_v55 = vsel %vm607_vm0, %v1844_v19, 0.0 }
 0x3e5   : > { %v5772_v53 = vsel %vm510_vm1, %v6518_v39, %v1766_v5  ;;  %v4135_v5 = vpack.i.bf16 %v5572_v28, %v5569_v42  ;;  %v1846_v44 = vrot.slane %v5575_v4, 1  ;;  %v1849_v25 = vrot.slane %v5581_v9, 1  ;;  %v4020_v28 = vld [vmem:[%s6461_s7 + $0x70] sm:$0xff] }
 0x3e6   : > { %v1850_v63 = vrot.slane %v5584_v50, 1  ;;  %v4140_v39 = vpack.i.bf16 %v1895_v55, %v1845_v51  ;;  %3123 = vmatpush.bf16.msrb.mxu1 %v4020_v28  ;;  %v1852_v51 = vrot.slane %v5595_v23, 1  ;;  %v1853_v55 = vrot.slane %v5598_v49, 1 }
 0x3e7   : > { %4126 = vrot.lane.b32.xlu2 %v4125_v37, %s4312_s24  ;;  %v1847_v37 = vrot.slane %v5578_v7, 1  ;;  %v1859_v28 = vrot.slane %v5610_v52, 1  ;;  %v6519_v34 = vrot.slane %v5559_v59, 7  ;;  %v6521_v42 = vrot.slane %v5581_v9, 7 }
 0x3e8   : > { %v1851_v40 = vsel %vm607_vm0, %v1849_v25, %v1850_v63  ;;  %v1897_v19 = vsel %vm607_vm0, %v1850_v63, 0.0  ;;  %v4165_v25 = vpack.i.bf16 %v5598_v49, %v5595_v23  ;;  %v1854_v63 = vsel %vm607_vm0, %v1852_v51, %v1853_v55 }
 0x3e9   : > { %v1848_v1 = vsel %vm607_vm0, %v1846_v44, %v1847_v37  ;;  %v1896_v7 = vsel %vm607_vm0, %v1847_v37, 0.0  ;;  %v4160_v6 = vpack.i.bf16 %v1897_v19, %v1851_v40  ;;  %v4175_v44 = vpack.i.bf16 %v5604_v8, %v5601_v16 }
 0x3ea   : > { %v1855_v37 = vrot.slane %v5601_v16, 1  ;;  %v1900_v19 = vsel %vm607_vm0, %v1859_v28, 0.0 }
 0x3eb   : > { %4146 = vrot.lane.b32.xlu0 %v4145_v22, %s4312_s24  ;;  %v4150_v22 = vpack.i.bf16 %v1896_v7, %v1848_v1 }
 0x3ec   : > { %4136 = vrot.lane.b32.xlu1 %v4135_v5, %s4312_s24  ;;  %v4155_v5 = vpack.i.bf16 %v5584_v50, %v5581_v9  ;;  %v1858_v50 = vrot.slane %v5607_v26, 1 }
 0x3ee   : > { %v1860_v49 = vsel %vm607_vm0, %v1858_v50, %v1859_v28 }
 0x3ef   : > { %4141 = vrot.lane.b32.xlu2 %v4140_v39, %s4313_s22  ;;  %v1856_v39 = vrot.slane %v5604_v8, 1  ;;  %v4019_v8 = vld [vmem:[%s6461_s7 + $0x68] sm:$0xff]  ;;  %v4190_v51 = vpack.i.bf16 %v1900_v19, %v1860_v49  ;;  %v1868_v49 = vrot.slane %v5628_v45, 1  ;;  %v1865_v19 = vrot.slane %v5622_v47, 1 }
 0x3f0   : > { %3124 = vmatpush.bf16.msrb.mxu1 %v4019_v8 }
 0x3f1   : > { %v1857_v1 = vsel %vm607_vm0, %v1855_v37, %v1856_v39  ;;  %v1899_v7 = vsel %vm607_vm0, %v1856_v39, 0.0  ;;  %v4195_v37 = vpack.i.bf16 %v5616_v61, %v5613_v21  ;;  %v1864_v39 = vrot.slane %v5619_v58, 1 }
 0x3f3   : > { %4161 = vrot.lane.b32.xlu0 %v4160_v6, %s4313_s22  ;;  %v1898_v6 = vsel %vm607_vm0, %v1853_v55, 0.0  ;;  %v4180_v55 = vpack.i.bf16 %v1899_v7, %v1857_v1  ;;  %v3977_v1 = vld [vmem:[%s6461_s7 + $0x18] sm:$0xff]  ;;  %v1866_v8 = vsel %vm607_vm0, %v1864_v39, %v1865_v19  ;;  %v4018_v39 = vld [vmem:[%s6461_s7 + $0x60] sm:$0xff] }
 0x3f4   : > { %4151 = vrot.lane.b32.xlu1 %v4150_v22, %s4313_s22  ;;  %v4170_v40 = vpack.i.bf16 %v1898_v6, %v1854_v63  ;;  %v3997_v22 = vld [vmem:[%s6461_s7 + $0x38] sm:$0xff]  ;;  %v1862_v63 = vrot.slane %v5616_v61, 1  ;;  %v4205_v6 = vpack.i.bf16 %v5622_v47, %v5619_v58  ;;  %v1902_v47 = vsel %vm607_vm0, %v1865_v19, 0.0  ;;  %3125 = vmatpush.bf16.msrb.mxu1 %v4018_v39 }
 0x3f5   : > { %2793 = vmatpush.bf16.msrb.mxu0 %v3997_v22  ;;  %v1903_v22 = vsel %vm607_vm0, %v1868_v49, 0.0 }
 0x3f6   : > { %v1901_v28 = vsel %vm607_vm0, %v1862_v63, 0.0 }
 0x3f7   : > { %4156 = vrot.lane.b32.xlu2 %v4155_v5, %s4312_s24  ;;  %v3979_v5 = vld [vmem:[%s6461_s7 + $0x28] sm:$0xff] }
 0x3f8   : > { %2459 = vmatpush.bf16.msrb.mxu3 %v3979_v5 }
 0x3fb   : > { %4176 = vrot.lane.b32.xlu0 %v4175_v44, %s4312_s24  ;;  %v4185_v44 = vpack.i.bf16 %v5610_v52, %v5607_v26  ;;  %v3978_v52 = vld [vmem:[%s6461_s7 + $0x20] sm:$0xff] }
 0x3fc   : > { %4166 = vrot.lane.b32.xlu1 %v4165_v25, %s4312_s24  ;;  %v1861_v25 = vrot.slane %v5613_v21, 1  ;;  %2460 = vmatpush.bf16.msrb.mxu3 %v3978_v52  ;;  %v3996_v52 = vld [vmem:[%s6461_s7 + $0x30] sm:$0xff] }
 0x3fd   : > { %2794 = vmatpush.bf16.msrb.mxu0 %v3996_v52 }
 0x3fe   : > { %v1863_v50 = vsel %vm607_vm0, %v1861_v25, %v1862_v63  ;;  %v1870_v25 = vrot.slane %v5631_v43, 1  ;;  %v1871_v63 = vrot.slane %v5634_v38, 1 }
 0x3ff   : > { %4171 = vrot.lane.b32.xlu2 %v4170_v40, %s4313_s22  ;;  %v1867_v40 = vrot.slane %v5625_v14, 1  ;;  %v4200_v61 = vpack.i.bf16 %v1901_v28, %v1863_v50 }
 0x400   : > { %2461 = vmatpush.bf16.msrb.mxu3 %v3977_v1  ;;  %v1872_v50 = vsel %vm607_vm0, %v1870_v25, %v1871_v63  ;;  %v1904_v28 = vsel %vm607_vm0, %v1871_v63, 0.0 }
 0x401   : > { %v1869_v7 = vsel %vm607_vm0, %v1867_v40, %v1868_v49  ;;  %v4314_v40 = vmov 0  }
 0x402   : > { %v4220_v5 = vpack.i.bf16 %v1903_v22, %v1869_v7  ;;  %441 = vst.msk [vmem:[#allocation2] sm:$0xf] %vm440_vm11, %v4314_v40 }
 0x403   : > { %4191 = vrot.lane.b32.xlu0 %v4190_v51, %s4313_s22  ;;  %v4210_v51 = vpack.i.bf16 %v1902_v47, %v1866_v8  ;;  %442 = vst.msk [vmem:[#allocation2 + $0x4] sm:$0xf] %vm440_vm11, %v4314_v40 }
 0x404   : > { %4181 = vrot.lane.b32.xlu1 %v4180_v55, %s4313_s22  ;;  %v3976_v55 = vld [vmem:[%s6461_s7 + $0x10] sm:$0xff]  ;;  %444 = vst.msk [vmem:[#allocation2 + $0x88] sm:$0xf] %vm440_vm11, %v4314_v40 }
 0x405   : > { %2462 = vmatpush.bf16.msrb.mxu3 %v3976_v55  ;;  %445 = vst.msk [vmem:[#allocation2 + $0x8c] sm:$0xf] %vm440_vm11, %v4314_v40  ;;  %v1809_v55 = vsel %vm510_vm1, 0.0, %v1729_v60  ;;  %v1811_v60 = vsel %vm510_vm1, 0.0, %v1735_v57 }
 0x407   : > { %4186 = vrot.lane.b32.xlu2 %v4185_v44, %s4312_s24  ;;  %v4215_v44 = vpack.i.bf16 %v5628_v45, %v5625_v14  ;;  %v3974_v45 = vld [vmem:[%s6461_s7] sm:$0xff] }
 0x40a   : > { %v3958_v19 = vld [vmem:[#allocation2] sm:$0xff] }
 0x40b   : > { %4206 = vrot.lane.b32.xlu0 %v4205_v6, %s4312_s24  ;;  %v3975_v6 = vld [vmem:[%s6461_s7 + $0x8] sm:$0xff] }
 0x40c   : > { %4196 = vrot.lane.b32.xlu1 %v4195_v37, %s4312_s24  ;;  %v4225_v37 = vpack.i.bf16 %v5634_v38, %v5631_v43  ;;  %2463 = vmatpush.bf16.msrb.mxu3 %v3975_v6  ;;  %v4230_v38 = vpack.i.bf16 %v1904_v28, %v1872_v50 }
 0x40f   : > { %4201 = vrot.lane.b32.xlu2 %v4200_v61, %s4313_s22 }
 0x410   : > { %2464 = vmatpush.bf16.msrb.mxu3 %v3974_v45 }
 0x413   : > { %4221 = vrot.lane.b32.xlu0 %v4220_v5, %s4313_s22  ;;  %3702 = vmatmul.msk.bf16.vlgmr.msrb.gmra.mxu3 %vm2408_vm12, %v3958_v19 }
 0x414   : > { %4211 = vrot.lane.b32.xlu1 %v4210_v51, %s4313_s22 }
 0x417   : > { %4216 = vrot.lane.b32.xlu2 %v4215_v44, %s4312_s24 }
 0x41c   : > { %4226 = vrot.lane.b32.xlu1 %v4225_v37, %s4312_s24  ;;  %s6331_s24 = scalar_lea.vmem [#allocation3], %s3509_s30  ;;  %s3428_s30 = scalar_lea.sflag [#allocation4], %s431_s20 }
 0x41d   : > { %s3440_s23 = sshll.u32 %s6331_s24, 4  ;;  %s3441_s23 = int_to_ptr.vmem [resolvable:$true] %s3440_s23 }
 0x41f   : > { %4231 = vrot.lane.b32.xlu2 %v4230_v38, %s4313_s22  ;;  %s4024_s22 = sshll.u32 %s4407_s29, 8 }
 0x420   : > { %s3439_s29 = scalar_lea.hbm %s6467_s13, %s4024_s22 }
 0x421   : > { %s3442_s16 = sshll.u32 %s3439_s29, 4  ;;  %s3443_s16 = int_to_ptr.hbm [resolvable:$true] %s3442_s16 }
 0x422   : > { %s4259_s22 = sshra.s32 %s3443_s16, 4  ;;  %s4260_s22 = int_to_ptr.hbm [resolvable:$true] %s4259_s22 }
 0x423   : > { %s4261_s0 = scalar_lea.hbm %s4260_s22, 256  ;;  %p4266_p0 = scmp.lt.s32.totalorder %s4260_s22, %s6467_s13 }
 0x424   : > { %p4262_p11 = scmp.ne.s32.totalorder %s4260_s22, %s4261_s0  ;;  %p4267_p1 = scmp.lt.s32.totalorder %s4265_s1, %s4261_s0 }
 0x426   : > { %p4263_p12 = pnand %p4262_p11, %p4424_p5  ;;  %p4268_p2 = por %p4267_p1, %p4266_p0 }
 0x428   : > { %p4264_p13 = pneg %p4263_p12 }
 0x429   : > { %v4082_v49 = vpop.permute.xlu2 %4081 }
 0x42a   : > { %v4084_v5 = vunpack.i.h.bf16 %v4082_v49  ;;  %v4083_v51 = vunpack.i.l.bf16 %v4082_v49  ;;  %p4269_p3 = pnand %p4268_p2, %p4264_p13 }
 0x431   : > { %v4097_v61 = vpop.permute.xlu2 %4096 }
 0x432   : > { %v4099_v28 = vunpack.i.h.bf16 %v4097_v61  ;;  %v4098_v45 = vunpack.i.l.bf16 %v4097_v61 }
 0x439   : > { %v5901_v1 = vpop.permute.xlu2 %4111 }
 0x43d   : > { %v4087_v7 = vpop.permute.xlu0 %4086  ;;  %v4077_v22 = vpop.permute.xlu1 %4076 }
 0x43e   : > { %v4079_v8 = vunpack.i.h.bf16 %v4077_v22  ;;  %v4078_v47 = vunpack.i.l.bf16 %v4077_v22  ;;  %v4089_v52 = vunpack.i.h.bf16 %v4087_v7  ;;  %v4088_v39 = vunpack.i.l.bf16 %v4087_v7 }
 0x43f   : > { %v2118_v7 = vsel %vm1520_vm6, %v5688_v46, %v4099_v28 }
 0x440   : > { %v2113_v44 = vsel %vm1520_vm6, %v1809_v55, %v4078_v47  ;;  %v2114_v25 = vsel %vm1520_vm6, %v5704_v54, %v4079_v8  ;;  %v1810_v54 = vsel %vm510_vm1, 0.0, %v1732_v12  ;;  %v2117_v8 = vsel %vm1520_vm6, %v1811_v60, %v4098_v45 }
 0x441   : > { %v2146_v63 = vsel %vm2145_vm13, %v2113_v44, %v4083_v51  ;;  %v2147_v6 = vsel %vm2145_vm13, %v2114_v25, %v4084_v5  ;;  %v4127_v18 = vpop.permute.xlu2 %4126  ;;  %v2115_v0 = vsel %vm1520_vm6, %v1810_v54, %v4088_v39  ;;  %v2116_v11 = vsel %vm1520_vm6, %v5696_v27, %v4089_v52 }
 0x442   : > { %v2178_v37 = vpack.c.bf16 %v2146_v63, %v2146_v63  ;;  %v2179_v50 = vpack.c.bf16 %v2147_v6, %v2147_v6  ;;  %v4114_v45 = vunpack.i.h.bf16 %v5901_v1  ;;  %v4113_v52 = vunpack.i.l.bf16 %v5901_v1 }
 0x443   : > { %v1812_v39 = vsel %vm510_vm1, 0.0, %v1738_v41  ;;  %v1814_v41 = vsel %vm510_vm1, 0.0, %v6519_v34 }
 0x444   : > { %2211 = vst.msk [vmem:[#allocation2 + $0x8] sm:$0xf] %vm440_vm11, %v2178_v37 }
 0x445   : > { %2212 = vst.msk [vmem:[#allocation2 + $0xc] sm:$0xf] %vm440_vm11, %v2179_v50  ;;  %v4102_v38 = vpop.permute.xlu0 %4101 }
 0x446   : > { %v4092_v40 = vpop.permute.xlu1 %4091  ;;  %v4104_v49 = vunpack.i.h.bf16 %v4102_v38  ;;  %v4103_v19 = vunpack.i.l.bf16 %v4102_v38 }
 0x447   : > { %v4094_v61 = vunpack.i.h.bf16 %v4092_v40  ;;  %v4093_v22 = vunpack.i.l.bf16 %v4092_v40 }
 0x448   : > { %v2150_v12 = vsel %vm2145_vm13, %v2117_v8, %v4103_v19  ;;  %v2151_v57 = vsel %vm2145_vm13, %v2118_v7, %v4104_v49 }
 0x449   : > { %v2149_v47 = vsel %vm2145_vm13, %v2116_v11, %v4094_v61  ;;  %v2148_v5 = vsel %vm2145_vm13, %v2115_v0, %v4093_v22  ;;  %v2182_v51 = vpack.c.bf16 %v2150_v12, %v2150_v12  ;;  %v2183_v55 = vpack.c.bf16 %v2151_v57, %v2151_v57  ;;  %v5933_v37 = vpop.permute.xlu2 %4141 }
 0x44a   : > { %v2181_v44 = vpack.c.bf16 %v2149_v47, %v2149_v47  ;;  %v2180_v25 = vpack.c.bf16 %v2148_v5, %v2148_v5  ;;  %v4129_v61 = vunpack.i.h.bf16 %v4127_v18  ;;  %v4128_v22 = vunpack.i.l.bf16 %v4127_v18 }
 0x44b   : > { %2215 = vst.msk [vmem:[#allocation2 + $0x18] sm:$0xf] %vm440_vm11, %v2182_v51 }
 0x44c   : > { %2216 = vst.msk [vmem:[#allocation2 + $0x1c] sm:$0xf] %vm440_vm11, %v2183_v55  ;;  %v3959_v46 = vld [vmem:[#allocation2 + $0x8] sm:$0xff]  ;;  %v2124_v51 = vsel %vm1520_vm6, %v5709_v2, %v4129_v61  ;;  %v2123_v59 = vsel %vm1520_vm6, %v1814_v41, %v4128_v22 }
 0x44d   : > { %v3980_v63 = vld [vmem:[#allocation2 + $0x8] sm:$0xff]  ;;  %2214 = vst.msk [vmem:[#allocation2 + $0x14] sm:$0xf] %vm440_vm11, %v2181_v44  ;;  %v4117_v27 = vpop.permute.xlu0 %4116  ;;  %3703 = vmatmul.msk.bf16.gmra.mxu3 %vm2408_vm12, %v3959_v46 }
 0x44e   : > { %v4107_v6 = vpop.permute.xlu1 %4106  ;;  %2213 = vst.msk [vmem:[#allocation2 + $0x10] sm:$0xf] %vm440_vm11, %v2180_v25  ;;  %3818 = vmatmul.msk.bf16.vlgmr.msrb.gmra.mxu0 %vm2408_vm12, %v3980_v63  ;;  %v4119_v7 = vunpack.i.h.bf16 %v4117_v27  ;;  %v4118_v8 = vunpack.i.l.bf16 %v4117_v27 }
 0x44f   : > { %v4109_v50 = vunpack.i.h.bf16 %v4107_v6  ;;  %v4108_v28 = vunpack.i.l.bf16 %v4107_v6 }
 0x450   : > { %v2122_v55 = vsel %vm1520_vm6, %v5716_v48, %v4119_v7 }
 0x451   : > { %v2120_v60 = vsel %vm1520_vm6, %v5721_v36, %v4109_v50  ;;  %v2119_v54 = vsel %vm1520_vm6, %v1812_v39, %v4108_v28  ;;  %v6520_v36 = vrot.slane %v5544_v30, 7  ;;  %v4157_v44 = vpop.permute.xlu2 %4156 }
 0x452   : > { %v2152_v38 = vsel %vm2145_vm13, %v2119_v54, %v4113_v52  ;;  %v2153_v40 = vsel %vm2145_vm13, %v2120_v60, %v4114_v45 }
 0x453   : > { %v2184_v49 = vpack.c.bf16 %v2152_v38, %v2152_v38  ;;  %v2185_v19 = vpack.c.bf16 %v2153_v40, %v2153_v40  ;;  %v1813_v1 = vsel %vm510_vm1, 0.0, %v6520_v36  ;;  %v4144_v38 = vunpack.i.h.bf16 %v5933_v37 }
 0x454   : > { %v2121_v30 = vsel %vm1520_vm6, %v1813_v1, %v4118_v8  ;;  %v4143_v40 = vunpack.i.l.bf16 %v5933_v37  ;;  %v4159_v36 = vunpack.i.h.bf16 %v4157_v44  ;;  %v4158_v1 = vunpack.i.l.bf16 %v4157_v44 }
 0x455   : > { %2217 = vst.msk [vmem:[#allocation2 + $0x20] sm:$0xf] %vm440_vm11, %v2184_v49  ;;  %v4132_v0 = vpop.permute.xlu0 %4131  ;;  %v4002_v12 = vld [vmem:[#allocation2 + $0x10] sm:$0xff]  ;;  %v1815_v49 = vsel %vm510_vm1, 0.0, %v1747_v3  ;;  %v1817_v3 = vsel %vm510_vm1, 0.0, %v6521_v42 }
 0x456   : > { %2218 = vst.msk [vmem:[#allocation2 + $0x24] sm:$0xf] %vm440_vm11, %v2185_v19  ;;  %v4122_v11 = vpop.permute.xlu1 %4121  ;;  %v4134_v57 = vunpack.i.h.bf16 %v4132_v0  ;;  %v4133_v47 = vunpack.i.l.bf16 %v4132_v0  ;;  %3934 = vmatmul.msk.bf16.vlgmr.msrb.gmra.mxu1 %vm2408_vm12, %v4002_v12  ;;  %v3960_v48 = vld [vmem:[#allocation2 + $0x10] sm:$0xff]  ;;  %v2129_v9 = vsel %vm1520_vm6, %v1817_v3, %v4158_v1 }
 0x457   : > { %v4124_v18 = vunpack.i.h.bf16 %v4122_v11  ;;  %v4123_v5 = vunpack.i.l.bf16 %v4122_v11  ;;  %v3981_v45 = vld [vmem:[#allocation2 + $0x10] sm:$0xff] }
 0x458   : > { %v2156_v25 = vsel %vm2145_vm13, %v2123_v59, %v4133_v47  ;;  %v2157_v46 = vsel %vm2145_vm13, %v2124_v51, %v4134_v57  ;;  %v4003_v57 = vld [vmem:[#allocation2 + $0x18] sm:$0xff]  ;;  %v2130_v59 = vsel %vm1520_vm6, %v5728_v32, %v4159_v36 }
 0x459   : > { %v2155_v63 = vsel %vm2145_vm13, %v2122_v55, %v4124_v18  ;;  %v2154_v27 = vsel %vm2145_vm13, %v2121_v30, %v4123_v5  ;;  %v2188_v6 = vpack.c.bf16 %v2156_v25, %v2156_v25  ;;  %v2189_v2 = vpack.c.bf16 %v2157_v46, %v2157_v46  ;;  %v4172_v8 = vpop.permute.xlu2 %4171 }
 0x45a   : > { %v2187_v50 = vpack.c.bf16 %v2155_v63, %v2155_v63  ;;  %v2186_v28 = vpack.c.bf16 %v2154_v27, %v2154_v27 }
 0x45b   : > { %2221 = vst.msk [vmem:[#allocation2 + $0x30] sm:$0xf] %vm440_vm11, %v2188_v6 }
 0x45c   : > { %2222 = vst.msk [vmem:[#allocation2 + $0x34] sm:$0xf] %vm440_vm11, %v2189_v2  ;;  %v3982_v2 = vld [vmem:[#allocation2 + $0x18] sm:$0xff] }
 0x45d   : > { %2220 = vst.msk [vmem:[#allocation2 + $0x2c] sm:$0xf] %vm440_vm11, %v2187_v50  ;;  %v4147_v52 = vpop.permute.xlu0 %4146  ;;  %3704 = vmatmul.msk.bf16.gmra.mxu3 %vm2408_vm12, %v3960_v48 }
 0x45e   : > { %v4137_v39 = vpop.permute.xlu1 %4136  ;;  %2219 = vst.msk [vmem:[#allocation2 + $0x28] sm:$0xf] %vm440_vm11, %v2186_v28  ;;  %3819 = vmatmul.msk.bf16.gmra.mxu0 %vm2408_vm12, %v3981_v45  ;;  %v4149_v0 = vunpack.i.h.bf16 %v4147_v52  ;;  %v4148_v37 = vunpack.i.l.bf16 %v4147_v52  ;;  %v4174_v52 = vunpack.i.h.bf16 %v4172_v8 }
 0x45f   : > { %v4139_v60 = vunpack.i.h.bf16 %v4137_v39  ;;  %v4138_v54 = vunpack.i.l.bf16 %v4137_v39  ;;  %v4173_v39 = vunpack.i.l.bf16 %v4172_v8 }
 0x460   : > { %v2128_v55 = vsel %vm1520_vm6, %v5733_v17, %v4149_v0  ;;  %v3961_v17 = vld [vmem:[#allocation2 + $0x18] sm:$0xff] }
 0x461   : > { %v2126_v19 = vsel %vm1520_vm6, %v5738_v24, %v4139_v60  ;;  %v2125_v61 = vsel %vm1520_vm6, %v1815_v49, %v4138_v54  ;;  %v1816_v24 = vsel %vm510_vm1, 0.0, %v1750_v29  ;;  %v4187_v6 = vpop.permute.xlu2 %4186  ;;  %v6522_v60 = vrot.slane %v5595_v23, 7 }
 0x462   : > { %v2158_v22 = vsel %vm2145_vm13, %v2125_v61, %v4143_v40  ;;  %v2159_v7 = vsel %vm2145_vm13, %v2126_v19, %v4144_v38  ;;  %v2127_v4 = vsel %vm1520_vm6, %v1816_v24, %v4148_v37  ;;  %v1820_v23 = vsel %vm510_vm1, 0.0, %v1762_v35  ;;  %v4004_v37 = vld [vmem:[#allocation2 + $0x20] sm:$0xff] }
 0x463   : > { %v2190_v34 = vpack.c.bf16 %v2158_v22, %v2158_v22  ;;  %v2191_v41 = vpack.c.bf16 %v2159_v7, %v2159_v7  ;;  %v1818_v54 = vsel %vm510_vm1, 0.0, %v6522_v60  ;;  %v4189_v7 = vunpack.i.h.bf16 %v4187_v6 }
 0x465   : > { %2223 = vst.msk [vmem:[#allocation2 + $0x38] sm:$0xf] %vm440_vm11, %v2190_v34  ;;  %v4162_v11 = vpop.permute.xlu0 %4161  ;;  %v4188_v34 = vunpack.i.l.bf16 %v4187_v6 }
 0x466   : > { %2224 = vst.msk [vmem:[#allocation2 + $0x3c] sm:$0xf] %vm440_vm11, %v2191_v41  ;;  %v4152_v12 = vpop.permute.xlu1 %4151  ;;  %v4164_v47 = vunpack.i.h.bf16 %v4162_v11  ;;  %v4163_v18 = vunpack.i.l.bf16 %v4162_v11  ;;  %3935 = vmatmul.msk.bf16.gmra.mxu1 %vm2408_vm12, %v4003_v57  ;;  %v2136_v57 = vsel %vm1520_vm6, %v5743_v10, %v4189_v7 }
 0x467   : > { %v4154_v5 = vunpack.i.h.bf16 %v4152_v12  ;;  %v4153_v51 = vunpack.i.l.bf16 %v4152_v12  ;;  %v2135_v26 = vsel %vm1520_vm6, %v1820_v23, %v4188_v34 }
 0x468   : > { %v2162_v29 = vsel %vm2145_vm13, %v2129_v9, %v4163_v18  ;;  %v2163_v30 = vsel %vm2145_vm13, %v2130_v59, %v4164_v47 }
 0x469   : > { %v2161_v44 = vsel %vm2145_vm13, %v2128_v55, %v4154_v5  ;;  %v2160_v25 = vsel %vm2145_vm13, %v2127_v4, %v4153_v51  ;;  %v2194_v46 = vpack.c.bf16 %v2162_v29, %v2162_v29  ;;  %v2195_v63 = vpack.c.bf16 %v2163_v30, %v2163_v30  ;;  %v4202_v42 = vpop.permute.xlu2 %4201  ;;  %v3983_v4 = vld [vmem:[#allocation2 + $0x20] sm:$0xff] }
 0x46a   : > { %v2193_v32 = vpack.c.bf16 %v2161_v44, %v2161_v44  ;;  %v2192_v27 = vpack.c.bf16 %v2160_v25, %v2160_v25 }
 0x46b   : > { %2227 = vst.msk [vmem:[#allocation2 + $0x48] sm:$0xf] %vm440_vm11, %v2194_v46  ;;  %v4204_v46 = vunpack.i.h.bf16 %v4202_v42 }
 0x46c   : > { %2228 = vst.msk [vmem:[#allocation2 + $0x4c] sm:$0xf] %vm440_vm11, %v2195_v63  ;;  %v4203_v63 = vunpack.i.l.bf16 %v4202_v42 }
 0x46d   : > { %2226 = vst.msk [vmem:[#allocation2 + $0x44] sm:$0xf] %vm440_vm11, %v2193_v32  ;;  %v4177_v50 = vpop.permute.xlu0 %4176  ;;  %3705 = vmatmul.msk.bf16.gmra.mxu3 %vm2408_vm12, %v3961_v17  ;;  %v6524_v32 = vrot.slane %v5613_v21, 7  ;;  %v1823_v21 = vsel %vm510_vm1, 0.0, %v1771_v20 }
 0x46e   : > { %v4167_v28 = vpop.permute.xlu1 %4166  ;;  %2225 = vst.msk [vmem:[#allocation2 + $0x40] sm:$0xf] %vm440_vm11, %v2192_v27  ;;  %3820 = vmatmul.msk.bf16.gmra.mxu0 %vm2408_vm12, %v3982_v2  ;;  %v4179_v41 = vunpack.i.h.bf16 %v4177_v50  ;;  %v4178_v36 = vunpack.i.l.bf16 %v4177_v50 }
 0x46f   : > { %v4169_v48 = vunpack.i.h.bf16 %v4167_v28  ;;  %v4168_v45 = vunpack.i.l.bf16 %v4167_v28  ;;  %v1821_v27 = vsel %vm510_vm1, 0.0, %v6524_v32 }
 0x471   : > { %v2132_v38 = vsel %vm1520_vm6, %v5753_v62, %v4169_v48  ;;  %v2131_v40 = vsel %vm1520_vm6, %v1818_v54, %v4168_v45  ;;  %v6523_v62 = vrot.slane %v5601_v16, 7  ;;  %v2134_v16 = vsel %vm1520_vm6, %v5748_v33, %v4179_v41  ;;  %v3962_v33 = vld [vmem:[#allocation2 + $0x20] sm:$0xff]  ;;  %v4217_v6 = vpop.permute.xlu2 %4216 }
 0x472   : > { %v2164_v49 = vsel %vm2145_vm13, %v2131_v40, %v4173_v39  ;;  %v2165_v19 = vsel %vm2145_vm13, %v2132_v38, %v4174_v52  ;;  %v4219_v52 = vunpack.i.h.bf16 %v4217_v6  ;;  %v4218_v39 = vunpack.i.l.bf16 %v4217_v6 }
 0x473   : > { %v2196_v61 = vpack.c.bf16 %v2164_v49, %v2164_v49  ;;  %v2197_v22 = vpack.c.bf16 %v2165_v19, %v2165_v19  ;;  %v1819_v8 = vsel %vm510_vm1, 0.0, %v6523_v62  ;;  %v4005_v49 = vld [vmem:[#allocation2 + $0x28] sm:$0xff] }
 0x474   : > { %v2133_v35 = vsel %vm1520_vm6, %v1819_v8, %v4178_v36  ;;  %v2142_v34 = vsel %vm1520_vm6, %v5760_v15, %v4219_v52  ;;  %v2141_v14 = vsel %vm1520_vm6, %v1823_v21, %v4218_v39 }
 0x475   : > { %2229 = vst.msk [vmem:[#allocation2 + $0x50] sm:$0xf] %vm440_vm11, %v2196_v61  ;;  %v4192_v1 = vpop.permute.xlu0 %4191 }
 0x476   : > { %2230 = vst.msk [vmem:[#allocation2 + $0x54] sm:$0xf] %vm440_vm11, %v2197_v22  ;;  %v4182_v0 = vpop.permute.xlu1 %4181  ;;  %v4194_v3 = vunpack.i.h.bf16 %v4192_v1  ;;  %v4193_v24 = vunpack.i.l.bf16 %v4192_v1  ;;  %3936 = vmatmul.msk.bf16.gmra.mxu1 %vm2408_vm12, %v4004_v37  ;;  %v3984_v37 = vld [vmem:[#allocation2 + $0x28] sm:$0xff] }
 0x477   : > { %v4184_v11 = vunpack.i.h.bf16 %v4182_v0  ;;  %v4183_v12 = vunpack.i.l.bf16 %v4182_v0 }
 0x478   : > { %v2168_v47 = vsel %vm2145_vm13, %v2135_v26, %v4193_v24  ;;  %v2169_v18 = vsel %vm2145_vm13, %v2136_v57, %v4194_v3  ;;  %v6525_v57 = vrot.slane %v5631_v43, 7  ;;  %v3964_v43 = vld [vmem:[#allocation2 + $0x30] sm:$0xff] }
 0x479   : > { %v2167_v5 = vsel %vm2145_vm13, %v2134_v16, %v4184_v11  ;;  %v2166_v51 = vsel %vm2145_vm13, %v2133_v35, %v4183_v12  ;;  %v2200_v59 = vpack.c.bf16 %v2168_v47, %v2168_v47  ;;  %v2201_v9 = vpack.c.bf16 %v2169_v18, %v2169_v18  ;;  %v4232_v0 = vpop.permute.xlu2 %4231 }
 0x47a   : > { %v2199_v10 = vpack.c.bf16 %v2167_v5, %v2167_v5  ;;  %v2198_v55 = vpack.c.bf16 %v2166_v51, %v2166_v51  ;;  %v4234_v11 = vunpack.i.h.bf16 %v4232_v0  ;;  %v4233_v12 = vunpack.i.l.bf16 %v4232_v0 }
 0x47b   : > { %2233 = vst.msk [vmem:[#allocation2 + $0x60] sm:$0xf] %vm440_vm11, %v2200_v59  ;;  %v1824_v26 = vsel %vm510_vm1, 0.0, %v6525_v57  ;;  %v4006_v59 = vld [vmem:[#allocation2 + $0x30] sm:$0xff] }
 0x47c   : > { %2234 = vst.msk [vmem:[#allocation2 + $0x64] sm:$0xf] %vm440_vm11, %v2201_v9  ;;  %v3985_v9 = vld [vmem:[#allocation2 + $0x30] sm:$0xff] }
 0x47d   : > { %2232 = vst.msk [vmem:[#allocation2 + $0x5c] sm:$0xf] %vm440_vm11, %v2199_v10  ;;  %v4207_v29 = vpop.permute.xlu0 %4206  ;;  %3706 = vmatmul.msk.bf16.gmra.mxu3 %vm2408_vm12, %v3962_v33  ;;  %v3965_v10 = vld [vmem:[#allocation2 + $0x38] sm:$0xff]  ;;  %v4008_v33 = vld [vmem:[#allocation2 + $0x40] sm:$0xff]  ;;  %v4010_v39 = vld [vmem:[#allocation2 + $0x50] sm:$0xff] }
 0x47e   : > { %v4197_v30 = vpop.permute.xlu1 %4196  ;;  %2231 = vst.msk [vmem:[#allocation2 + $0x58] sm:$0xf] %vm440_vm11, %v2198_v55  ;;  %3821 = vmatmul.msk.bf16.gmra.mxu0 %vm2408_vm12, %v3983_v4  ;;  %v4209_v60 = vunpack.i.h.bf16 %v4207_v29  ;;  %v4208_v54 = vunpack.i.l.bf16 %v4207_v29  ;;  %v3986_v55 = vld [vmem:[#allocation2 + $0x38] sm:$0xff]  ;;  %v3966_v4 = vld [vmem:[#allocation2 + $0x40] sm:$0xff] }
 0x47f   : > { %v4199_v44 = vunpack.i.h.bf16 %v4197_v30  ;;  %v4198_v25 = vunpack.i.l.bf16 %v4197_v30  ;;  %v3987_v29 = vld [vmem:[#allocation2 + $0x40] sm:$0xff] }
 0x480   : > { %v2140_v20 = vsel %vm1520_vm6, %v5765_v31, %v4209_v60  ;;  %v3963_v31 = vld [vmem:[#allocation2 + $0x28] sm:$0xff] }
 0x481   : > { %v2138_v17 = vsel %vm1520_vm6, %v5772_v53, %v4199_v44  ;;  %v2137_v2 = vsel %vm1520_vm6, %v1821_v27, %v4198_v25  ;;  %v1822_v53 = vsel %vm510_vm1, 0.0, %v1768_v56  ;;  %v3292_v44 = vld [vmem:[%s6463_s9 + $0x78] sm:$0xff]  ;;  %v6098_v25 = vld [vmem:[%s6462_s8] ss:$0 sm:$0xff] }
 0x482   : > { %v2170_v50 = vsel %vm2145_vm13, %v2137_v2, %v4203_v63  ;;  %v2171_v28 = vsel %vm2145_vm13, %v2138_v17, %v4204_v46  ;;  %v2139_v58 = vsel %vm1520_vm6, %v1822_v53, %v4208_v54  ;;  %3299 = vmatpush.msra.mxu2 %v3292_v44  ;;  %v4009_v46 = vld [vmem:[#allocation2 + $0x48] sm:$0xff] }
 0x483   : > { %v2202_v48 = vpack.c.bf16 %v2170_v50, %v2170_v50  ;;  %v2203_v45 = vpack.c.bf16 %v2171_v28, %v2171_v28  ;;  %v3967_v17 = vld [vmem:[#allocation2 + $0x48] sm:$0xff]  ;;  %v3291_v50 = vld [vmem:[%s6463_s9 + $0x70] sm:$0xff] }
 0x484   : > { %v3988_v2 = vld [vmem:[#allocation2 + $0x48] sm:$0xff]  ;;  %3300 = vmatpush.msra.mxu2 %v3291_v50 }
 0x485   : > { %2235 = vst.msk [vmem:[#allocation2 + $0x68] sm:$0xf] %vm440_vm11, %v2202_v48  ;;  %v4222_v38 = vpop.permute.xlu0 %4221  ;;  %v3969_v0 = vld [vmem:[#allocation2 + $0x58] sm:$0xff] }
 0x486   : > { %2236 = vst.msk [vmem:[#allocation2 + $0x6c] sm:$0xf] %vm440_vm11, %v2203_v45  ;;  %v4212_v40 = vpop.permute.xlu1 %4211  ;;  %v4224_v19 = vunpack.i.h.bf16 %v4222_v38  ;;  %v4223_v61 = vunpack.i.l.bf16 %v4222_v38  ;;  %3937 = vmatmul.msk.bf16.gmra.mxu1 %vm2408_vm12, %v4005_v49 }
 0x487   : > { %v4214_v22 = vunpack.i.h.bf16 %v4212_v40  ;;  %v4213_v7 = vunpack.i.l.bf16 %v4212_v40 }
 0x488   : > { %v2174_v56 = vsel %vm2145_vm13, %v2141_v14, %v4223_v61  ;;  %v2175_v41 = vsel %vm2145_vm13, %v2142_v34, %v4224_v19  ;;  %v3968_v19 = vld [vmem:[#allocation2 + $0x50] sm:$0xff] }
 0x489   : > { %v2173_v36 = vsel %vm2145_vm13, %v2140_v20, %v4214_v22  ;;  %v2172_v23 = vsel %vm2145_vm13, %v2139_v58, %v4213_v7  ;;  %v2206_v62 = vpack.c.bf16 %v2174_v56, %v2174_v56  ;;  %v2207_v8 = vpack.c.bf16 %v2175_v41, %v2175_v41  ;;  %v3989_v61 = vld [vmem:[#allocation2 + $0x50] sm:$0xff]  ;;  %v3290_v7 = vld [vmem:[%s6463_s9 + $0x68] sm:$0xff] }
 0x48a   : > { %v2205_v15 = vpack.c.bf16 %v2173_v36, %v2173_v36  ;;  %v2204_v1 = vpack.c.bf16 %v2172_v23, %v2172_v23  ;;  %3301 = vmatpush.msra.mxu2 %v3290_v7  ;;  %v4011_v36 = vld [vmem:[#allocation2 + $0x58] sm:$0xff] }
 0x48b   : > { %2239 = vst.msk [vmem:[#allocation2 + $0x78] sm:$0xf] %vm440_vm11, %v2206_v62 }
 0x48c   : > { %2240 = vst.msk [vmem:[#allocation2 + $0x7c] sm:$0xf] %vm440_vm11, %v2207_v8 }
 0x48d   : > { %2238 = vst.msk [vmem:[#allocation2 + $0x74] sm:$0xf] %vm440_vm11, %v2205_v15  ;;  %3707 = vmatmul.msk.bf16.gmra.mxu3 %vm2408_vm12, %v3963_v31  ;;  %v3990_v31 = vld [vmem:[#allocation2 + $0x58] sm:$0xff]  ;;  %v4013_v44 = vld [vmem:[#allocation2 + $0x68] sm:$0xff] }
 0x48e   : > { %v4227_v42 = vpop.permute.xlu1 %4226  ;;  %2237 = vst.msk [vmem:[#allocation2 + $0x70] sm:$0xf] %vm440_vm11, %v2204_v1  ;;  %3822 = vmatmul.msk.bf16.gmra.mxu0 %vm2408_vm12, %v3984_v37 }
 0x48f   : > { %v4229_v3 = vunpack.i.h.bf16 %v4227_v42  ;;  %v4228_v24 = vunpack.i.l.bf16 %v4227_v42  ;;  %v3289_v42 = vld [vmem:[%s6463_s9 + $0x60] sm:$0xff] }
 0x490   : > { %3302 = vmatpush.msra.mxu2 %v3289_v42 }
 0x491   : > { %v2144_v16 = vsel %vm1520_vm6, %v5777_v13, %v4229_v3  ;;  %v2143_v35 = vsel %vm1520_vm6, %v1824_v26, %v4228_v24  ;;  %v4007_v13 = vld [vmem:[#allocation2 + $0x38] sm:$0xff] }
 0x492   : > { %v2176_v47 = vsel %vm2145_vm13, %v2143_v35, %v4233_v12  ;;  %v2177_v18 = vsel %vm2145_vm13, %v2144_v16, %v4234_v11  ;;  %v4012_v16 = vld [vmem:[#allocation2 + $0x60] sm:$0xff] }
 0x493   : > { %v2208_v5 = vpack.c.bf16 %v2176_v47, %v2176_v47  ;;  %v2209_v51 = vpack.c.bf16 %v2177_v18, %v2177_v18 }
 0x495   : > { %2241 = vst.msk [vmem:[#allocation2 + $0x80] sm:$0xf] %vm440_vm11, %v2208_v5  ;;  %v3972_v7 = vld [vmem:[#allocation2 + $0x70] sm:$0xff] }
 0x496   : > { %2242 = vst.msk [vmem:[#allocation2 + $0x84] sm:$0xf] %vm440_vm11, %v2209_v51  ;;  %3938 = vmatmul.msk.bf16.gmra.mxu1 %vm2408_vm12, %v4006_v59  ;;  %v2466_v30 = vpop.f32.mrf.mxu3  ;;  %v3970_v59 = vld [vmem:[#allocation2 + $0x60] sm:$0xff] }
 0x497   : > { %v2546_v32 = vadd.f32 %v6098_v25, %v2466_v30 }
 0x49d   : > { %3708 = vmatmul.msk.bf16.gmra.mxu3 %vm2408_vm12, %v3964_v43  ;;  %v3991_v43 = vld [vmem:[#allocation2 + $0x60] sm:$0xff] }
 0x49e   : > { %3823 = vmatmul.msk.bf16.gmra.mxu0 %vm2408_vm12, %v3985_v9  ;;  %v2468_v63 = vpop.f32.mrf.mxu3 }
 0x49f   : > { %v2547_v60 = vadd.f32 %v6098_v25, %v2468_v63 }
 0x4a6   : > { %3939 = vmatmul.msk.bf16.gmra.mxu1 %vm2408_vm12, %v4007_v13  ;;  %v3288_v13 = vld [vmem:[%s6463_s9 + $0x58] sm:$0xff] }
 0x4a7   : > { %3303 = vmatpush.msra.mxu2 %v3288_v13 }
 0x4ad   : > { %3709 = vmatmul.msk.bf16.gmra.mxu3 %vm2408_vm12, %v3965_v10 }
 0x4ae   : > { %3824 = vmatmul.msk.bf16.gmra.mxu0 %vm2408_vm12, %v3986_v55 }
 0x4b6   : > { %3940 = vmatmul.msk.bf16.gmra.mxu1 %vm2408_vm12, %v4008_v33 }
 0x4bd   : > { %3710 = vmatmul.msk.bf16.gmra.mxu3 %vm2408_vm12, %v3966_v4 }
 0x4be   : > { %3825 = vmatmul.msk.bf16.gmra.mxu0 %vm2408_vm12, %v3987_v29 }
 0x4c6   : > { %3941 = vmatmul.msk.bf16.gmra.mxu1 %vm2408_vm12, %v4009_v46 }
 0x4cb   : > { %v2796_v27 = vpop.f32.mrf.mxu0 }
 0x4cc   : > { %v2876_v6 = vadd.f32 %v2796_v27, %v2546_v32 }
 0x4cd   : > { %3711 = vmatmul.msk.bf16.gmra.mxu3 %vm2408_vm12, %v3967_v17  ;;  %v3971_v17 = vld [vmem:[#allocation2 + $0x68] sm:$0xff] }
 0x4ce   : > { %3826 = vmatmul.msk.bf16.gmra.mxu0 %vm2408_vm12, %v3988_v2  ;;  %v3992_v2 = vld [vmem:[#allocation2 + $0x68] sm:$0xff] }
 0x4d0   : > { %v2471_v28 = vpop.f32.mrf.mxu3 }
 0x4d1   : > { %v2548_v21 = vadd.f32 %v6098_v25, %v2471_v28  ;;  %v3287_v28 = vld [vmem:[%s6463_s9 + $0x50] sm:$0xff] }
 0x4d2   : > { %3304 = vmatpush.msra.mxu2 %v3287_v28 }
 0x4d3   : > { %v2798_v48 = vpop.f32.mrf.mxu0  ;;  %v3127_v45 = vpop.f32.mrf.mxu1 }
 0x4d4   : > { %v6107_v52 = vadd.f32 %v3127_v45, %v2876_v6  ;;  %v2877_v53 = vadd.f32 %v2798_v48, %v2547_v60 }
 0x4d6   : > { %3942 = vmatmul.msk.bf16.gmra.mxu1 %vm2408_vm12, %v4010_v39 }
 0x4d8   : > { %v2473_v54 = vpop.f32.mrf.mxu3 }
 0x4d9   : > { %v2549_v14 = vadd.f32 %v6098_v25, %v2473_v54 }
 0x4db   : > { %v2801_v38 = vpop.f32.mrf.mxu0  ;;  %v3129_v40 = vpop.f32.mrf.mxu1 }
 0x4dc   : > { %v2878_v49 = vadd.f32 %v2801_v38, %v2548_v21  ;;  %v6112_v22 = vadd.f32 %v3129_v40, %v2877_v53  ;;  %v4014_v53 = vld [vmem:[#allocation2 + $0x70] sm:$0xff] }
 0x4dd   : > { %3712 = vmatmul.msk.bf16.gmra.mxu3 %vm2408_vm12, %v3968_v19 }
 0x4de   : > { %3827 = vmatmul.msk.bf16.gmra.mxu0 %vm2408_vm12, %v3989_v61 }
 0x4e0   : > { %v2476_v34 = vpop.f32.mrf.mxu3 }
 0x4e1   : > { %v2550_v62 = vadd.f32 %v6098_v25, %v2476_v34  ;;  %v3993_v34 = vld [vmem:[#allocation2 + $0x70] sm:$0xff] }
 0x4e3   : > { %v2803_v20 = vpop.f32.mrf.mxu0  ;;  %v3132_v58 = vpop.f32.mrf.mxu1 }
 0x4e4   : > { %v2879_v56 = vadd.f32 %v2803_v20, %v2549_v14  ;;  %v6120_v41 = vadd.f32 %v3132_v58, %v2878_v49  ;;  %v3286_v20 = vld [vmem:[%s6463_s9 + $0x48] sm:$0xff] }
 0x4e5   : > { %3305 = vmatpush.msra.mxu2 %v3286_v20 }
 0x4e6   : > { %3943 = vmatmul.msk.bf16.gmra.mxu1 %vm2408_vm12, %v4011_v36 }
 0x4e8   : > { %v2478_v23 = vpop.f32.mrf.mxu3 }
 0x4e9   : > { %v2551_v24 = vadd.f32 %v6098_v25, %v2478_v23 }
 0x4eb   : > { %v2806_v8 = vpop.f32.mrf.mxu0  ;;  %v3134_v15 = vpop.f32.mrf.mxu1 }
 0x4ec   : > { %v2880_v1 = vadd.f32 %v2806_v8, %v2550_v62  ;;  %v6124_v37 = vadd.f32 %v3134_v15, %v2879_v56  ;;  %v4015_v15 = vld [vmem:[#allocation2 + $0x78] sm:$0xff] }
 0x4ed   : > { %3713 = vmatmul.msk.bf16.gmra.mxu3 %vm2408_vm12, %v3969_v0 }
 0x4ee   : > { %3828 = vmatmul.msk.bf16.gmra.mxu0 %vm2408_vm12, %v3990_v31 }
 0x4f0   : > { %v2481_v3 = vpop.f32.mrf.mxu3 }
 0x4f1   : > { %v2552_v47 = vadd.f32 %v6098_v25, %v2481_v3 }
 0x4f3   : > { %v2808_v11 = vpop.f32.mrf.mxu0  ;;  %v3137_v12 = vpop.f32.mrf.mxu1 }
 0x4f4   : > { %v2881_v57 = vadd.f32 %v2808_v11, %v2551_v24  ;;  %v6132_v26 = vadd.f32 %v3137_v12, %v2880_v1  ;;  %v3973_v24 = vld [vmem:[#allocation2 + $0x78] sm:$0xff] }
 0x4f5   : > { %v3994_v11 = vld [vmem:[#allocation2 + $0x78] sm:$0xff] }
 0x4f6   : > { %3944 = vmatmul.msk.bf16.gmra.mxu1 %vm2408_vm12, %v4012_v16 }
 0x4f8   : > { %v2483_v35 = vpop.f32.mrf.mxu3 }
 0x4f9   : > { %v2553_v55 = vadd.f32 %v6098_v25, %v2483_v35 }
 0x4fb   : > { %v2811_v18 = vpop.f32.mrf.mxu0  ;;  %v3139_v5 = vpop.f32.mrf.mxu1 }
 0x4fc   : > { %v2882_v51 = vadd.f32 %v2811_v18, %v2552_v47  ;;  %v6136_v9 = vadd.f32 %v3139_v5, %v2881_v57  ;;  %v3285_v57 = vld [vmem:[%s6463_s9 + $0x40] sm:$0xff] }
 0x4fd   : > { %3714 = vmatmul.msk.bf16.gmra.mxu3 %vm2408_vm12, %v3970_v59  ;;  %3306 = vmatpush.msra.mxu2 %v3285_v57  ;;  %v4016_v59 = vld [vmem:[#allocation2 + $0x80] sm:$0xff] }
 0x4fe   : > { %3829 = vmatmul.msk.bf16.gmra.mxu0 %vm2408_vm12, %v3991_v43 }
 0x500   : > { %v2486_v10 = vpop.f32.mrf.mxu3 }
 0x501   : > { %v2554_v63 = vadd.f32 %v6098_v25, %v2486_v10 }
 0x503   : > { %v2813_v33 = vpop.f32.mrf.mxu0  ;;  %v3142_v4 = vpop.f32.mrf.mxu1 }
 0x504   : > { %v2883_v29 = vadd.f32 %v2813_v33, %v2553_v55  ;;  %v6144_v30 = vadd.f32 %v3142_v4, %v2882_v51  ;;  %v3995_v4 = vld [vmem:[#allocation2 + $0x80] sm:$0xff] }
 0x506   : > { %3945 = vmatmul.msk.bf16.gmra.mxu1 %vm2408_vm12, %v4013_v44  ;;  %v3284_v44 = vld [vmem:[%s6463_s9 + $0x38] sm:$0xff] }
 0x507   : > { %3307 = vmatpush.msra.mxu2 %v3284_v44 }
 0x508   : > { %v2488_v46 = vpop.f32.mrf.mxu3 }
 0x509   : > { %v2555_v45 = vadd.f32 %v6098_v25, %v2488_v46 }
 0x50b   : > { %v2816_v32 = vpop.f32.mrf.mxu0  ;;  %v3144_v27 = vpop.f32.mrf.mxu1 }
 0x50c   : > { %v2884_v6 = vadd.f32 %v2816_v32, %v2554_v63  ;;  %v6148_v50 = vadd.f32 %v3144_v27, %v2883_v29  ;;  %v4017_v27 = vld [vmem:[#allocation2 + $0x88] sm:$0xff] }
 0x50d   : > { %3715 = vmatmul.msk.bf16.gmra.mxu3 %vm2408_vm12, %v3971_v17 }
 0x50e   : > { %3830 = vmatmul.msk.bf16.gmra.mxu0 %vm2408_vm12, %v3992_v2 }
 0x510   : > { %v2491_v48 = vpop.f32.mrf.mxu3 }
 0x511   : > { %v2556_v40 = vadd.f32 %v6098_v25, %v2491_v48 }
 0x513   : > { %v2818_v39 = vpop.f32.mrf.mxu0  ;;  %v3147_v60 = vpop.f32.mrf.mxu1 }
 0x514   : > { %v2885_v54 = vadd.f32 %v2818_v39, %v2555_v45  ;;  %v6156_v21 = vadd.f32 %v3147_v60, %v2884_v6 }
 0x516   : > { %3946 = vmatmul.msk.bf16.gmra.mxu1 %vm2408_vm12, %v4014_v53  ;;  %v3283_v53 = vld [vmem:[%s6463_s9 + $0x30] sm:$0xff] }
 0x517   : > { %3308 = vmatpush.msra.mxu2 %v3283_v53 }
 0x518   : > { %v2493_v38 = vpop.f32.mrf.mxu3 }
 0x519   : > { %v2557_v56 = vadd.f32 %v6098_v25, %v2493_v38 }
 0x51b   : > { %v2821_v49 = vpop.f32.mrf.mxu0  ;;  %v3149_v19 = vpop.f32.mrf.mxu1 }
 0x51c   : > { %v2886_v61 = vadd.f32 %v2821_v49, %v2556_v40  ;;  %v6160_v14 = vadd.f32 %v3149_v19, %v2885_v54 }
 0x51d   : > { %3716 = vmatmul.msk.bf16.gmra.mxu3 %vm2408_vm12, %v3972_v7 }
 0x51e   : > { %3831 = vmatmul.msk.bf16.gmra.mxu0 %vm2408_vm12, %v3993_v34 }
 0x520   : > { %v2496_v58 = vpop.f32.mrf.mxu3 }
 0x521   : > { %v2558_v0 = vadd.f32 %v6098_v25, %v2496_v58 }
 0x523   : > { %v2823_v36 = vpop.f32.mrf.mxu0  ;;  %v3152_v23 = vpop.f32.mrf.mxu1 }
 0x524   : > { %v2887_v62 = vadd.f32 %v2823_v36, %v2557_v56  ;;  %v6168_v8 = vadd.f32 %v3152_v23, %v2886_v61 }
 0x526   : > { %3947 = vmatmul.msk.bf16.gmra.mxu1 %vm2408_vm12, %v4015_v15 }
 0x528   : > { %v2498_v1 = vpop.f32.mrf.mxu3 }
 0x529   : > { %v2559_v35 = vadd.f32 %v6098_v25, %v2498_v1 }
 0x52b   : > { %v2826_v31 = vpop.f32.mrf.mxu0  ;;  %v3154_v42 = vpop.f32.mrf.mxu1 }
 0x52c   : > { %v2888_v3 = vadd.f32 %v2826_v31, %v2558_v0  ;;  %v6172_v12 = vadd.f32 %v3154_v42, %v2887_v62  ;;  %v3282_v62 = vld [vmem:[%s6463_s9 + $0x28] sm:$0xff] }
 0x52d   : > { %3717 = vmatmul.msk.bf16.gmra.mxu3 %vm2408_vm12, %v3973_v24  ;;  %3309 = vmatpush.msra.mxu2 %v3282_v62 }
 0x52e   : > { %3832 = vmatmul.msk.bf16.gmra.mxu0 %vm2408_vm12, %v3994_v11 }
 0x530   : > { %v2501_v16 = vpop.f32.mrf.mxu3 }
 0x531   : > { %v2560_v13 = vadd.f32 %v6098_v25, %v2501_v16 }
 0x533   : > { %v2828_v47 = vpop.f32.mrf.mxu0  ;;  %v3157_v18 = vpop.f32.mrf.mxu1 }
 0x534   : > { %v2889_v5 = vadd.f32 %v2828_v47, %v2559_v35  ;;  %v6180_v51 = vadd.f32 %v3157_v18, %v2888_v3  ;;  %v3281_v18 = vld [vmem:[%s6463_s9 + $0x20] sm:$0xff] }
 0x535   : > { %3310 = vmatpush.msra.mxu2 %v3281_v18 }
 0x536   : > { %3948 = vmatmul.msk.bf16.gmra.mxu1 %vm2408_vm12, %v4016_v59 }
 0x538   : > { %v2503_v43 = vpop.f32.mrf.mxu3 }
 0x539   : > { %v2561_v63 = vadd.f32 %v6098_v25, %v2503_v43 }
 0x53b   : > { %v2831_v10 = vpop.f32.mrf.mxu0  ;;  %v3159_v55 = vpop.f32.mrf.mxu1 }
 0x53c   : > { %v2890_v33 = vadd.f32 %v2831_v10, %v2560_v13  ;;  %v6184_v29 = vadd.f32 %v3159_v55, %v2889_v5 }
 0x53e   : > { %3833 = vmatmul.msk.bf16.gmra.mxu0 %vm2408_vm12, %v3995_v4  ;;  %v3280_v4 = vld [vmem:[%s6463_s9 + $0x18] sm:$0xff] }
 0x53f   : > { %3311 = vmatpush.msra.mxu2 %v3280_v4 }
 0x540   : > { %v2506_v46 = vpop.f32.mrf.mxu3 }
 0x541   : > { %v2562_v48 = vadd.f32 %v6098_v25, %v2506_v46 }
 0x543   : > { %v2833_v32 = vpop.f32.mrf.mxu0  ;;  %v3162_v6 = vpop.f32.mrf.mxu1 }
 0x544   : > { %v2891_v17 = vadd.f32 %v2833_v32, %v2561_v63  ;;  %v6191_v2 = vadd.f32 %v3162_v6, %v2890_v33 }
 0x546   : > { %3949 = vmatmul.msk.bf16.gmra.mxu1 %vm2408_vm12, %v4017_v27 }
 0x548   : > { %v2508_v28 = vpop.f32.mrf.mxu3 }
 0x549   : > { %v2563_v40 = vadd.f32 %v6098_v25, %v2508_v28  ;;  %v3239_v28 = vadd.f32 %v6112_v22, %v6107_v52 }
 0x54b   : > { %v2836_v45 = vpop.f32.mrf.mxu0  ;;  %v3164_v39 = vpop.f32.mrf.mxu1 }
 0x54c   : > { %v2892_v60 = vadd.f32 %v2836_v45, %v2562_v48  ;;  %v6195_v54 = vadd.f32 %v3164_v39, %v2891_v17  ;;  %v3279_v17 = vld [vmem:[%s6463_s9 + $0x10] sm:$0xff] }
 0x54d   : > { %3312 = vmatpush.msra.mxu2 %v3279_v17 }
 0x550   : > { %v2511_v38 = vpop.f32.mrf.mxu3 }
 0x551   : > { %v2564_v20 = vadd.f32 %v6098_v25, %v2511_v38 }
 0x553   : > { %v2838_v49 = vpop.f32.mrf.mxu0  ;;  %v3167_v19 = vpop.f32.mrf.mxu1 }
 0x554   : > { %v2893_v61 = vadd.f32 %v2838_v49, %v2563_v40  ;;  %v6201_v7 = vadd.f32 %v3167_v19, %v2892_v60  ;;  %v3240_v60 = vadd.f32 %v3239_v28, %v6120_v41 }
 0x556   : > { %v3241_v53 = vadd.f32 %v3240_v60, %v6124_v37 }
 0x558   : > { %v2513_v34 = vpop.f32.mrf.mxu3  ;;  %v3242_v38 = vadd.f32 %v3241_v53, %v6132_v26 }
 0x559   : > { %v2565_v1 = vadd.f32 %v6098_v25, %v2513_v34 }
 0x55a   : > { %v3243_v40 = vadd.f32 %v3242_v38, %v6136_v9 }
 0x55b   : > { %v2841_v58 = vpop.f32.mrf.mxu0  ;;  %v3169_v56 = vpop.f32.mrf.mxu1 }
 0x55c   : > { %v2894_v36 = vadd.f32 %v2841_v58, %v2564_v20  ;;  %v6204_v23 = vadd.f32 %v3169_v56, %v2893_v61  ;;  %v3244_v61 = vadd.f32 %v3243_v40, %v6144_v30  ;;  %v3278_v58 = vld [vmem:[%s6463_s9 + $0x8] sm:$0xff] }
 0x55d   : > { %3313 = vmatpush.msra.mxu2 %v3278_v58 }
 0x55e   : > { %v3245_v20 = vadd.f32 %v3244_v61, %v6148_v50 }
 0x560   : > { %v2516_v15 = vpop.f32.mrf.mxu3  ;;  %v3246_v56 = vadd.f32 %v3245_v20, %v6156_v21 }
 0x561   : > { %v2566_v11 = vadd.f32 %v6098_v25, %v2516_v15 }
 0x563   : > { %v2843_v0 = vpop.f32.mrf.mxu0  ;;  %v3172_v31 = vpop.f32.mrf.mxu1 }
 0x564   : > { %v2895_v42 = vadd.f32 %v2843_v0, %v2565_v1  ;;  %v6210_v3 = vadd.f32 %v3172_v31, %v2894_v36  ;;  %v3247_v36 = vadd.f32 %v3246_v56, %v6160_v14 }
 0x566   : > { %v3248_v1 = vadd.f32 %v3247_v36, %v6168_v8 }
 0x568   : > { %v2518_v24 = vpop.f32.mrf.mxu3  ;;  %v3249_v0 = vadd.f32 %v3248_v1, %v6172_v12 }
 0x569   : > { %v2567_v28 = vadd.f32 %v6098_v25, %v2518_v24 }
 0x56b   : > { %v2846_v57 = vpop.f32.mrf.mxu0  ;;  %v3174_v16 = vpop.f32.mrf.mxu1 }
 0x56c   : > { %v2896_v35 = vadd.f32 %v2846_v57, %v2566_v11  ;;  %v6213_v47 = vadd.f32 %v3174_v16, %v2895_v42  ;;  %v3250_v42 = vadd.f32 %v3249_v0, %v6180_v51 }
 0x56e   : > { %v3251_v11 = vadd.f32 %v3250_v42, %v6184_v29 }
 0x570   : > { %v2521_v5 = vpop.f32.mrf.mxu3 }
 0x571   : > { %v2568_v40 = vadd.f32 %v6098_v25, %v2521_v5 }
 0x573   : > { %v2848_v59 = vpop.f32.mrf.mxu0  ;;  %v3177_v43 = vpop.f32.mrf.mxu1 }
 0x574   : > { %v6218_v13 = vadd.f32 %v3177_v43, %v2896_v35  ;;  %v3252_v35 = vadd.f32 %v3251_v11, %v6191_v2  ;;  %v2897_v61 = vadd.f32 %v2848_v59, %v2567_v28 }
 0x576   : > { %v3253_v18 = vadd.f32 %v3252_v35, %v6195_v54 }
 0x578   : > { %v2523_v10 = vpop.f32.mrf.mxu3  ;;  %v3254_v43 = vadd.f32 %v3253_v18, %v6201_v7 }
 0x579   : > { %v2569_v58 = vadd.f32 %v6098_v25, %v2523_v10 }
 0x57a   : > { %v3255_v17 = vadd.f32 %v3254_v43, %v6204_v23 }
 0x57b   : > { %v2851_v55 = vpop.f32.mrf.mxu0  ;;  %v3179_v33 = vpop.f32.mrf.mxu1 }
 0x57c   : > { %v3256_v38 = vadd.f32 %v3255_v17, %v6210_v3  ;;  %v6252_v56 = vadd.f32 %v3179_v33, %v2897_v61  ;;  %v2898_v36 = vadd.f32 %v2851_v55, %v2568_v40 }
 0x57e   : > { %v3257_v20 = vadd.f32 %v3256_v38, %v6213_v47 }
 0x580   : > { %v2526_v44 = vpop.f32.mrf.mxu3  ;;  %v3258_v1 = vadd.f32 %v3257_v20, %v6218_v13 }
 0x581   : > { %v2570_v0 = vadd.f32 %v6098_v25, %v2526_v44  ;;  %v3277_v44 = vld [vmem:[%s6463_s9] sm:$0xff] }
 0x582   : > { %v3259_v11 = vadd.f32 %v3258_v1, %v6252_v56  ;;  %3314 = vmatpush.msra.mxu2 %v3277_v44 }
 0x583   : > { %v2853_v46 = vpop.f32.mrf.mxu0  ;;  %v3182_v63 = vpop.f32.mrf.mxu1 }
 0x584   : > { %v6256_v42 = vadd.f32 %v3182_v63, %v2898_v36  ;;  %v2899_v24 = vadd.f32 %v2853_v46, %v2569_v58 }
 0x586   : > { %v3260_v10 = vadd.f32 %v3259_v11, %v6256_v42 }
 0x588   : > { %v2528_v32 = vpop.f32.mrf.mxu3 }
 0x589   : > { %v2571_v35 = vadd.f32 %v6098_v25, %v2528_v32 }
 0x58b   : > { %v2856_v27 = vpop.f32.mrf.mxu0  ;;  %v3184_v6 = vpop.f32.mrf.mxu1 }
 0x58c   : > { %v6260_v5 = vadd.f32 %v3184_v6, %v2899_v24  ;;  %v2900_v59 = vadd.f32 %v2856_v27, %v2570_v0 }
 0x58e   : > { %v3261_v63 = vadd.f32 %v3260_v10, %v6260_v5 }
 0x590   : > { %v2531_v45 = vpop.f32.mrf.mxu3 }
 0x591   : > { %v2572_v55 = vadd.f32 %v6098_v25, %v2531_v45  ;;  %v3297_v45 = vld [vmem:[%s6465_s11 + $0x18] sm:$0xff] }
 0x592   : > { %3335 = vmatpush.msrb.mxu2 %v3297_v45  ;;  %v3293_v45 = vld [vmem:[%s6464_s10] sm:$0x1] }
 0x593   : > { %v2858_v48 = vpop.f32.mrf.mxu0  ;;  %v3187_v39 = vpop.f32.mrf.mxu1 }
 0x594   : > { %v6264_v33 = vadd.f32 %v3187_v39, %v2900_v59  ;;  %v2901_v17 = vadd.f32 %v2858_v48, %v2571_v35  ;;  %v3296_v48 = vld [vmem:[%s6465_s11 + $0x10] sm:$0xff] }
 0x595   : > { %3336 = vmatpush.msrb.mxu2 %v3296_v48 }
 0x596   : > { %v3262_v39 = vadd.f32 %v3261_v63, %v6264_v33 }
 0x598   : > { %v2533_v34 = vpop.f32.mrf.mxu3 }
 0x599   : > { %v2573_v32 = vadd.f32 %v6098_v25, %v2533_v34 }
 0x59b   : > { %v2861_v49 = vpop.f32.mrf.mxu0  ;;  %v3189_v19 = vpop.f32.mrf.mxu1 }
 0x59c   : > { %v6271_v27 = vadd.f32 %v3189_v19, %v2901_v17  ;;  %v2902_v6 = vadd.f32 %v2861_v49, %v2572_v55 }
 0x59e   : > { %v3263_v19 = vadd.f32 %v3262_v39, %v6271_v27 }
 0x5a0   : > { %v2536_v31 = vpop.f32.mrf.mxu3 }
 0x5a1   : > { %v2574_v28 = vadd.f32 %v6098_v25, %v2536_v31 }
 0x5a3   : > { %v2863_v62 = vpop.f32.mrf.mxu0  ;;  %v3192_v15 = vpop.f32.mrf.mxu1 }
 0x5a4   : > { %v6281_v38 = vadd.f32 %v3192_v15, %v2902_v6  ;;  %v2903_v40 = vadd.f32 %v2863_v62, %v2573_v32  ;;  %v3294_v6 = vld [vmem:[%s6465_s11] sm:$0xff] }
 0x5a6   : > { %v3264_v58 = vadd.f32 %v3263_v19, %v6281_v38 }
 0x5a8   : > { %v2538_v4 = vpop.f32.mrf.mxu3 }
 0x5a9   : > { %v2575_v49 = vadd.f32 %v6098_v25, %v2538_v4 }
 0x5ab   : > { %v2866_v57 = vpop.f32.mrf.mxu0  ;;  %v3194_v16 = vpop.f32.mrf.mxu1 }
 0x5ac   : > { %v6285_v34 = vadd.f32 %v3194_v16, %v2903_v40  ;;  %v2904_v61 = vadd.f32 %v2866_v57, %v2574_v28  ;;  %v3298_v40 = vld [vmem:[%s6466_s12] sm:$0x1] }
 0x5ae   : > { %v3265_v15 = vadd.f32 %v3264_v58, %v6285_v34 }
 0x5b0   : > { %v2541_v18 = vpop.f32.mrf.mxu3 }
 0x5b1   : > { %v2576_v36 = vadd.f32 %v6098_v25, %v2541_v18 }
 0x5b3   : > { %v3197_v60 = vpop.f32.mrf.mxu1  ;;  %v2868_v53 = vpop.f32.mrf.mxu0 }
 0x5b4   : > { %v6289_v1 = vadd.f32 %v3197_v60, %v2904_v61  ;;  %v2905_v0 = vadd.f32 %v2868_v53, %v2575_v49 }
 0x5b6   : > { %v3266_v4 = vadd.f32 %v3265_v15, %v6289_v1 }
 0x5b8   : > { %v2543_v31 = vpop.f32.mrf.mxu3 }
 0x5b9   : > { %v2577_v16 = vadd.f32 %v6098_v25, %v2543_v31  ;;  %v3295_v25 = vld [vmem:[%s6465_s11 + $0x8] sm:$0xff] }
 0x5ba   : > { %3337 = vmatpush.msrb.mxu2 %v3295_v25 }
 0x5bb   : > { %v3199_v43 = vpop.f32.mrf.mxu1  ;;  %v2871_v46 = vpop.f32.mrf.mxu0 }
 0x5bc   : > { %v6292_v62 = vadd.f32 %v3199_v43, %v2905_v0  ;;  %v2906_v24 = vadd.f32 %v2871_v46, %v2576_v36  ;;  %3338 = vmatpush.msrb.mxu2 %v3294_v6 }
 0x5be   : > { %v3267_v35 = vadd.f32 %v3266_v4, %v6292_v62 }
 0x5c3   : > { %v3202_v20 = vpop.f32.mrf.mxu1  ;;  %v2873_v11 = vpop.f32.mrf.mxu0 }
 0x5c4   : > { %v6296_v57 = vadd.f32 %v3202_v20, %v2906_v24  ;;  %v2907_v59 = vadd.f32 %v2873_v11, %v2577_v16 }
 0x5c6   : > { %v3268_v60 = vadd.f32 %v3267_v35, %v6296_v57 }
 0x5cb   : > { %v3204_v18 = vpop.f32.mrf.mxu1 }
 0x5cc   : > { %v6300_v53 = vadd.f32 %v3204_v18, %v2907_v59 }
 0x5ce   : > { %v3269_v10 = vadd.f32 %v3268_v60, %v6300_v53 }
 0x5d0   : > { %v3270_v43 = vrot.slane %v3269_v10, 4 }
 0x5d2   : > { %v3271_v55 = vadd.f32 %v3270_v43, %v3269_v10 }
 0x5d4   : > { %v3272_v17 = vrot.slane %v3271_v55, 2 }
 0x5d6   : > { %v3273_v44 = vadd.f32 %v3272_v17, %v3271_v55 }
 0x5d8   : > { %v3274_v46 = vrot.slane %v3273_v44, 1 }
 0x5da   : > { %v3275_v63 = vadd.f32 %v3274_v46, %v3273_v44 }
 0x5dc   : > { %v3276_v32 = vmul.f32 0.00390625, %v3275_v63 }
 0x5de   : > { %3315 = vmatmul.f32.vlgmr.msra.gmra.mxu2 %v3276_v32 }
 0x661   : > { %v3316_v48 = vpop.f32.mrf.mxu2 }
 0x662   : > { %v3317_v39 = vadd.f32 %v3316_v48, %v3293_v45 }
 0x664   : > { %v3319_v28 = vmax.f32 %v3317_v39, 0.0 }
 0x666   : > { %3950 = vmatmul.msk.f32.vlgmr.msrb.gmra.mxu2 %vm1520_vm6, %v3319_v28 }
 0x6e9   : > { %v3340_v19 = vpop.f32.mrf.mxu2 }
 0x6ea   : > { %v3341_v49 = vadd.f32 %v3340_v19, %v3298_v40 }
 0x6ec   : > { %v3951_v61 = vmul.f32 -1.442695, %v3341_v49 }
 0x6ee   : > { %4241 = vpow2.f32 %v3951_v61 }
 0x6f4   : > { %v4242_v20 = vpop.eup %4241 }
 0x6f5   : > { %v3346_v58 = vadd.f32 1.0, %v4242_v20 }
 0x6f7   : > { %4243 = vrcp.f32 %v3346_v58  ;;  %v3358_v15 = vand.u32 2147483648, %v3346_v58  ;;  %v3356_v11 = vand.u32 2147483647, %v3346_v58  ;;  %vm3352_vm15 = vweird.f32 %v3346_v58 }
 0x6f9   : > { %v3359_v16 = vor.u32 1.1754944e-38, %v3358_v15  ;;  %vm3357_vm1 = vcmp.eq.f32.partialorder %v3356_v11, 8.507059e+37 }
 0x6fd   : > { %v4244_v36 = vpop.eup %4243 }
 0x6fe   : > { %v3348_v0 = vmul.f32 %v4244_v36, %v3346_v58  ;;  %vm3353_vm14 = vweird.f32 %v4244_v36 }
 0x6ff   : > { %vm3354_vm0 = vmor %vm3352_vm15, %vm3353_vm14 }
 0x700   : > { %v3349_v31 = vsub.f32 1.0, %v3348_v0 }
 0x702   : > { %v3350_v24 = vmul.f32 %v4244_v36, %v3349_v31 }
 0x704   : > { %v3351_v4 = vadd.f32 %v4244_v36, %v3350_v24 }
 0x706   : > { %v3355_v35 = vsel %vm3354_vm0, %v4244_v36, %v3351_v4 }
 0x707   : > { %v3360_v59 = vsel %vm3357_vm1, %v3359_v16, %v3355_v35 }
 0x708   : > { %v6319_v18 = vperm.slane %v3360_v59, 0 }
 0x70a   : > { %v3363_v60 = vmul.f32 %v6319_v18, %v6107_v52  ;;  %v3364_v10 = vmul.f32 %v6319_v18, %v6112_v22  ;;  %v3365_v43 = vmul.f32 %v6319_v18, %v6120_v41  ;;  %v3366_v55 = vmul.f32 %v6319_v18, %v6124_v37 }
 0x70b   : > { %v3367_v17 = vmul.f32 %v6319_v18, %v6132_v26  ;;  %v3368_v52 = vmul.f32 %v6319_v18, %v6136_v9  ;;  %v3369_v22 = vmul.f32 %v6319_v18, %v6144_v30  ;;  %v3370_v41 = vmul.f32 %v6319_v18, %v6148_v50 }
 0x70c   : > { %3395 = vst [vmem:[%s6331_s24] sm:$0xff] %v3363_v60  ;;  %v3371_v37 = vmul.f32 %v6319_v18, %v6156_v21  ;;  %v3372_v26 = vmul.f32 %v6319_v18, %v6160_v14  ;;  %v3373_v9 = vmul.f32 %v6319_v18, %v6168_v8  ;;  %v3374_v30 = vmul.f32 %v6319_v18, %v6172_v12 }
 0x70d   : > { %3396 = vst [vmem:[%s6331_s24 + $0x8] sm:$0xff] %v3364_v10  ;;  %v3375_v50 = vmul.f32 %v6319_v18, %v6180_v51  ;;  %v3376_v21 = vmul.f32 %v6319_v18, %v6184_v29  ;;  %v3377_v14 = vmul.f32 %v6319_v18, %v6191_v2  ;;  %v3378_v8 = vmul.f32 %v6319_v18, %v6195_v54 }
 0x70e   : > { %3397 = vst [vmem:[%s6331_s24 + $0x10] sm:$0xff] %v3365_v43  ;;  %v3379_v12 = vmul.f32 %v6319_v18, %v6201_v7  ;;  %v3380_v51 = vmul.f32 %v6319_v18, %v6204_v23  ;;  %v3381_v29 = vmul.f32 %v6319_v18, %v6210_v3  ;;  %v3382_v2 = vmul.f32 %v6319_v18, %v6213_v47 }
 0x70f   : > { %3398 = vst [vmem:[%s6331_s24 + $0x18] sm:$0xff] %v3366_v55  ;;  %v3383_v54 = vmul.f32 %v6319_v18, %v6218_v13  ;;  %v3384_v7 = vmul.f32 %v6319_v18, %v6252_v56  ;;  %v3385_v23 = vmul.f32 %v6319_v18, %v6256_v42  ;;  %v3386_v3 = vmul.f32 %v6319_v18, %v6260_v5 }
 0x710   : > { %3399 = vst [vmem:[%s6331_s24 + $0x20] sm:$0xff] %v3367_v17  ;;  %v3387_v47 = vmul.f32 %v6319_v18, %v6264_v33  ;;  %v3388_v13 = vmul.f32 %v6319_v18, %v6271_v27  ;;  %v3389_v56 = vmul.f32 %v6319_v18, %v6281_v38  ;;  %v3390_v42 = vmul.f32 %v6319_v18, %v6285_v34 }
 0x711   : > { %3400 = vst [vmem:[%s6331_s24 + $0x28] sm:$0xff] %v3368_v52  ;;  %v3391_v5 = vmul.f32 %v6319_v18, %v6289_v1  ;;  %v3392_v33 = vmul.f32 %v6319_v18, %v6292_v62  ;;  %v3393_v27 = vmul.f32 %v6319_v18, %v6296_v57  ;;  %v3394_v38 = vmul.f32 %v6319_v18, %v6300_v53 }
 0x712   : > { %3401 = vst [vmem:[%s6331_s24 + $0x30] sm:$0xff] %v3369_v22 }
 0x713   : > { %3402 = vst [vmem:[%s6331_s24 + $0x38] sm:$0xff] %v3370_v41 }
 0x714   : > { %3403 = vst [vmem:[%s6331_s24 + $0x40] sm:$0xff] %v3371_v37 }
 0x715   : > { %3404 = vst [vmem:[%s6331_s24 + $0x48] sm:$0xff] %v3372_v26 }
 0x716   : > { %3405 = vst [vmem:[%s6331_s24 + $0x50] sm:$0xff] %v3373_v9 }
 0x717   : > { %3406 = vst [vmem:[%s6331_s24 + $0x58] sm:$0xff] %v3374_v30 }
 0x718   : > { %3407 = vst [vmem:[%s6331_s24 + $0x60] sm:$0xff] %v3375_v50 }
 0x719   : > { %3408 = vst [vmem:[%s6331_s24 + $0x68] sm:$0xff] %v3376_v21 }
 0x71a   : > { %3409 = vst [vmem:[%s6331_s24 + $0x70] sm:$0xff] %v3377_v14 }
 0x71b   : > { %3410 = vst [vmem:[%s6331_s24 + $0x78] sm:$0xff] %v3378_v8 }
 0x71c   : > { %3411 = vst [vmem:[%s6331_s24 + $0x80] sm:$0xff] %v3379_v12 }
 0x71d   : > { %3412 = vst [vmem:[%s6331_s24 + $0x88] sm:$0xff] %v3380_v51 }
 0x71e   : > { %3413 = vst [vmem:[%s6331_s24 + $0x90] sm:$0xff] %v3381_v29 }
 0x71f   : > { %3414 = vst [vmem:[%s6331_s24 + $0x98] sm:$0xff] %v3382_v2 }
 0x720   : > { %3415 = vst [vmem:[%s6331_s24 + $0xa0] sm:$0xff] %v3383_v54 }
 0x721   : > { %3416 = vst [vmem:[%s6331_s24 + $0xa8] sm:$0xff] %v3384_v7 }
 0x722   : > { %3417 = vst [vmem:[%s6331_s24 + $0xb0] sm:$0xff] %v3385_v23 }
 0x723   : > { %3418 = vst [vmem:[%s6331_s24 + $0xb8] sm:$0xff] %v3386_v3 }
 0x724   : > { %3419 = vst [vmem:[%s6331_s24 + $0xc0] sm:$0xff] %v3387_v47 }
 0x725   : > { %3420 = vst [vmem:[%s6331_s24 + $0xc8] sm:$0xff] %v3388_v13 }
 0x726   : > { %3421 = vst [vmem:[%s6331_s24 + $0xd0] sm:$0xff] %v3389_v56 }
 0x727   : > { %3422 = vst [vmem:[%s6331_s24 + $0xd8] sm:$0xff] %v3390_v42 }
 0x728   : > { %3423 = vst [vmem:[%s6331_s24 + $0xe0] sm:$0xff] %v3391_v5 }
 0x729   : > { %3424 = vst [vmem:[%s6331_s24 + $0xe8] sm:$0xff] %v3392_v33 }
 0x72a   : > { %3425 = vst [vmem:[%s6331_s24 + $0xf0] sm:$0xff] %v3393_v27 }
 0x72b   : > { %3426 = vst [vmem:[%s6331_s24 + $0xf8] sm:$0xff] %v3394_v38 }
 0x72c   : > { %4272 = shalt.err (!%p4269_p3)
}
 0x72d   : > { %s4315_s20 = smov 128  }
 0x72e   : > { %4029 = dma.vmem_to_hbm [thread:$0]  (%p4424_p5), %s3441_s23, 4096, %s3443_s16, %s3428_s30, %s4315_s20, %s4315_s20, %s6490_s21  }
 0x72f PF: > { %p4035_p4 = scmp.ge.s32.totalorder %s4307_s28, 2  ;;  %s3457_s24 = sand.u32 1, %s4295_s25  }
 0x730   : > { %s3458_s2 = scalar_lea.sflag [#allocation4], %s3457_s24 }
 0x731   : > { %p4032_p7 = pnand %p4035_p4, %p4428_p6 }
 0x733   : > { %p4033_p8 = pneg %p4032_p7 }
 0x735   : > { %4290 = dma.done.wait (%p4033_p8), %s3458_s2, 4096  }
 0x736   : > { %4292 = vsyncadd (%p4033_p8), %s3458_s2, 4294963200  ;;  %p23_p9 = scmp.ge.s32.totalorder %s4411_s14, 4   ;;  %s6526_s25 = smov %s4299_s26 }
 0x737   : > { %s6527_s26 = smov %s4303_s27  ;;  %s6528_s27 = smov %s4422_s17 }
 0x738   : > { %s6529_s28 = smov %s4411_s14  ;;  %25 = sbr.rel (!%p23_p9) target bundleno = 8 (0x8), region = 114 }
 0x73d   :  { %3464 = vsyncpa [#allocation4], 1 }
 0x73e   :  { %3466 = vsyncpa [#allocation4 + $0x1], 1 }

</bundles_post_ra>
